<compile_context>
chip_gen: v7x
topology: tpu7x:2x2x1
jax: 0.10.0
libtpu: 0.0.40
codegen_flags: <defaults>
</compile_context>

<pallas_src>
import functools

import jax
import jax.numpy as jnp
from jax import lax
from jax.experimental import pallas as pl
from jax.experimental.pallas import tpu as pltpu

EPS = 1e-6        # `eps` global in the reference source (undefined there)
LN_EPS = 1e-5     # torch.nn.LayerNorm default eps
SCALE_FACT = 100.0
LANE = 128
SUB = 8
VMEM_LIMIT = 32 * 1024 * 1024   # safe on v5e/v6e/v7x (v7x scoped default is 32 MiB)

_VMEM = pl.BlockSpec(memory_space=pltpu.MemorySpace.VMEM)


def _round_up(x, m):
    return (x + m - 1) // m * m


# ----------------------------------------------------------------------------
# Kernel 1: tiled B-cos dense:  out = (X @ W) * |cos|^(b-1) / scale  (+ ones col)
# ----------------------------------------------------------------------------
def _bcos_dense_kernel(x_ref, w_ref, o_ref, *, b_exp, inv_scale, eps, ones_col):
    x = x_ref[...]                                            # (TM, K) f32
    out = jnp.dot(x.astype(jnp.bfloat16), w_ref[...],
                  preferred_element_type=jnp.float32)         # (TM, N) MXU bf16
    inv_norm = lax.rsqrt(jnp.sum(x * x, axis=-1, keepdims=True) + eps)
    abs_cos = jnp.abs(out) * inv_norm + eps
    if b_exp == 2:                                            # no pow for b=2
        res = out * abs_cos * inv_scale
    else:
        res = out * (abs_cos ** (b_exp - 1)) * inv_scale
    if ones_col is not None:                                  # fused constant-1 feature
        cid = lax.broadcasted_iota(jnp.int32, res.shape, 1)
        res = jnp.where(cid == ones_col, 1.0, res)
    o_ref[...] = res


def bcos_dense(x, w_bf16, *, scale, b_exp=2, ones_col=None, block_m=256):
    m, k = x.shape
    n = w_bf16.shape[1]
    assert m % SUB == 0 and n % LANE == 0
    tm = min(block_m, m)
    while m % tm:
        tm //= 2
    kern = functools.partial(_bcos_dense_kernel, b_exp=b_exp,
                             inv_scale=1.0 / scale, eps=EPS, ones_col=ones_col)
    return pl.pallas_call(
        kern,
        out_shape=jax.ShapeDtypeStruct((m, n), jnp.float32),
        grid=(m // tm,),
        in_specs=[pl.BlockSpec((tm, k), lambda i: (i, 0)),
                  pl.BlockSpec((k, n), lambda i: (0, 0))],
        out_specs=pl.BlockSpec((tm, n), lambda i: (i, 0)),
        compiler_params=pltpu.CompilerParams(
            dimension_semantics=("parallel",),
            vmem_limit_bytes=VMEM_LIMIT),
    )(x, w_bf16)


# ----------------------------------------------------------------------------
# Kernel 2: fused channels-last B-cos conv1d (sum of K shifted matmuls)
# ----------------------------------------------------------------------------
def _bcos_conv_kernel(x_ref, w_ref, o_ref, *, ksize, stride, l_out,
                      b_exp, inv_scale, eps):
    x = x_ref[0]                                  # (L_pad/stride, stride*C_in) f32
    c_in = x.shape[-1] // stride
    c_out = o_ref.shape[-1]
    acc = jnp.zeros((l_out, c_out), jnp.float32)
    nsq = jnp.zeros((l_out, 1), jnp.float32)
    for t in range(ksize):                        # static unroll over taps
        off, par = t // stride, t % stride
        xt = x[off:off + l_out, par * c_in:(par + 1) * c_in]   # static slices only
        acc = acc + jnp.dot(xt.astype(jnp.bfloat16), w_ref[t],
                            preferred_element_type=jnp.float32)
        nsq = nsq + jnp.sum(xt * xt, axis=-1, keepdims=True)   # patch L2 norm
    inv_norm = lax.rsqrt(nsq + eps)
    abs_cos = jnp.abs(acc) * inv_norm + eps
    if b_exp == 2:
        res = acc * abs_cos * inv_scale
    else:
        res = acc * (abs_cos ** (b_exp - 1)) * inv_scale
    o_ref[0] = res


def bcos_conv1d(x_blc, w_kcc_bf16, *, kernel_size, stride, padding,
                c_in_real, b_exp=2):
    # x_blc: (B, L, C_stored) channels-last f32; weight: (K, C_stored, C_out_pad) bf16
    b, l, c_stored = x_blc.shape
    c_out = w_kcc_bf16.shape[-1]
    l_pad = l + 2 * padding
    extra = (-l_pad) % stride                    # make L_pad divisible by stride
    xp = jnp.pad(x_blc, ((0, 0), (padding, padding + extra), (0, 0)))
    l_pad += extra
    l_out = (l + 2 * padding - kernel_size) // stride + 1
    l_half = l_pad // stride
    # contiguous reshape (free): row i of x_pairs holds positions i*stride .. +stride-1
    x_pairs = xp.reshape(b, l_half, stride * c_stored)
    scale = (kernel_size * c_in_real) ** 0.5 / SCALE_FACT
    kern = functools.partial(_bcos_conv_kernel, ksize=kernel_size, stride=stride,
                             l_out=l_out, b_exp=b_exp, inv_scale=1.0 / scale, eps=EPS)
    return pl.pallas_call(
        kern,
        out_shape=jax.ShapeDtypeStruct((b, l_out, c_out), jnp.float32),
        grid=(b,),
        in_specs=[pl.BlockSpec((1, l_half, stride * c_stored), lambda i: (i, 0, 0)),
                  pl.BlockSpec((kernel_size, c_stored, c_out), lambda i: (0, 0, 0))],
        out_specs=pl.BlockSpec((1, l_out, c_out), lambda i: (i, 0, 0)),
        compiler_params=pltpu.CompilerParams(
            dimension_semantics=("parallel",),
            vmem_limit_bytes=VMEM_LIMIT),
    )(x_pairs, w_kcc_bf16)


# ----------------------------------------------------------------------------
# Kernel 3: fused BCosAttention block + following BCosDense(fc)
# ----------------------------------------------------------------------------
def _bcos_attn_fc_kernel(x_ref, wq_ref, wk_ref, gv_ref, bv_ref, gu_ref, bu_ref,
                         wfc_ref, o_ref, *, b_real, dim_real, b_exp,
                         inv_unit_scale, inv_fc_scale, fc_ones_col, eps, ln_eps):
    x = x_ref[...]                                            # (B_pad, dim_pad) f32
    rid = lax.broadcasted_iota(jnp.int32, x.shape, 0)
    cid = lax.broadcasted_iota(jnp.int32, x.shape, 1)
    x = jnp.where((rid < b_real) & (cid < dim_real), x, 0.0)  # zero row/col padding
    xb = x.astype(jnp.bfloat16)
    q = jnp.dot(xb, wq_ref[...], preferred_element_type=jnp.float32)
    k = jnp.dot(xb, wk_ref[...], preferred_element_type=jnp.float32)
    # NOTE: the reference computes a V projection that is never used -> dropped.

    inv_d = 1.0 / dim_real

    def bcos_unit(p_in, gamma, beta):
        # BCos module: LayerNorm (over real dims) -> p*(|p|/||p||+eps)^(b-1)/scale
        mu = jnp.sum(p_in, axis=-1, keepdims=True) * inv_d
        ex2 = jnp.sum(p_in * p_in, axis=-1, keepdims=True) * inv_d
        var = jnp.maximum(ex2 - mu * mu, 0.0)
        p = (p_in - mu) * lax.rsqrt(var + ln_eps) * gamma + beta   # pad gamma/beta == 0
        inv_norm = lax.rsqrt(jnp.sum(p * p, axis=-1, keepdims=True) + eps)
        abs_cos = jnp.abs(p) * inv_norm + eps
        if b_exp == 2:
            return p * abs_cos * inv_unit_scale
        return p * (abs_cos ** (b_exp - 1)) * inv_unit_scale

    wvp = bcos_unit(x, gv_ref[...], bv_ref[...])

    # softmax(q @ k^T) over the batch axis (reference applies no 1/sqrt(d) scale)
    s = lax.dot_general(q, k, (((1,), (1,)), ((), ())),
                        preferred_element_type=jnp.float32)        # (B_pad, B_pad)
    bcol = lax.broadcasted_iota(jnp.int32, s.shape, 1)
    s = jnp.where(bcol < b_real, s, -1e30)                          # mask padded keys
    s = s - jnp.max(s, axis=-1, keepdims=True)
    e = jnp.exp(s)
    ah = e * pl.reciprocal(jnp.sum(e, axis=-1, keepdims=True), approx=True)

    x_ = jnp.dot(ah, wvp, preferred_element_type=jnp.float32)       # (B_pad, dim_pad)
    wvu = bcos_unit(x_, gu_ref[...], bu_ref[...])
    wx = lax.dot_general(wvu, x_, (((1,), (1,)), ((), ())),
                         preferred_element_type=jnp.float32)        # (B_pad, B_pad)
    out = jnp.dot(wx, x, preferred_element_type=jnp.float32)        # (B_pad, dim_pad)
    inv_norm = lax.rsqrt(jnp.sum(out * out, axis=-1, keepdims=True) + eps)
    attn = jnp.abs(out) * inv_norm + eps
    attn = jnp.where(cid < dim_real, attn, 0.0)                     # keep padding exact

    # fused epilogue: BCosDense(dim, dim-1) + constant-1 feature
    fco = jnp.dot(attn.astype(jnp.bfloat16), wfc_ref[...],
                  preferred_element_type=jnp.float32)
    inv_n2 = lax.rsqrt(jnp.sum(attn * attn, axis=-1, keepdims=True) + eps)
    abs_cos2 = jnp.abs(fco) * inv_n2 + eps
    if b_exp == 2:
        y = fco * abs_cos2 * inv_fc_scale
    else:
        y = fco * (abs_cos2 ** (b_exp - 1)) * inv_fc_scale
    y = jnp.where(cid == fc_ones_col, 1.0, y)
    o_ref[...] = y


def bcos_attention_fc(x, wq, wk, gv, bv, gu, bu, wfc, *, b_real, dim_real, b_exp=2):
    bp, dp = x.shape
    unit_scale = dim_real ** 0.5 / SCALE_FACT
    fc_scale = dim_real ** 0.5 / SCALE_FACT
    kern = functools.partial(_bcos_attn_fc_kernel, b_real=b_real, dim_real=dim_real,
                             b_exp=b_exp, inv_unit_scale=1.0 / unit_scale,
                             inv_fc_scale=1.0 / fc_scale, fc_ones_col=dim_real - 1,
                             eps=EPS, ln_eps=LN_EPS)
    # batch-coupled softmax + LayerNorm couple all rows/cols -> single small block.
    return pl.pallas_call(
        kern,
        out_shape=jax.ShapeDtypeStruct((bp, dp), jnp.float32),
        in_specs=[_VMEM] * 8,
        out_specs=_VMEM,
        compiler_params=pltpu.CompilerParams(vmem_limit_bytes=VMEM_LIMIT),
    )(x, wq, wk, gv, bv, gu, bu, wfc)


# ----------------------------------------------------------------------------
# Parameters: reference-layout init + one-time kernel-layout (padded, bf16) prep
# ----------------------------------------------------------------------------
def init_params(key, *, dim, depth, heads, nclass, dim_head, kernel_size,
                n_filters_out, seq_len):
    keys = iter(jax.random.split(key, 4 + len(n_filters_out) + 4 * depth))
    params = {"convs": []}
    for i in range(len(n_filters_out) - 1):
        cin, cout = n_filters_out[i], n_filters_out[i + 1]
        w = jax.random.normal(next(keys), (cout, cin, kernel_size), jnp.float32)
        params["convs"].append(w / (cin * kernel_size) ** 0.5)

    dim_in = int(n_filters_out[-1] * (seq_len / 2 ** (len(n_filters_out) - 1)))
    params["embedding"] = (jax.random.normal(next(keys), (dim_in, dim - 1), jnp.float32)
                           / dim_in ** 0.5)
    hd = heads * dim_head
    params["layers"] = []
    for _ in range(depth):
        params["layers"].append({
            # reference has one Linear(dim, 3*h*d); V is unused -> generate Wq/Wk only
            "wq": jax.random.normal(next(keys), (dim, hd), jnp.float32) / dim ** 0.5,
            "wk": jax.random.normal(next(keys), (dim, hd), jnp.float32) / dim ** 0.5,
            "gv": jnp.ones((dim,), jnp.float32), "bv": jnp.zeros((dim,), jnp.float32),
            "gu": jnp.ones((dim,), jnp.float32), "bu": jnp.zeros((dim,), jnp.float32),
            "w_fc": jax.random.normal(next(keys), (dim, dim - 1), jnp.float32) / dim ** 0.5,
        })
    params["classifier"] = (jax.random.normal(next(keys), (dim, nclass - 1), jnp.float32)
                            / dim ** 0.5)
    return params


def prepare_kernel_params(params, *, dim, n_filters_out, seq_len):
    """Pad to 128-lane feature dims, cast weights to bf16, permute the embedding
    weight so the position-major padded channels-last flatten matches the
    reference channel-major flatten.  One-time host transform."""
    dim_pad = _round_up(dim, LANE)
    kp = {"convs": []}
    for i, w in enumerate(params["convs"]):
        cout, cin, _ = w.shape
        cin_stored = cin if i == 0 else _round_up(cin, LANE)
        cout_stored = _round_up(cout, LANE)
        wt = jnp.transpose(w, (2, 1, 0))                     # (K, C_in, C_out)
        wt = jnp.pad(wt, ((0, 0), (0, cin_stored - cin), (0, cout_stored - cout)))
        kp["convs"].append(wt.astype(jnp.bfloat16))

    c_last = n_filters_out[-1]
    c_last_stored = _round_up(c_last, LANE)
    l_final = seq_len // 2 ** (len(n_filters_out) - 1)
    w_e = params["embedding"].reshape(c_last, l_final, dim - 1)   # [c*Lf + l] rows
    w_e = jnp.transpose(w_e, (1, 0, 2))                           # -> [l, c, :]
    w_e = jnp.pad(w_e, ((0, 0), (0, c_last_stored - c_last), (0, dim_pad - (dim - 1))))
    kp["embedding"] = w_e.reshape(l_final * c_last_stored, dim_pad).astype(jnp.bfloat16)

    def pad_mat(w):
        r, c = w.shape
        return jnp.pad(w, ((0, dim_pad - r), (0, _round_up(c, LANE) - c))).astype(jnp.bfloat16)

    def pad_vec(v):  # zero-padded gamma/beta keep padded columns exactly zero
        return jnp.pad(v, (0, dim_pad - v.shape[0])).reshape(1, dim_pad)

    kp["layers"] = [{
        "wq": pad_mat(l["wq"]), "wk": pad_mat(l["wk"]),
        "gv": pad_vec(l["gv"]), "bv": pad_vec(l["bv"]),
        "gu": pad_vec(l["gu"]), "bu": pad_vec(l["bu"]),
        "wfc": pad_mat(l["w_fc"]),
    } for l in params["layers"]]
    kp["classifier"] = pad_mat(params["classifier"])
    return kp


# ----------------------------------------------------------------------------
# Full forward
# ----------------------------------------------------------------------------
def bcos_transformer_forward(kparams, x, *, dim, nclass, kernel_size,
                             n_filters_out, seq_len, stride=2):
    padding = (kernel_size - 1) // 2
    b = x.shape[0]
    h = jnp.transpose(x, (0, 2, 1))               # (B, C, L) -> channels-last once
    for i, w in enumerate(kparams["convs"]):
        h = bcos_conv1d(h, w, kernel_size=kernel_size, stride=stride,
                        padding=padding, c_in_real=n_filters_out[i])
    h = h.reshape(b, -1)                          # padded channels-last flatten
    b_pad = _round_up(b, SUB)
    if b_pad != b:
        h = jnp.pad(h, ((0, b_pad - b), (0, 0)))  # pad batch to 8 sublanes once

    l_final = seq_len // 2 ** (len(n_filters_out) - 1)
    dim_in = n_filters_out[-1] * l_final
    h = bcos_dense(h, kparams["embedding"],
                   scale=dim_in ** 0.5 / SCALE_FACT, ones_col=dim - 1)

    for layer in kparams["layers"]:
        h = bcos_attention_fc(h, layer["wq"], layer["wk"], layer["gv"], layer["bv"],
                              layer["gu"], layer["bu"], layer["wfc"],
                              b_real=b, dim_real=dim)

    h = bcos_dense(h, kparams["classifier"],
                   scale=dim ** 0.5 / SCALE_FACT, ones_col=nclass - 1)
    return h[:b, :nclass]                         # drop row/lane padding at the end


if __name__ == "__main__":
    # Small config consistent with the module's __init__.
    dim, depth, heads, nclass, dim_head = 32, 2, 2, 5, 8
    kernel_size = 17
    n_filters_out = [8, 16, 32, 64]
    seq_len = 64
    batch = 2

    key = jax.random.PRNGKey(0)
    kx, kp = jax.random.split(key)
    x = jax.random.normal(kx, (batch, n_filters_out[0], seq_len), jnp.float32)

    ref_params = init_params(kp, dim=dim, depth=depth, heads=heads, nclass=nclass,
                             dim_head=dim_head, kernel_size=kernel_size,
                             n_filters_out=n_filters_out, seq_len=seq_len)
    kparams = prepare_kernel_params(ref_params, dim=dim,
                                    n_filters_out=n_filters_out, seq_len=seq_len)

    fwd = jax.jit(functools.partial(bcos_transformer_forward, dim=dim, nclass=nclass,
                                    kernel_size=kernel_size,
                                    n_filters_out=n_filters_out, seq_len=seq_len))
    out = jax.block_until_ready(fwd(kparams, x))
    assert out.shape == (batch, nclass), out.shape
    assert bool(jnp.all(jnp.isfinite(out)))
    print("KERNEL_OK")
</pallas_src>

<mosaic_0001>
module attributes {stable_mosaic.version = 11 : i64} {
  func.func @_bcos_conv_kernel(%arg0: i32, %arg1: memref<1x40x16xf32, #tpu.memory_space<vmem>>, %arg2: memref<17x8x128xbf16, #tpu.memory_space<vmem>>, %arg3: memref<1x32x128xf32, #tpu.memory_space<vmem>>) attributes {dimension_semantics = [#tpu.dimension_semantics<parallel>], iteration_bounds = array<i64: 2>, scalar_prefetch = 0 : i64, scratch_operands = 0 : i64, tpu.core_type = #tpu.core_type<tc>, window_params = [{transform_indices = @transform_0, window_bounds = array<i64: 1, 40, 16>}, {pipeline_mode = #tpu.pipeline_mode<synchronous>, transform_indices = @transform_1, window_bounds = array<i64: 17, 8, 128>}, {transform_indices = @transform_2, window_bounds = array<i64: 1, 32, 128>}]} {
    %c0 = arith.constant 0 : index
    %c0_0 = arith.constant 0 : index
    %c0_1 = arith.constant 0 : index
    %0 = vector.load %arg1[%c0, %c0_0, %c0_1] : memref<1x40x16xf32, #tpu.memory_space<vmem>>, vector<1x40x16xf32>
    %1 = vector.shape_cast %0 : vector<1x40x16xf32> to vector<40x16xf32>
    %cst = arith.constant 0.000000e+00 : f32
    %2 = vector.broadcast %cst : f32 to vector<32x128xf32>
    %cst_2 = arith.constant 0.000000e+00 : f32
    %3 = vector.broadcast %cst_2 : f32 to vector<32x1xf32>
    %4 = vector.extract_strided_slice %1 {offsets = [0, 0], sizes = [32, 8], strides = [1, 1]} : vector<40x16xf32> to vector<32x8xf32>
    %5 = arith.truncf %4 : vector<32x8xf32> to vector<32x8xbf16>
    %c0_3 = arith.constant 0 : index
    %c0_4 = arith.constant 0 : index
    %c0_5 = arith.constant 0 : index
    %6 = vector.load %arg2[%c0_3, %c0_4, %c0_5] : memref<17x8x128xbf16, #tpu.memory_space<vmem>>, vector<1x8x128xbf16>
    %7 = vector.shape_cast %6 : vector<1x8x128xbf16> to vector<8x128xbf16>
    %cst_6 = arith.constant dense<0.000000e+00> : vector<32x128xf32>
    %8 = tpu.matmul %5, %7, %cst_6 {dimension_numbers = #tpu.dot_dimension_numbers<[1], [0], [0], [1], [0, 0, 1, 1], [], []>} : vector<32x8xbf16>, vector<8x128xbf16>, vector<32x128xf32> -> vector<32x128xf32>
    %9 = arith.addf %2, %8 : vector<32x128xf32>
    %10 = arith.mulf %4, %4 : vector<32x8xf32>
    %cst_7 = arith.constant dense<0.000000e+00> : vector<32xf32>
    %11 = vector.multi_reduction <add>, %10, %cst_7 [1] : vector<32x8xf32> to vector<32xf32>
    %12 = vector.shape_cast %11 : vector<32xf32> to vector<32x1xf32>
    %13 = arith.addf %3, %12 : vector<32x1xf32>
    %14 = vector.extract_strided_slice %1 {offsets = [0, 8], sizes = [32, 8], strides = [1, 1]} : vector<40x16xf32> to vector<32x8xf32>
    %15 = arith.truncf %14 : vector<32x8xf32> to vector<32x8xbf16>
    %c1 = arith.constant 1 : index
    %c0_8 = arith.constant 0 : index
    %c0_9 = arith.constant 0 : index
    %16 = vector.load %arg2[%c1, %c0_8, %c0_9] : memref<17x8x128xbf16, #tpu.memory_space<vmem>>, vector<1x8x128xbf16>
    %17 = vector.shape_cast %16 : vector<1x8x128xbf16> to vector<8x128xbf16>
    %cst_10 = arith.constant dense<0.000000e+00> : vector<32x128xf32>
    %18 = tpu.matmul %15, %17, %cst_10 {dimension_numbers = #tpu.dot_dimension_numbers<[1], [0], [0], [1], [0, 0, 1, 1], [], []>} : vector<32x8xbf16>, vector<8x128xbf16>, vector<32x128xf32> -> vector<32x128xf32>
    %19 = arith.addf %9, %18 : vector<32x128xf32>
    %20 = arith.mulf %14, %14 : vector<32x8xf32>
    %cst_11 = arith.constant dense<0.000000e+00> : vector<32xf32>
    %21 = vector.multi_reduction <add>, %20, %cst_11 [1] : vector<32x8xf32> to vector<32xf32>
    %22 = vector.shape_cast %21 : vector<32xf32> to vector<32x1xf32>
    %23 = arith.addf %13, %22 : vector<32x1xf32>
    %24 = vector.extract_strided_slice %1 {offsets = [1, 0], sizes = [32, 8], strides = [1, 1]} : vector<40x16xf32> to vector<32x8xf32>
    %25 = arith.truncf %24 : vector<32x8xf32> to vector<32x8xbf16>
    %c2 = arith.constant 2 : index
    %c0_12 = arith.constant 0 : index
    %c0_13 = arith.constant 0 : index
    %26 = vector.load %arg2[%c2, %c0_12, %c0_13] : memref<17x8x128xbf16, #tpu.memory_space<vmem>>, vector<1x8x128xbf16>
    %27 = vector.shape_cast %26 : vector<1x8x128xbf16> to vector<8x128xbf16>
    %cst_14 = arith.constant dense<0.000000e+00> : vector<32x128xf32>
    %28 = tpu.matmul %25, %27, %cst_14 {dimension_numbers = #tpu.dot_dimension_numbers<[1], [0], [0], [1], [0, 0, 1, 1], [], []>} : vector<32x8xbf16>, vector<8x128xbf16>, vector<32x128xf32> -> vector<32x128xf32>
    %29 = arith.addf %19, %28 : vector<32x128xf32>
    %30 = arith.mulf %24, %24 : vector<32x8xf32>
    %cst_15 = arith.constant dense<0.000000e+00> : vector<32xf32>
    %31 = vector.multi_reduction <add>, %30, %cst_15 [1] : vector<32x8xf32> to vector<32xf32>
    %32 = vector.shape_cast %31 : vector<32xf32> to vector<32x1xf32>
    %33 = arith.addf %23, %32 : vector<32x1xf32>
    %34 = vector.extract_strided_slice %1 {offsets = [1, 8], sizes = [32, 8], strides = [1, 1]} : vector<40x16xf32> to vector<32x8xf32>
    %35 = arith.truncf %34 : vector<32x8xf32> to vector<32x8xbf16>
    %c3 = arith.constant 3 : index
    %c0_16 = arith.constant 0 : index
    %c0_17 = arith.constant 0 : index
    %36 = vector.load %arg2[%c3, %c0_16, %c0_17] : memref<17x8x128xbf16, #tpu.memory_space<vmem>>, vector<1x8x128xbf16>
    %37 = vector.shape_cast %36 : vector<1x8x128xbf16> to vector<8x128xbf16>
    %cst_18 = arith.constant dense<0.000000e+00> : vector<32x128xf32>
    %38 = tpu.matmul %35, %37, %cst_18 {dimension_numbers = #tpu.dot_dimension_numbers<[1], [0], [0], [1], [0, 0, 1, 1], [], []>} : vector<32x8xbf16>, vector<8x128xbf16>, vector<32x128xf32> -> vector<32x128xf32>
    %39 = arith.addf %29, %38 : vector<32x128xf32>
    %40 = arith.mulf %34, %34 : vector<32x8xf32>
    %cst_19 = arith.constant dense<0.000000e+00> : vector<32xf32>
    %41 = vector.multi_reduction <add>, %40, %cst_19 [1] : vector<32x8xf32> to vector<32xf32>
    %42 = vector.shape_cast %41 : vector<32xf32> to vector<32x1xf32>
    %43 = arith.addf %33, %42 : vector<32x1xf32>
    %44 = vector.extract_strided_slice %1 {offsets = [2, 0], sizes = [32, 8], strides = [1, 1]} : vector<40x16xf32> to vector<32x8xf32>
    %45 = arith.truncf %44 : vector<32x8xf32> to vector<32x8xbf16>
    %c4 = arith.constant 4 : index
    %c0_20 = arith.constant 0 : index
    %c0_21 = arith.constant 0 : index
    %46 = vector.load %arg2[%c4, %c0_20, %c0_21] : memref<17x8x128xbf16, #tpu.memory_space<vmem>>, vector<1x8x128xbf16>
    %47 = vector.shape_cast %46 : vector<1x8x128xbf16> to vector<8x128xbf16>
    %cst_22 = arith.constant dense<0.000000e+00> : vector<32x128xf32>
    %48 = tpu.matmul %45, %47, %cst_22 {dimension_numbers = #tpu.dot_dimension_numbers<[1], [0], [0], [1], [0, 0, 1, 1], [], []>} : vector<32x8xbf16>, vector<8x128xbf16>, vector<32x128xf32> -> vector<32x128xf32>
    %49 = arith.addf %39, %48 : vector<32x128xf32>
    %50 = arith.mulf %44, %44 : vector<32x8xf32>
    %cst_23 = arith.constant dense<0.000000e+00> : vector<32xf32>
    %51 = vector.multi_reduction <add>, %50, %cst_23 [1] : vector<32x8xf32> to vector<32xf32>
    %52 = vector.shape_cast %51 : vector<32xf32> to vector<32x1xf32>
    %53 = arith.addf %43, %52 : vector<32x1xf32>
    %54 = vector.extract_strided_slice %1 {offsets = [2, 8], sizes = [32, 8], strides = [1, 1]} : vector<40x16xf32> to vector<32x8xf32>
    %55 = arith.truncf %54 : vector<32x8xf32> to vector<32x8xbf16>
    %c5 = arith.constant 5 : index
    %c0_24 = arith.constant 0 : index
    %c0_25 = arith.constant 0 : index
    %56 = vector.load %arg2[%c5, %c0_24, %c0_25] : memref<17x8x128xbf16, #tpu.memory_space<vmem>>, vector<1x8x128xbf16>
    %57 = vector.shape_cast %56 : vector<1x8x128xbf16> to vector<8x128xbf16>
    %cst_26 = arith.constant dense<0.000000e+00> : vector<32x128xf32>
    %58 = tpu.matmul %55, %57, %cst_26 {dimension_numbers = #tpu.dot_dimension_numbers<[1], [0], [0], [1], [0, 0, 1, 1], [], []>} : vector<32x8xbf16>, vector<8x128xbf16>, vector<32x128xf32> -> vector<32x128xf32>
    %59 = arith.addf %49, %58 : vector<32x128xf32>
    %60 = arith.mulf %54, %54 : vector<32x8xf32>
    %cst_27 = arith.constant dense<0.000000e+00> : vector<32xf32>
    %61 = vector.multi_reduction <add>, %60, %cst_27 [1] : vector<32x8xf32> to vector<32xf32>
    %62 = vector.shape_cast %61 : vector<32xf32> to vector<32x1xf32>
    %63 = arith.addf %53, %62 : vector<32x1xf32>
    %64 = vector.extract_strided_slice %1 {offsets = [3, 0], sizes = [32, 8], strides = [1, 1]} : vector<40x16xf32> to vector<32x8xf32>
    %65 = arith.truncf %64 : vector<32x8xf32> to vector<32x8xbf16>
    %c6 = arith.constant 6 : index
    %c0_28 = arith.constant 0 : index
    %c0_29 = arith.constant 0 : index
    %66 = vector.load %arg2[%c6, %c0_28, %c0_29] : memref<17x8x128xbf16, #tpu.memory_space<vmem>>, vector<1x8x128xbf16>
    %67 = vector.shape_cast %66 : vector<1x8x128xbf16> to vector<8x128xbf16>
    %cst_30 = arith.constant dense<0.000000e+00> : vector<32x128xf32>
    %68 = tpu.matmul %65, %67, %cst_30 {dimension_numbers = #tpu.dot_dimension_numbers<[1], [0], [0], [1], [0, 0, 1, 1], [], []>} : vector<32x8xbf16>, vector<8x128xbf16>, vector<32x128xf32> -> vector<32x128xf32>
    %69 = arith.addf %59, %68 : vector<32x128xf32>
    %70 = arith.mulf %64, %64 : vector<32x8xf32>
    %cst_31 = arith.constant dense<0.000000e+00> : vector<32xf32>
    %71 = vector.multi_reduction <add>, %70, %cst_31 [1] : vector<32x8xf32> to vector<32xf32>
    %72 = vector.shape_cast %71 : vector<32xf32> to vector<32x1xf32>
    %73 = arith.addf %63, %72 : vector<32x1xf32>
    %74 = vector.extract_strided_slice %1 {offsets = [3, 8], sizes = [32, 8], strides = [1, 1]} : vector<40x16xf32> to vector<32x8xf32>
    %75 = arith.truncf %74 : vector<32x8xf32> to vector<32x8xbf16>
    %c7 = arith.constant 7 : index
    %c0_32 = arith.constant 0 : index
    %c0_33 = arith.constant 0 : index
    %76 = vector.load %arg2[%c7, %c0_32, %c0_33] : memref<17x8x128xbf16, #tpu.memory_space<vmem>>, vector<1x8x128xbf16>
    %77 = vector.shape_cast %76 : vector<1x8x128xbf16> to vector<8x128xbf16>
    %cst_34 = arith.constant dense<0.000000e+00> : vector<32x128xf32>
    %78 = tpu.matmul %75, %77, %cst_34 {dimension_numbers = #tpu.dot_dimension_numbers<[1], [0], [0], [1], [0, 0, 1, 1], [], []>} : vector<32x8xbf16>, vector<8x128xbf16>, vector<32x128xf32> -> vector<32x128xf32>
    %79 = arith.addf %69, %78 : vector<32x128xf32>
    %80 = arith.mulf %74, %74 : vector<32x8xf32>
    %cst_35 = arith.constant dense<0.000000e+00> : vector<32xf32>
    %81 = vector.multi_reduction <add>, %80, %cst_35 [1] : vector<32x8xf32> to vector<32xf32>
    %82 = vector.shape_cast %81 : vector<32xf32> to vector<32x1xf32>
    %83 = arith.addf %73, %82 : vector<32x1xf32>
    %84 = vector.extract_strided_slice %1 {offsets = [4, 0], sizes = [32, 8], strides = [1, 1]} : vector<40x16xf32> to vector<32x8xf32>
    %85 = arith.truncf %84 : vector<32x8xf32> to vector<32x8xbf16>
    %c8 = arith.constant 8 : index
    %c0_36 = arith.constant 0 : index
    %c0_37 = arith.constant 0 : index
    %86 = vector.load %arg2[%c8, %c0_36, %c0_37] : memref<17x8x128xbf16, #tpu.memory_space<vmem>>, vector<1x8x128xbf16>
    %87 = vector.shape_cast %86 : vector<1x8x128xbf16> to vector<8x128xbf16>
    %cst_38 = arith.constant dense<0.000000e+00> : vector<32x128xf32>
    %88 = tpu.matmul %85, %87, %cst_38 {dimension_numbers = #tpu.dot_dimension_numbers<[1], [0], [0], [1], [0, 0, 1, 1], [], []>} : vector<32x8xbf16>, vector<8x128xbf16>, vector<32x128xf32> -> vector<32x128xf32>
    %89 = arith.addf %79, %88 : vector<32x128xf32>
    %90 = arith.mulf %84, %84 : vector<32x8xf32>
    %cst_39 = arith.constant dense<0.000000e+00> : vector<32xf32>
    %91 = vector.multi_reduction <add>, %90, %cst_39 [1] : vector<32x8xf32> to vector<32xf32>
    %92 = vector.shape_cast %91 : vector<32xf32> to vector<32x1xf32>
    %93 = arith.addf %83, %92 : vector<32x1xf32>
    %94 = vector.extract_strided_slice %1 {offsets = [4, 8], sizes = [32, 8], strides = [1, 1]} : vector<40x16xf32> to vector<32x8xf32>
    %95 = arith.truncf %94 : vector<32x8xf32> to vector<32x8xbf16>
    %c9 = arith.constant 9 : index
    %c0_40 = arith.constant 0 : index
    %c0_41 = arith.constant 0 : index
    %96 = vector.load %arg2[%c9, %c0_40, %c0_41] : memref<17x8x128xbf16, #tpu.memory_space<vmem>>, vector<1x8x128xbf16>
    %97 = vector.shape_cast %96 : vector<1x8x128xbf16> to vector<8x128xbf16>
    %cst_42 = arith.constant dense<0.000000e+00> : vector<32x128xf32>
    %98 = tpu.matmul %95, %97, %cst_42 {dimension_numbers = #tpu.dot_dimension_numbers<[1], [0], [0], [1], [0, 0, 1, 1], [], []>} : vector<32x8xbf16>, vector<8x128xbf16>, vector<32x128xf32> -> vector<32x128xf32>
    %99 = arith.addf %89, %98 : vector<32x128xf32>
    %100 = arith.mulf %94, %94 : vector<32x8xf32>
    %cst_43 = arith.constant dense<0.000000e+00> : vector<32xf32>
    %101 = vector.multi_reduction <add>, %100, %cst_43 [1] : vector<32x8xf32> to vector<32xf32>
    %102 = vector.shape_cast %101 : vector<32xf32> to vector<32x1xf32>
    %103 = arith.addf %93, %102 : vector<32x1xf32>
    %104 = vector.extract_strided_slice %1 {offsets = [5, 0], sizes = [32, 8], strides = [1, 1]} : vector<40x16xf32> to vector<32x8xf32>
    %105 = arith.truncf %104 : vector<32x8xf32> to vector<32x8xbf16>
    %c10 = arith.constant 10 : index
    %c0_44 = arith.constant 0 : index
    %c0_45 = arith.constant 0 : index
    %106 = vector.load %arg2[%c10, %c0_44, %c0_45] : memref<17x8x128xbf16, #tpu.memory_space<vmem>>, vector<1x8x128xbf16>
    %107 = vector.shape_cast %106 : vector<1x8x128xbf16> to vector<8x128xbf16>
    %cst_46 = arith.constant dense<0.000000e+00> : vector<32x128xf32>
    %108 = tpu.matmul %105, %107, %cst_46 {dimension_numbers = #tpu.dot_dimension_numbers<[1], [0], [0], [1], [0, 0, 1, 1], [], []>} : vector<32x8xbf16>, vector<8x128xbf16>, vector<32x128xf32> -> vector<32x128xf32>
    %109 = arith.addf %99, %108 : vector<32x128xf32>
    %110 = arith.mulf %104, %104 : vector<32x8xf32>
    %cst_47 = arith.constant dense<0.000000e+00> : vector<32xf32>
    %111 = vector.multi_reduction <add>, %110, %cst_47 [1] : vector<32x8xf32> to vector<32xf32>
    %112 = vector.shape_cast %111 : vector<32xf32> to vector<32x1xf32>
    %113 = arith.addf %103, %112 : vector<32x1xf32>
    %114 = vector.extract_strided_slice %1 {offsets = [5, 8], sizes = [32, 8], strides = [1, 1]} : vector<40x16xf32> to vector<32x8xf32>
    %115 = arith.truncf %114 : vector<32x8xf32> to vector<32x8xbf16>
    %c11 = arith.constant 11 : index
    %c0_48 = arith.constant 0 : index
    %c0_49 = arith.constant 0 : index
    %116 = vector.load %arg2[%c11, %c0_48, %c0_49] : memref<17x8x128xbf16, #tpu.memory_space<vmem>>, vector<1x8x128xbf16>
    %117 = vector.shape_cast %116 : vector<1x8x128xbf16> to vector<8x128xbf16>
    %cst_50 = arith.constant dense<0.000000e+00> : vector<32x128xf32>
    %118 = tpu.matmul %115, %117, %cst_50 {dimension_numbers = #tpu.dot_dimension_numbers<[1], [0], [0], [1], [0, 0, 1, 1], [], []>} : vector<32x8xbf16>, vector<8x128xbf16>, vector<32x128xf32> -> vector<32x128xf32>
    %119 = arith.addf %109, %118 : vector<32x128xf32>
    %120 = arith.mulf %114, %114 : vector<32x8xf32>
    %cst_51 = arith.constant dense<0.000000e+00> : vector<32xf32>
    %121 = vector.multi_reduction <add>, %120, %cst_51 [1] : vector<32x8xf32> to vector<32xf32>
    %122 = vector.shape_cast %121 : vector<32xf32> to vector<32x1xf32>
    %123 = arith.addf %113, %122 : vector<32x1xf32>
    %124 = vector.extract_strided_slice %1 {offsets = [6, 0], sizes = [32, 8], strides = [1, 1]} : vector<40x16xf32> to vector<32x8xf32>
    %125 = arith.truncf %124 : vector<32x8xf32> to vector<32x8xbf16>
    %c12 = arith.constant 12 : index
    %c0_52 = arith.constant 0 : index
    %c0_53 = arith.constant 0 : index
    %126 = vector.load %arg2[%c12, %c0_52, %c0_53] : memref<17x8x128xbf16, #tpu.memory_space<vmem>>, vector<1x8x128xbf16>
    %127 = vector.shape_cast %126 : vector<1x8x128xbf16> to vector<8x128xbf16>
    %cst_54 = arith.constant dense<0.000000e+00> : vector<32x128xf32>
    %128 = tpu.matmul %125, %127, %cst_54 {dimension_numbers = #tpu.dot_dimension_numbers<[1], [0], [0], [1], [0, 0, 1, 1], [], []>} : vector<32x8xbf16>, vector<8x128xbf16>, vector<32x128xf32> -> vector<32x128xf32>
    %129 = arith.addf %119, %128 : vector<32x128xf32>
    %130 = arith.mulf %124, %124 : vector<32x8xf32>
    %cst_55 = arith.constant dense<0.000000e+00> : vector<32xf32>
    %131 = vector.multi_reduction <add>, %130, %cst_55 [1] : vector<32x8xf32> to vector<32xf32>
    %132 = vector.shape_cast %131 : vector<32xf32> to vector<32x1xf32>
    %133 = arith.addf %123, %132 : vector<32x1xf32>
    %134 = vector.extract_strided_slice %1 {offsets = [6, 8], sizes = [32, 8], strides = [1, 1]} : vector<40x16xf32> to vector<32x8xf32>
    %135 = arith.truncf %134 : vector<32x8xf32> to vector<32x8xbf16>
    %c13 = arith.constant 13 : index
    %c0_56 = arith.constant 0 : index
    %c0_57 = arith.constant 0 : index
    %136 = vector.load %arg2[%c13, %c0_56, %c0_57] : memref<17x8x128xbf16, #tpu.memory_space<vmem>>, vector<1x8x128xbf16>
    %137 = vector.shape_cast %136 : vector<1x8x128xbf16> to vector<8x128xbf16>
    %cst_58 = arith.constant dense<0.000000e+00> : vector<32x128xf32>
    %138 = tpu.matmul %135, %137, %cst_58 {dimension_numbers = #tpu.dot_dimension_numbers<[1], [0], [0], [1], [0, 0, 1, 1], [], []>} : vector<32x8xbf16>, vector<8x128xbf16>, vector<32x128xf32> -> vector<32x128xf32>
    %139 = arith.addf %129, %138 : vector<32x128xf32>
    %140 = arith.mulf %134, %134 : vector<32x8xf32>
    %cst_59 = arith.constant dense<0.000000e+00> : vector<32xf32>
    %141 = vector.multi_reduction <add>, %140, %cst_59 [1] : vector<32x8xf32> to vector<32xf32>
    %142 = vector.shape_cast %141 : vector<32xf32> to vector<32x1xf32>
    %143 = arith.addf %133, %142 : vector<32x1xf32>
    %144 = vector.extract_strided_slice %1 {offsets = [7, 0], sizes = [32, 8], strides = [1, 1]} : vector<40x16xf32> to vector<32x8xf32>
    %145 = arith.truncf %144 : vector<32x8xf32> to vector<32x8xbf16>
    %c14 = arith.constant 14 : index
    %c0_60 = arith.constant 0 : index
    %c0_61 = arith.constant 0 : index
    %146 = vector.load %arg2[%c14, %c0_60, %c0_61] : memref<17x8x128xbf16, #tpu.memory_space<vmem>>, vector<1x8x128xbf16>
    %147 = vector.shape_cast %146 : vector<1x8x128xbf16> to vector<8x128xbf16>
    %cst_62 = arith.constant dense<0.000000e+00> : vector<32x128xf32>
    %148 = tpu.matmul %145, %147, %cst_62 {dimension_numbers = #tpu.dot_dimension_numbers<[1], [0], [0], [1], [0, 0, 1, 1], [], []>} : vector<32x8xbf16>, vector<8x128xbf16>, vector<32x128xf32> -> vector<32x128xf32>
    %149 = arith.addf %139, %148 : vector<32x128xf32>
    %150 = arith.mulf %144, %144 : vector<32x8xf32>
    %cst_63 = arith.constant dense<0.000000e+00> : vector<32xf32>
    %151 = vector.multi_reduction <add>, %150, %cst_63 [1] : vector<32x8xf32> to vector<32xf32>
    %152 = vector.shape_cast %151 : vector<32xf32> to vector<32x1xf32>
    %153 = arith.addf %143, %152 : vector<32x1xf32>
    %154 = vector.extract_strided_slice %1 {offsets = [7, 8], sizes = [32, 8], strides = [1, 1]} : vector<40x16xf32> to vector<32x8xf32>
    %155 = arith.truncf %154 : vector<32x8xf32> to vector<32x8xbf16>
    %c15 = arith.constant 15 : index
    %c0_64 = arith.constant 0 : index
    %c0_65 = arith.constant 0 : index
    %156 = vector.load %arg2[%c15, %c0_64, %c0_65] : memref<17x8x128xbf16, #tpu.memory_space<vmem>>, vector<1x8x128xbf16>
    %157 = vector.shape_cast %156 : vector<1x8x128xbf16> to vector<8x128xbf16>
    %cst_66 = arith.constant dense<0.000000e+00> : vector<32x128xf32>
    %158 = tpu.matmul %155, %157, %cst_66 {dimension_numbers = #tpu.dot_dimension_numbers<[1], [0], [0], [1], [0, 0, 1, 1], [], []>} : vector<32x8xbf16>, vector<8x128xbf16>, vector<32x128xf32> -> vector<32x128xf32>
    %159 = arith.addf %149, %158 : vector<32x128xf32>
    %160 = arith.mulf %154, %154 : vector<32x8xf32>
    %cst_67 = arith.constant dense<0.000000e+00> : vector<32xf32>
    %161 = vector.multi_reduction <add>, %160, %cst_67 [1] : vector<32x8xf32> to vector<32xf32>
    %162 = vector.shape_cast %161 : vector<32xf32> to vector<32x1xf32>
    %163 = arith.addf %153, %162 : vector<32x1xf32>
    %164 = vector.extract_strided_slice %1 {offsets = [8, 0], sizes = [32, 8], strides = [1, 1]} : vector<40x16xf32> to vector<32x8xf32>
    %165 = arith.truncf %164 : vector<32x8xf32> to vector<32x8xbf16>
    %c16 = arith.constant 16 : index
    %c0_68 = arith.constant 0 : index
    %c0_69 = arith.constant 0 : index
    %166 = vector.load %arg2[%c16, %c0_68, %c0_69] : memref<17x8x128xbf16, #tpu.memory_space<vmem>>, vector<1x8x128xbf16>
    %167 = vector.shape_cast %166 : vector<1x8x128xbf16> to vector<8x128xbf16>
    %cst_70 = arith.constant dense<0.000000e+00> : vector<32x128xf32>
    %168 = tpu.matmul %165, %167, %cst_70 {dimension_numbers = #tpu.dot_dimension_numbers<[1], [0], [0], [1], [0, 0, 1, 1], [], []>} : vector<32x8xbf16>, vector<8x128xbf16>, vector<32x128xf32> -> vector<32x128xf32>
    %169 = arith.addf %159, %168 : vector<32x128xf32>
    %170 = arith.mulf %164, %164 : vector<32x8xf32>
    %cst_71 = arith.constant dense<0.000000e+00> : vector<32xf32>
    %171 = vector.multi_reduction <add>, %170, %cst_71 [1] : vector<32x8xf32> to vector<32xf32>
    %172 = vector.shape_cast %171 : vector<32xf32> to vector<32x1xf32>
    %173 = arith.addf %163, %172 : vector<32x1xf32>
    %cst_72 = arith.constant 9.99999997E-7 : f32
    %174 = vector.broadcast %cst_72 : f32 to vector<32x1xf32>
    %175 = arith.addf %173, %174 : vector<32x1xf32>
    %176 = math.rsqrt %175 : vector<32x1xf32>
    %177 = math.absf %169 : vector<32x128xf32>
    %178 = vector.broadcast %176 : vector<32x1xf32> to vector<32x128xf32>
    %179 = arith.mulf %177, %178 : vector<32x128xf32>
    %cst_73 = arith.constant 9.99999997E-7 : f32
    %180 = vector.broadcast %cst_73 : f32 to vector<32x128xf32>
    %181 = arith.addf %179, %180 : vector<32x128xf32>
    %182 = arith.mulf %169, %181 : vector<32x128xf32>
    %cst_74 = arith.constant 8.57492923 : f32
    %183 = vector.broadcast %cst_74 : f32 to vector<32x128xf32>
    %184 = arith.mulf %182, %183 : vector<32x128xf32>
    %c0_75 = arith.constant 0 : index
    %c0_76 = arith.constant 0 : index
    %c0_77 = arith.constant 0 : index
    %185 = vector.load %arg3[%c0_75, %c0_76, %c0_77] : memref<1x32x128xf32, #tpu.memory_space<vmem>>, vector<1x32x128xf32>
    %186 = vector.shape_cast %185 : vector<1x32x128xf32> to vector<32x128xf32>
    %187 = vector.shape_cast %184 : vector<32x128xf32> to vector<1x32x128xf32>
    tpu.vector_store %arg3[%c0_75, %c0_76, %c0_77], %187 {strides = array<i32>} : memref<1x32x128xf32, #tpu.memory_space<vmem>>, vector<1x32x128xf32>,
    return
  }
  func.func @transform_0(%arg0: i32) -> (i32, i32, i32) {
    %c0_i32 = arith.constant 0 : i32
    %c0_i32_0 = arith.constant 0 : i32
    %c0_i32_1 = arith.constant 0 : i32
    return %arg0, %c0_i32, %c0_i32_0 : i32, i32, i32
  }
  func.func @transform_1(%arg0: i32) -> (i32, i32, i32) {
    %c0_i32 = arith.constant 0 : i32
    %c0_i32_0 = arith.constant 0 : i32
    %c0_i32_1 = arith.constant 0 : i32
    %c0_i32_2 = arith.constant 0 : i32
    return %c0_i32, %c0_i32_0, %c0_i32_1 : i32, i32, i32
  }
  func.func @transform_2(%arg0: i32) -> (i32, i32, i32) {
    %c0_i32 = arith.constant 0 : i32
    %c0_i32_0 = arith.constant 0 : i32
    %c0_i32_1 = arith.constant 0 : i32
    return %arg0, %c0_i32, %c0_i32_0 : i32, i32, i32
  }
}

module attributes {stable_mosaic.version = 11 : i64} {
  func.func @_bcos_conv_kernel(%arg0: i32, %arg1: memref<1x24x256xf32, #tpu.memory_space<vmem>>, %arg2: memref<17x128x128xbf16, #tpu.memory_space<vmem>>, %arg3: memref<1x16x128xf32, #tpu.memory_space<vmem>>) attributes {dimension_semantics = [#tpu.dimension_semantics<parallel>], iteration_bounds = array<i64: 2>, scalar_prefetch = 0 : i64, scratch_operands = 0 : i64, tpu.core_type = #tpu.core_type<tc>, window_params = [{transform_indices = @transform_0, window_bounds = array<i64: 1, 24, 256>}, {pipeline_mode = #tpu.pipeline_mode<synchronous>, transform_indices = @transform_1, window_bounds = array<i64: 17, 128, 128>}, {transform_indices = @transform_2, window_bounds = array<i64: 1, 16, 128>}]} {
    %c0 = arith.constant 0 : index
    %c0_0 = arith.constant 0 : index
    %c0_1 = arith.constant 0 : index
    %0 = vector.load %arg1[%c0, %c0_0, %c0_1] : memref<1x24x256xf32, #tpu.memory_space<vmem>>, vector<1x24x256xf32>
    %1 = vector.shape_cast %0 : vector<1x24x256xf32> to vector<24x256xf32>
    %cst = arith.constant 0.000000e+00 : f32
    %2 = vector.broadcast %cst : f32 to vector<16x128xf32>
    %cst_2 = arith.constant 0.000000e+00 : f32
    %3 = vector.broadcast %cst_2 : f32 to vector<16x1xf32>
    %4 = vector.extract_strided_slice %1 {offsets = [0, 0], sizes = [16, 128], strides = [1, 1]} : vector<24x256xf32> to vector<16x128xf32>
    %5 = arith.truncf %4 : vector<16x128xf32> to vector<16x128xbf16>
    %c0_3 = arith.constant 0 : index
    %c0_4 = arith.constant 0 : index
    %c0_5 = arith.constant 0 : index
    %6 = vector.load %arg2[%c0_3, %c0_4, %c0_5] : memref<17x128x128xbf16, #tpu.memory_space<vmem>>, vector<1x128x128xbf16>
    %7 = vector.shape_cast %6 : vector<1x128x128xbf16> to vector<128x128xbf16>
    %cst_6 = arith.constant dense<0.000000e+00> : vector<16x128xf32>
    %8 = tpu.matmul %5, %7, %cst_6 {dimension_numbers = #tpu.dot_dimension_numbers<[1], [0], [0], [1], [0, 0, 1, 1], [], []>} : vector<16x128xbf16>, vector<128x128xbf16>, vector<16x128xf32> -> vector<16x128xf32>
    %9 = arith.addf %2, %8 : vector<16x128xf32>
    %10 = arith.mulf %4, %4 : vector<16x128xf32>
    %cst_7 = arith.constant dense<0.000000e+00> : vector<16xf32>
    %11 = vector.multi_reduction <add>, %10, %cst_7 [1] : vector<16x128xf32> to vector<16xf32>
    %12 = vector.shape_cast %11 : vector<16xf32> to vector<16x1xf32>
    %13 = arith.addf %3, %12 : vector<16x1xf32>
    %14 = vector.extract_strided_slice %1 {offsets = [0, 128], sizes = [16, 128], strides = [1, 1]} : vector<24x256xf32> to vector<16x128xf32>
    %15 = arith.truncf %14 : vector<16x128xf32> to vector<16x128xbf16>
    %c1 = arith.constant 1 : index
    %c0_8 = arith.constant 0 : index
    %c0_9 = arith.constant 0 : index
    %16 = vector.load %arg2[%c1, %c0_8, %c0_9] : memref<17x128x128xbf16, #tpu.memory_space<vmem>>, vector<1x128x128xbf16>
    %17 = vector.shape_cast %16 : vector<1x128x128xbf16> to vector<128x128xbf16>
    %cst_10 = arith.constant dense<0.000000e+00> : vector<16x128xf32>
    %18 = tpu.matmul %15, %17, %cst_10 {dimension_numbers = #tpu.dot_dimension_numbers<[1], [0], [0], [1], [0, 0, 1, 1], [], []>} : vector<16x128xbf16>, vector<128x128xbf16>, vector<16x128xf32> -> vector<16x128xf32>
    %19 = arith.addf %9, %18 : vector<16x128xf32>
    %20 = arith.mulf %14, %14 : vector<16x128xf32>
    %cst_11 = arith.constant dense<0.000000e+00> : vector<16xf32>
    %21 = vector.multi_reduction <add>, %20, %cst_11 [1] : vector<16x128xf32> to vector<16xf32>
    %22 = vector.shape_cast %21 : vector<16xf32> to vector<16x1xf32>
    %23 = arith.addf %13, %22 : vector<16x1xf32>
    %24 = vector.extract_strided_slice %1 {offsets = [1, 0], sizes = [16, 128], strides = [1, 1]} : vector<24x256xf32> to vector<16x128xf32>
    %25 = arith.truncf %24 : vector<16x128xf32> to vector<16x128xbf16>
    %c2 = arith.constant 2 : index
    %c0_12 = arith.constant 0 : index
    %c0_13 = arith.constant 0 : index
    %26 = vector.load %arg2[%c2, %c0_12, %c0_13] : memref<17x128x128xbf16, #tpu.memory_space<vmem>>, vector<1x128x128xbf16>
    %27 = vector.shape_cast %26 : vector<1x128x128xbf16> to vector<128x128xbf16>
    %cst_14 = arith.constant dense<0.000000e+00> : vector<16x128xf32>
    %28 = tpu.matmul %25, %27, %cst_14 {dimension_numbers = #tpu.dot_dimension_numbers<[1], [0], [0], [1], [0, 0, 1, 1], [], []>} : vector<16x128xbf16>, vector<128x128xbf16>, vector<16x128xf32> -> vector<16x128xf32>
    %29 = arith.addf %19, %28 : vector<16x128xf32>
    %30 = arith.mulf %24, %24 : vector<16x128xf32>
    %cst_15 = arith.constant dense<0.000000e+00> : vector<16xf32>
    %31 = vector.multi_reduction <add>, %30, %cst_15 [1] : vector<16x128xf32> to vector<16xf32>
    %32 = vector.shape_cast %31 : vector<16xf32> to vector<16x1xf32>
    %33 = arith.addf %23, %32 : vector<16x1xf32>
    %34 = vector.extract_strided_slice %1 {offsets = [1, 128], sizes = [16, 128], strides = [1, 1]} : vector<24x256xf32> to vector<16x128xf32>
    %35 = arith.truncf %34 : vector<16x128xf32> to vector<16x128xbf16>
    %c3 = arith.constant 3 : index
    %c0_16 = arith.constant 0 : index
    %c0_17 = arith.constant 0 : index
    %36 = vector.load %arg2[%c3, %c0_16, %c0_17] : memref<17x128x128xbf16, #tpu.memory_space<vmem>>, vector<1x128x128xbf16>
    %37 = vector.shape_cast %36 : vector<1x128x128xbf16> to vector<128x128xbf16>
    %cst_18 = arith.constant dense<0.000000e+00> : vector<16x128xf32>
    %38 = tpu.matmul %35, %37, %cst_18 {dimension_numbers = #tpu.dot_dimension_numbers<[1], [0], [0], [1], [0, 0, 1, 1], [], []>} : vector<16x128xbf16>, vector<128x128xbf16>, vector<16x128xf32> -> vector<16x128xf32>
    %39 = arith.addf %29, %38 : vector<16x128xf32>
    %40 = arith.mulf %34, %34 : vector<16x128xf32>
    %cst_19 = arith.constant dense<0.000000e+00> : vector<16xf32>
    %41 = vector.multi_reduction <add>, %40, %cst_19 [1] : vector<16x128xf32> to vector<16xf32>
    %42 = vector.shape_cast %41 : vector<16xf32> to vector<16x1xf32>
    %43 = arith.addf %33, %42 : vector<16x1xf32>
    %44 = vector.extract_strided_slice %1 {offsets = [2, 0], sizes = [16, 128], strides = [1, 1]} : vector<24x256xf32> to vector<16x128xf32>
    %45 = arith.truncf %44 : vector<16x128xf32> to vector<16x128xbf16>
    %c4 = arith.constant 4 : index
    %c0_20 = arith.constant 0 : index
    %c0_21 = arith.constant 0 : index
    %46 = vector.load %arg2[%c4, %c0_20, %c0_21] : memref<17x128x128xbf16, #tpu.memory_space<vmem>>, vector<1x128x128xbf16>
    %47 = vector.shape_cast %46 : vector<1x128x128xbf16> to vector<128x128xbf16>
    %cst_22 = arith.constant dense<0.000000e+00> : vector<16x128xf32>
    %48 = tpu.matmul %45, %47, %cst_22 {dimension_numbers = #tpu.dot_dimension_numbers<[1], [0], [0], [1], [0, 0, 1, 1], [], []>} : vector<16x128xbf16>, vector<128x128xbf16>, vector<16x128xf32> -> vector<16x128xf32>
    %49 = arith.addf %39, %48 : vector<16x128xf32>
    %50 = arith.mulf %44, %44 : vector<16x128xf32>
    %cst_23 = arith.constant dense<0.000000e+00> : vector<16xf32>
    %51 = vector.multi_reduction <add>, %50, %cst_23 [1] : vector<16x128xf32> to vector<16xf32>
    %52 = vector.shape_cast %51 : vector<16xf32> to vector<16x1xf32>
    %53 = arith.addf %43, %52 : vector<16x1xf32>
    %54 = vector.extract_strided_slice %1 {offsets = [2, 128], sizes = [16, 128], strides = [1, 1]} : vector<24x256xf32> to vector<16x128xf32>
    %55 = arith.truncf %54 : vector<16x128xf32> to vector<16x128xbf16>
    %c5 = arith.constant 5 : index
    %c0_24 = arith.constant 0 : index
    %c0_25 = arith.constant 0 : index
    %56 = vector.load %arg2[%c5, %c0_24, %c0_25] : memref<17x128x128xbf16, #tpu.memory_space<vmem>>, vector<1x128x128xbf16>
    %57 = vector.shape_cast %56 : vector<1x128x128xbf16> to vector<128x128xbf16>
    %cst_26 = arith.constant dense<0.000000e+00> : vector<16x128xf32>
    %58 = tpu.matmul %55, %57, %cst_26 {dimension_numbers = #tpu.dot_dimension_numbers<[1], [0], [0], [1], [0, 0, 1, 1], [], []>} : vector<16x128xbf16>, vector<128x128xbf16>, vector<16x128xf32> -> vector<16x128xf32>
    %59 = arith.addf %49, %58 : vector<16x128xf32>
    %60 = arith.mulf %54, %54 : vector<16x128xf32>
    %cst_27 = arith.constant dense<0.000000e+00> : vector<16xf32>
    %61 = vector.multi_reduction <add>, %60, %cst_27 [1] : vector<16x128xf32> to vector<16xf32>
    %62 = vector.shape_cast %61 : vector<16xf32> to vector<16x1xf32>
    %63 = arith.addf %53, %62 : vector<16x1xf32>
    %64 = vector.extract_strided_slice %1 {offsets = [3, 0], sizes = [16, 128], strides = [1, 1]} : vector<24x256xf32> to vector<16x128xf32>
    %65 = arith.truncf %64 : vector<16x128xf32> to vector<16x128xbf16>
    %c6 = arith.constant 6 : index
    %c0_28 = arith.constant 0 : index
    %c0_29 = arith.constant 0 : index
    %66 = vector.load %arg2[%c6, %c0_28, %c0_29] : memref<17x128x128xbf16, #tpu.memory_space<vmem>>, vector<1x128x128xbf16>
    %67 = vector.shape_cast %66 : vector<1x128x128xbf16> to vector<128x128xbf16>
    %cst_30 = arith.constant dense<0.000000e+00> : vector<16x128xf32>
    %68 = tpu.matmul %65, %67, %cst_30 {dimension_numbers = #tpu.dot_dimension_numbers<[1], [0], [0], [1], [0, 0, 1, 1], [], []>} : vector<16x128xbf16>, vector<128x128xbf16>, vector<16x128xf32> -> vector<16x128xf32>
    %69 = arith.addf %59, %68 : vector<16x128xf32>
    %70 = arith.mulf %64, %64 : vector<16x128xf32>
    %cst_31 = arith.constant dense<0.000000e+00> : vector<16xf32>
    %71 = vector.multi_reduction <add>, %70, %cst_31 [1] : vector<16x128xf32> to vector<16xf32>
    %72 = vector.shape_cast %71 : vector<16xf32> to vector<16x1xf32>
    %73 = arith.addf %63, %72 : vector<16x1xf32>
    %74 = vector.extract_strided_slice %1 {offsets = [3, 128], sizes = [16, 128], strides = [1, 1]} : vector<24x256xf32> to vector<16x128xf32>
    %75 = arith.truncf %74 : vector<16x128xf32> to vector<16x128xbf16>
    %c7 = arith.constant 7 : index
    %c0_32 = arith.constant 0 : index
    %c0_33 = arith.constant 0 : index
    %76 = vector.load %arg2[%c7, %c0_32, %c0_33] : memref<17x128x128xbf16, #tpu.memory_space<vmem>>, vector<1x128x128xbf16>
    %77 = vector.shape_cast %76 : vector<1x128x128xbf16> to vector<128x128xbf16>
    %cst_34 = arith.constant dense<0.000000e+00> : vector<16x128xf32>
    %78 = tpu.matmul %75, %77, %cst_34 {dimension_numbers = #tpu.dot_dimension_numbers<[1], [0], [0], [1], [0, 0, 1, 1], [], []>} : vector<16x128xbf16>, vector<128x128xbf16>, vector<16x128xf32> -> vector<16x128xf32>
    %79 = arith.addf %69, %78 : vector<16x128xf32>
    %80 = arith.mulf %74, %74 : vector<16x128xf32>
    %cst_35 = arith.constant dense<0.000000e+00> : vector<16xf32>
    %81 = vector.multi_reduction <add>, %80, %cst_35 [1] : vector<16x128xf32> to vector<16xf32>
    %82 = vector.shape_cast %81 : vector<16xf32> to vector<16x1xf32>
    %83 = arith.addf %73, %82 : vector<16x1xf32>
    %84 = vector.extract_strided_slice %1 {offsets = [4, 0], sizes = [16, 128], strides = [1, 1]} : vector<24x256xf32> to vector<16x128xf32>
    %85 = arith.truncf %84 : vector<16x128xf32> to vector<16x128xbf16>
    %c8 = arith.constant 8 : index
    %c0_36 = arith.constant 0 : index
    %c0_37 = arith.constant 0 : index
    %86 = vector.load %arg2[%c8, %c0_36, %c0_37] : memref<17x128x128xbf16, #tpu.memory_space<vmem>>, vector<1x128x128xbf16>
    %87 = vector.shape_cast %86 : vector<1x128x128xbf16> to vector<128x128xbf16>
    %cst_38 = arith.constant dense<0.000000e+00> : vector<16x128xf32>
    %88 = tpu.matmul %85, %87, %cst_38 {dimension_numbers = #tpu.dot_dimension_numbers<[1], [0], [0], [1], [0, 0, 1, 1], [], []>} : vector<16x128xbf16>, vector<128x128xbf16>, vector<16x128xf32> -> vector<16x128xf32>
    %89 = arith.addf %79, %88 : vector<16x128xf32>
    %90 = arith.mulf %84, %84 : vector<16x128xf32>
    %cst_39 = arith.constant dense<0.000000e+00> : vector<16xf32>
    %91 = vector.multi_reduction <add>, %90, %cst_39 [1] : vector<16x128xf32> to vector<16xf32>
    %92 = vector.shape_cast %91 : vector<16xf32> to vector<16x1xf32>
    %93 = arith.addf %83, %92 : vector<16x1xf32>
    %94 = vector.extract_strided_slice %1 {offsets = [4, 128], sizes = [16, 128], strides = [1, 1]} : vector<24x256xf32> to vector<16x128xf32>
    %95 = arith.truncf %94 : vector<16x128xf32> to vector<16x128xbf16>
    %c9 = arith.constant 9 : index
    %c0_40 = arith.constant 0 : index
    %c0_41 = arith.constant 0 : index
    %96 = vector.load %arg2[%c9, %c0_40, %c0_41] : memref<17x128x128xbf16, #tpu.memory_space<vmem>>, vector<1x128x128xbf16>
    %97 = vector.shape_cast %96 : vector<1x128x128xbf16> to vector<128x128xbf16>
    %cst_42 = arith.constant dense<0.000000e+00> : vector<16x128xf32>
    %98 = tpu.matmul %95, %97, %cst_42 {dimension_numbers = #tpu.dot_dimension_numbers<[1], [0], [0], [1], [0, 0, 1, 1], [], []>} : vector<16x128xbf16>, vector<128x128xbf16>, vector<16x128xf32> -> vector<16x128xf32>
    %99 = arith.addf %89, %98 : vector<16x128xf32>
    %100 = arith.mulf %94, %94 : vector<16x128xf32>
    %cst_43 = arith.constant dense<0.000000e+00> : vector<16xf32>
    %101 = vector.multi_reduction <add>, %100, %cst_43 [1] : vector<16x128xf32> to vector<16xf32>
    %102 = vector.shape_cast %101 : vector<16xf32> to vector<16x1xf32>
    %103 = arith.addf %93, %102 : vector<16x1xf32>
    %104 = vector.extract_strided_slice %1 {offsets = [5, 0], sizes = [16, 128], strides = [1, 1]} : vector<24x256xf32> to vector<16x128xf32>
    %105 = arith.truncf %104 : vector<16x128xf32> to vector<16x128xbf16>
    %c10 = arith.constant 10 : index
    %c0_44 = arith.constant 0 : index
    %c0_45 = arith.constant 0 : index
    %106 = vector.load %arg2[%c10, %c0_44, %c0_45] : memref<17x128x128xbf16, #tpu.memory_space<vmem>>, vector<1x128x128xbf16>
    %107 = vector.shape_cast %106 : vector<1x128x128xbf16> to vector<128x128xbf16>
    %cst_46 = arith.constant dense<0.000000e+00> : vector<16x128xf32>
    %108 = tpu.matmul %105, %107, %cst_46 {dimension_numbers = #tpu.dot_dimension_numbers<[1], [0], [0], [1], [0, 0, 1, 1], [], []>} : vector<16x128xbf16>, vector<128x128xbf16>, vector<16x128xf32> -> vector<16x128xf32>
    %109 = arith.addf %99, %108 : vector<16x128xf32>
    %110 = arith.mulf %104, %104 : vector<16x128xf32>
    %cst_47 = arith.constant dense<0.000000e+00> : vector<16xf32>
    %111 = vector.multi_reduction <add>, %110, %cst_47 [1] : vector<16x128xf32> to vector<16xf32>
    %112 = vector.shape_cast %111 : vector<16xf32> to vector<16x1xf32>
    %113 = arith.addf %103, %112 : vector<16x1xf32>
    %114 = vector.extract_strided_slice %1 {offsets = [5, 128], sizes = [16, 128], strides = [1, 1]} : vector<24x256xf32> to vector<16x128xf32>
    %115 = arith.truncf %114 : vector<16x128xf32> to vector<16x128xbf16>
    %c11 = arith.constant 11 : index
    %c0_48 = arith.constant 0 : index
    %c0_49 = arith.constant 0 : index
    %116 = vector.load %arg2[%c11, %c0_48, %c0_49] : memref<17x128x128xbf16, #tpu.memory_space<vmem>>, vector<1x128x128xbf16>
    %117 = vector.shape_cast %116 : vector<1x128x128xbf16> to vector<128x128xbf16>
    %cst_50 = arith.constant dense<0.000000e+00> : vector<16x128xf32>
    %118 = tpu.matmul %115, %117, %cst_50 {dimension_numbers = #tpu.dot_dimension_numbers<[1], [0], [0], [1], [0, 0, 1, 1], [], []>} : vector<16x128xbf16>, vector<128x128xbf16>, vector<16x128xf32> -> vector<16x128xf32>
    %119 = arith.addf %109, %118 : vector<16x128xf32>
    %120 = arith.mulf %114, %114 : vector<16x128xf32>
    %cst_51 = arith.constant dense<0.000000e+00> : vector<16xf32>
    %121 = vector.multi_reduction <add>, %120, %cst_51 [1] : vector<16x128xf32> to vector<16xf32>
    %122 = vector.shape_cast %121 : vector<16xf32> to vector<16x1xf32>
    %123 = arith.addf %113, %122 : vector<16x1xf32>
    %124 = vector.extract_strided_slice %1 {offsets = [6, 0], sizes = [16, 128], strides = [1, 1]} : vector<24x256xf32> to vector<16x128xf32>
    %125 = arith.truncf %124 : vector<16x128xf32> to vector<16x128xbf16>
    %c12 = arith.constant 12 : index
    %c0_52 = arith.constant 0 : index
    %c0_53 = arith.constant 0 : index
    %126 = vector.load %arg2[%c12, %c0_52, %c0_53] : memref<17x128x128xbf16, #tpu.memory_space<vmem>>, vector<1x128x128xbf16>
    %127 = vector.shape_cast %126 : vector<1x128x128xbf16> to vector<128x128xbf16>
    %cst_54 = arith.constant dense<0.000000e+00> : vector<16x128xf32>
    %128 = tpu.matmul %125, %127, %cst_54 {dimension_numbers = #tpu.dot_dimension_numbers<[1], [0], [0], [1], [0, 0, 1, 1], [], []>} : vector<16x128xbf16>, vector<128x128xbf16>, vector<16x128xf32> -> vector<16x128xf32>
    %129 = arith.addf %119, %128 : vector<16x128xf32>
    %130 = arith.mulf %124, %124 : vector<16x128xf32>
    %cst_55 = arith.constant dense<0.000000e+00> : vector<16xf32>
    %131 = vector.multi_reduction <add>, %130, %cst_55 [1] : vector<16x128xf32> to vector<16xf32>
    %132 = vector.shape_cast %131 : vector<16xf32> to vector<16x1xf32>
    %133 = arith.addf %123, %132 : vector<16x1xf32>
    %134 = vector.extract_strided_slice %1 {offsets = [6, 128], sizes = [16, 128], strides = [1, 1]} : vector<24x256xf32> to vector<16x128xf32>
    %135 = arith.truncf %134 : vector<16x128xf32> to vector<16x128xbf16>
    %c13 = arith.constant 13 : index
    %c0_56 = arith.constant 0 : index
    %c0_57 = arith.constant 0 : index
    %136 = vector.load %arg2[%c13, %c0_56, %c0_57] : memref<17x128x128xbf16, #tpu.memory_space<vmem>>, vector<1x128x128xbf16>
    %137 = vector.shape_cast %136 : vector<1x128x128xbf16> to vector<128x128xbf16>
    %cst_58 = arith.constant dense<0.000000e+00> : vector<16x128xf32>
    %138 = tpu.matmul %135, %137, %cst_58 {dimension_numbers = #tpu.dot_dimension_numbers<[1], [0], [0], [1], [0, 0, 1, 1], [], []>} : vector<16x128xbf16>, vector<128x128xbf16>, vector<16x128xf32> -> vector<16x128xf32>
    %139 = arith.addf %129, %138 : vector<16x128xf32>
    %140 = arith.mulf %134, %134 : vector<16x128xf32>
    %cst_59 = arith.constant dense<0.000000e+00> : vector<16xf32>
    %141 = vector.multi_reduction <add>, %140, %cst_59 [1] : vector<16x128xf32> to vector<16xf32>
    %142 = vector.shape_cast %141 : vector<16xf32> to vector<16x1xf32>
    %143 = arith.addf %133, %142 : vector<16x1xf32>
    %144 = vector.extract_strided_slice %1 {offsets = [7, 0], sizes = [16, 128], strides = [1, 1]} : vector<24x256xf32> to vector<16x128xf32>
    %145 = arith.truncf %144 : vector<16x128xf32> to vector<16x128xbf16>
    %c14 = arith.constant 14 : index
    %c0_60 = arith.constant 0 : index
    %c0_61 = arith.constant 0 : index
    %146 = vector.load %arg2[%c14, %c0_60, %c0_61] : memref<17x128x128xbf16, #tpu.memory_space<vmem>>, vector<1x128x128xbf16>
    %147 = vector.shape_cast %146 : vector<1x128x128xbf16> to vector<128x128xbf16>
    %cst_62 = arith.constant dense<0.000000e+00> : vector<16x128xf32>
    %148 = tpu.matmul %145, %147, %cst_62 {dimension_numbers = #tpu.dot_dimension_numbers<[1], [0], [0], [1], [0, 0, 1, 1], [], []>} : vector<16x128xbf16>, vector<128x128xbf16>, vector<16x128xf32> -> vector<16x128xf32>
    %149 = arith.addf %139, %148 : vector<16x128xf32>
    %150 = arith.mulf %144, %144 : vector<16x128xf32>
    %cst_63 = arith.constant dense<0.000000e+00> : vector<16xf32>
    %151 = vector.multi_reduction <add>, %150, %cst_63 [1] : vector<16x128xf32> to vector<16xf32>
    %152 = vector.shape_cast %151 : vector<16xf32> to vector<16x1xf32>
    %153 = arith.addf %143, %152 : vector<16x1xf32>
    %154 = vector.extract_strided_slice %1 {offsets = [7, 128], sizes = [16, 128], strides = [1, 1]} : vector<24x256xf32> to vector<16x128xf32>
    %155 = arith.truncf %154 : vector<16x128xf32> to vector<16x128xbf16>
    %c15 = arith.constant 15 : index
    %c0_64 = arith.constant 0 : index
    %c0_65 = arith.constant 0 : index
    %156 = vector.load %arg2[%c15, %c0_64, %c0_65] : memref<17x128x128xbf16, #tpu.memory_space<vmem>>, vector<1x128x128xbf16>
    %157 = vector.shape_cast %156 : vector<1x128x128xbf16> to vector<128x128xbf16>
    %cst_66 = arith.constant dense<0.000000e+00> : vector<16x128xf32>
    %158 = tpu.matmul %155, %157, %cst_66 {dimension_numbers = #tpu.dot_dimension_numbers<[1], [0], [0], [1], [0, 0, 1, 1], [], []>} : vector<16x128xbf16>, vector<128x128xbf16>, vector<16x128xf32> -> vector<16x128xf32>
    %159 = arith.addf %149, %158 : vector<16x128xf32>
    %160 = arith.mulf %154, %154 : vector<16x128xf32>
    %cst_67 = arith.constant dense<0.000000e+00> : vector<16xf32>
    %161 = vector.multi_reduction <add>, %160, %cst_67 [1] : vector<16x128xf32> to vector<16xf32>
    %162 = vector.shape_cast %161 : vector<16xf32> to vector<16x1xf32>
    %163 = arith.addf %153, %162 : vector<16x1xf32>
    %164 = vector.extract_strided_slice %1 {offsets = [8, 0], sizes = [16, 128], strides = [1, 1]} : vector<24x256xf32> to vector<16x128xf32>
    %165 = arith.truncf %164 : vector<16x128xf32> to vector<16x128xbf16>
    %c16 = arith.constant 16 : index
    %c0_68 = arith.constant 0 : index
    %c0_69 = arith.constant 0 : index
    %166 = vector.load %arg2[%c16, %c0_68, %c0_69] : memref<17x128x128xbf16, #tpu.memory_space<vmem>>, vector<1x128x128xbf16>
    %167 = vector.shape_cast %166 : vector<1x128x128xbf16> to vector<128x128xbf16>
    %cst_70 = arith.constant dense<0.000000e+00> : vector<16x128xf32>
    %168 = tpu.matmul %165, %167, %cst_70 {dimension_numbers = #tpu.dot_dimension_numbers<[1], [0], [0], [1], [0, 0, 1, 1], [], []>} : vector<16x128xbf16>, vector<128x128xbf16>, vector<16x128xf32> -> vector<16x128xf32>
    %169 = arith.addf %159, %168 : vector<16x128xf32>
    %170 = arith.mulf %164, %164 : vector<16x128xf32>
    %cst_71 = arith.constant dense<0.000000e+00> : vector<16xf32>
    %171 = vector.multi_reduction <add>, %170, %cst_71 [1] : vector<16x128xf32> to vector<16xf32>
    %172 = vector.shape_cast %171 : vector<16xf32> to vector<16x1xf32>
    %173 = arith.addf %163, %172 : vector<16x1xf32>
    %cst_72 = arith.constant 9.99999997E-7 : f32
    %174 = vector.broadcast %cst_72 : f32 to vector<16x1xf32>
    %175 = arith.addf %173, %174 : vector<16x1xf32>
    %176 = math.rsqrt %175 : vector<16x1xf32>
    %177 = math.absf %169 : vector<16x128xf32>
    %178 = vector.broadcast %176 : vector<16x1xf32> to vector<16x128xf32>
    %179 = arith.mulf %177, %178 : vector<16x128xf32>
    %cst_73 = arith.constant 9.99999997E-7 : f32
    %180 = vector.broadcast %cst_73 : f32 to vector<16x128xf32>
    %181 = arith.addf %179, %180 : vector<16x128xf32>
    %182 = arith.mulf %169, %181 : vector<16x128xf32>
    %cst_74 = arith.constant 6.06339073 : f32
    %183 = vector.broadcast %cst_74 : f32 to vector<16x128xf32>
    %184 = arith.mulf %182, %183 : vector<16x128xf32>
    %c0_75 = arith.constant 0 : index
    %c0_76 = arith.constant 0 : index
    %c0_77 = arith.constant 0 : index
    %185 = vector.load %arg3[%c0_75, %c0_76, %c0_77] : memref<1x16x128xf32, #tpu.memory_space<vmem>>, vector<1x16x128xf32>
    %186 = vector.shape_cast %185 : vector<1x16x128xf32> to vector<16x128xf32>
    %187 = vector.shape_cast %184 : vector<16x128xf32> to vector<1x16x128xf32>
    tpu.vector_store %arg3[%c0_75, %c0_76, %c0_77], %187 {strides = array<i32>} : memref<1x16x128xf32, #tpu.memory_space<vmem>>, vector<1x16x128xf32>,
    return
  }
  func.func @transform_0(%arg0: i32) -> (i32, i32, i32) {
    %c0_i32 = arith.constant 0 : i32
    %c0_i32_0 = arith.constant 0 : i32
    %c0_i32_1 = arith.constant 0 : i32
    return %arg0, %c0_i32, %c0_i32_0 : i32, i32, i32
  }
  func.func @transform_1(%arg0: i32) -> (i32, i32, i32) {
    %c0_i32 = arith.constant 0 : i32
    %c0_i32_0 = arith.constant 0 : i32
    %c0_i32_1 = arith.constant 0 : i32
    %c0_i32_2 = arith.constant 0 : i32
    return %c0_i32, %c0_i32_0, %c0_i32_1 : i32, i32, i32
  }
  func.func @transform_2(%arg0: i32) -> (i32, i32, i32) {
    %c0_i32 = arith.constant 0 : i32
    %c0_i32_0 = arith.constant 0 : i32
    %c0_i32_1 = arith.constant 0 : i32
    return %arg0, %c0_i32, %c0_i32_0 : i32, i32, i32
  }
}

module attributes {stable_mosaic.version = 11 : i64} {
  func.func @_bcos_conv_kernel(%arg0: i32, %arg1: memref<1x16x256xf32, #tpu.memory_space<vmem>>, %arg2: memref<17x128x128xbf16, #tpu.memory_space<vmem>>, %arg3: memref<1x8x128xf32, #tpu.memory_space<vmem>>) attributes {dimension_semantics = [#tpu.dimension_semantics<parallel>], iteration_bounds = array<i64: 2>, scalar_prefetch = 0 : i64, scratch_operands = 0 : i64, tpu.core_type = #tpu.core_type<tc>, window_params = [{transform_indices = @transform_0, window_bounds = array<i64: 1, 16, 256>}, {pipeline_mode = #tpu.pipeline_mode<synchronous>, transform_indices = @transform_1, window_bounds = array<i64: 17, 128, 128>}, {transform_indices = @transform_2, window_bounds = array<i64: 1, 8, 128>}]} {
    %c0 = arith.constant 0 : index
    %c0_0 = arith.constant 0 : index
    %c0_1 = arith.constant 0 : index
    %0 = vector.load %arg1[%c0, %c0_0, %c0_1] : memref<1x16x256xf32, #tpu.memory_space<vmem>>, vector<1x16x256xf32>
    %1 = vector.shape_cast %0 : vector<1x16x256xf32> to vector<16x256xf32>
    %cst = arith.constant 0.000000e+00 : f32
    %2 = vector.broadcast %cst : f32 to vector<8x128xf32>
    %cst_2 = arith.constant 0.000000e+00 : f32
    %3 = vector.broadcast %cst_2 : f32 to vector<8x1xf32>
    %4 = vector.extract_strided_slice %1 {offsets = [0, 0], sizes = [8, 128], strides = [1, 1]} : vector<16x256xf32> to vector<8x128xf32>
    %5 = arith.truncf %4 : vector<8x128xf32> to vector<8x128xbf16>
    %c0_3 = arith.constant 0 : index
    %c0_4 = arith.constant 0 : index
    %c0_5 = arith.constant 0 : index
    %6 = vector.load %arg2[%c0_3, %c0_4, %c0_5] : memref<17x128x128xbf16, #tpu.memory_space<vmem>>, vector<1x128x128xbf16>
    %7 = vector.shape_cast %6 : vector<1x128x128xbf16> to vector<128x128xbf16>
    %cst_6 = arith.constant dense<0.000000e+00> : vector<8x128xf32>
    %8 = tpu.matmul %5, %7, %cst_6 {dimension_numbers = #tpu.dot_dimension_numbers<[1], [0], [0], [1], [0, 0, 1, 1], [], []>} : vector<8x128xbf16>, vector<128x128xbf16>, vector<8x128xf32> -> vector<8x128xf32>
    %9 = arith.addf %2, %8 : vector<8x128xf32>
    %10 = arith.mulf %4, %4 : vector<8x128xf32>
    %cst_7 = arith.constant dense<0.000000e+00> : vector<8xf32>
    %11 = vector.multi_reduction <add>, %10, %cst_7 [1] : vector<8x128xf32> to vector<8xf32>
    %12 = vector.shape_cast %11 : vector<8xf32> to vector<8x1xf32>
    %13 = arith.addf %3, %12 : vector<8x1xf32>
    %14 = vector.extract_strided_slice %1 {offsets = [0, 128], sizes = [8, 128], strides = [1, 1]} : vector<16x256xf32> to vector<8x128xf32>
    %15 = arith.truncf %14 : vector<8x128xf32> to vector<8x128xbf16>
    %c1 = arith.constant 1 : index
    %c0_8 = arith.constant 0 : index
    %c0_9 = arith.constant 0 : index
    %16 = vector.load %arg2[%c1, %c0_8, %c0_9] : memref<17x128x128xbf16, #tpu.memory_space<vmem>>, vector<1x128x128xbf16>
    %17 = vector.shape_cast %16 : vector<1x128x128xbf16> to vector<128x128xbf16>
    %cst_10 = arith.constant dense<0.000000e+00> : vector<8x128xf32>
    %18 = tpu.matmul %15, %17, %cst_10 {dimension_numbers = #tpu.dot_dimension_numbers<[1], [0], [0], [1], [0, 0, 1, 1], [], []>} : vector<8x128xbf16>, vector<128x128xbf16>, vector<8x128xf32> -> vector<8x128xf32>
    %19 = arith.addf %9, %18 : vector<8x128xf32>
    %20 = arith.mulf %14, %14 : vector<8x128xf32>
    %cst_11 = arith.constant dense<0.000000e+00> : vector<8xf32>
    %21 = vector.multi_reduction <add>, %20, %cst_11 [1] : vector<8x128xf32> to vector<8xf32>
    %22 = vector.shape_cast %21 : vector<8xf32> to vector<8x1xf32>
    %23 = arith.addf %13, %22 : vector<8x1xf32>
    %24 = vector.extract_strided_slice %1 {offsets = [1, 0], sizes = [8, 128], strides = [1, 1]} : vector<16x256xf32> to vector<8x128xf32>
    %25 = arith.truncf %24 : vector<8x128xf32> to vector<8x128xbf16>
    %c2 = arith.constant 2 : index
    %c0_12 = arith.constant 0 : index
    %c0_13 = arith.constant 0 : index
    %26 = vector.load %arg2[%c2, %c0_12, %c0_13] : memref<17x128x128xbf16, #tpu.memory_space<vmem>>, vector<1x128x128xbf16>
    %27 = vector.shape_cast %26 : vector<1x128x128xbf16> to vector<128x128xbf16>
    %cst_14 = arith.constant dense<0.000000e+00> : vector<8x128xf32>
    %28 = tpu.matmul %25, %27, %cst_14 {dimension_numbers = #tpu.dot_dimension_numbers<[1], [0], [0], [1], [0, 0, 1, 1], [], []>} : vector<8x128xbf16>, vector<128x128xbf16>, vector<8x128xf32> -> vector<8x128xf32>
    %29 = arith.addf %19, %28 : vector<8x128xf32>
    %30 = arith.mulf %24, %24 : vector<8x128xf32>
    %cst_15 = arith.constant dense<0.000000e+00> : vector<8xf32>
    %31 = vector.multi_reduction <add>, %30, %cst_15 [1] : vector<8x128xf32> to vector<8xf32>
    %32 = vector.shape_cast %31 : vector<8xf32> to vector<8x1xf32>
    %33 = arith.addf %23, %32 : vector<8x1xf32>
    %34 = vector.extract_strided_slice %1 {offsets = [1, 128], sizes = [8, 128], strides = [1, 1]} : vector<16x256xf32> to vector<8x128xf32>
    %35 = arith.truncf %34 : vector<8x128xf32> to vector<8x128xbf16>
    %c3 = arith.constant 3 : index
    %c0_16 = arith.constant 0 : index
    %c0_17 = arith.constant 0 : index
    %36 = vector.load %arg2[%c3, %c0_16, %c0_17] : memref<17x128x128xbf16, #tpu.memory_space<vmem>>, vector<1x128x128xbf16>
    %37 = vector.shape_cast %36 : vector<1x128x128xbf16> to vector<128x128xbf16>
    %cst_18 = arith.constant dense<0.000000e+00> : vector<8x128xf32>
    %38 = tpu.matmul %35, %37, %cst_18 {dimension_numbers = #tpu.dot_dimension_numbers<[1], [0], [0], [1], [0, 0, 1, 1], [], []>} : vector<8x128xbf16>, vector<128x128xbf16>, vector<8x128xf32> -> vector<8x128xf32>
    %39 = arith.addf %29, %38 : vector<8x128xf32>
    %40 = arith.mulf %34, %34 : vector<8x128xf32>
    %cst_19 = arith.constant dense<0.000000e+00> : vector<8xf32>
    %41 = vector.multi_reduction <add>, %40, %cst_19 [1] : vector<8x128xf32> to vector<8xf32>
    %42 = vector.shape_cast %41 : vector<8xf32> to vector<8x1xf32>
    %43 = arith.addf %33, %42 : vector<8x1xf32>
    %44 = vector.extract_strided_slice %1 {offsets = [2, 0], sizes = [8, 128], strides = [1, 1]} : vector<16x256xf32> to vector<8x128xf32>
    %45 = arith.truncf %44 : vector<8x128xf32> to vector<8x128xbf16>
    %c4 = arith.constant 4 : index
    %c0_20 = arith.constant 0 : index
    %c0_21 = arith.constant 0 : index
    %46 = vector.load %arg2[%c4, %c0_20, %c0_21] : memref<17x128x128xbf16, #tpu.memory_space<vmem>>, vector<1x128x128xbf16>
    %47 = vector.shape_cast %46 : vector<1x128x128xbf16> to vector<128x128xbf16>
    %cst_22 = arith.constant dense<0.000000e+00> : vector<8x128xf32>
    %48 = tpu.matmul %45, %47, %cst_22 {dimension_numbers = #tpu.dot_dimension_numbers<[1], [0], [0], [1], [0, 0, 1, 1], [], []>} : vector<8x128xbf16>, vector<128x128xbf16>, vector<8x128xf32> -> vector<8x128xf32>
    %49 = arith.addf %39, %48 : vector<8x128xf32>
    %50 = arith.mulf %44, %44 : vector<8x128xf32>
    %cst_23 = arith.constant dense<0.000000e+00> : vector<8xf32>
    %51 = vector.multi_reduction <add>, %50, %cst_23 [1] : vector<8x128xf32> to vector<8xf32>
    %52 = vector.shape_cast %51 : vector<8xf32> to vector<8x1xf32>
    %53 = arith.addf %43, %52 : vector<8x1xf32>
    %54 = vector.extract_strided_slice %1 {offsets = [2, 128], sizes = [8, 128], strides = [1, 1]} : vector<16x256xf32> to vector<8x128xf32>
    %55 = arith.truncf %54 : vector<8x128xf32> to vector<8x128xbf16>
    %c5 = arith.constant 5 : index
    %c0_24 = arith.constant 0 : index
    %c0_25 = arith.constant 0 : index
    %56 = vector.load %arg2[%c5, %c0_24, %c0_25] : memref<17x128x128xbf16, #tpu.memory_space<vmem>>, vector<1x128x128xbf16>
    %57 = vector.shape_cast %56 : vector<1x128x128xbf16> to vector<128x128xbf16>
    %cst_26 = arith.constant dense<0.000000e+00> : vector<8x128xf32>
    %58 = tpu.matmul %55, %57, %cst_26 {dimension_numbers = #tpu.dot_dimension_numbers<[1], [0], [0], [1], [0, 0, 1, 1], [], []>} : vector<8x128xbf16>, vector<128x128xbf16>, vector<8x128xf32> -> vector<8x128xf32>
    %59 = arith.addf %49, %58 : vector<8x128xf32>
    %60 = arith.mulf %54, %54 : vector<8x128xf32>
    %cst_27 = arith.constant dense<0.000000e+00> : vector<8xf32>
    %61 = vector.multi_reduction <add>, %60, %cst_27 [1] : vector<8x128xf32> to vector<8xf32>
    %62 = vector.shape_cast %61 : vector<8xf32> to vector<8x1xf32>
    %63 = arith.addf %53, %62 : vector<8x1xf32>
    %64 = vector.extract_strided_slice %1 {offsets = [3, 0], sizes = [8, 128], strides = [1, 1]} : vector<16x256xf32> to vector<8x128xf32>
    %65 = arith.truncf %64 : vector<8x128xf32> to vector<8x128xbf16>
    %c6 = arith.constant 6 : index
    %c0_28 = arith.constant 0 : index
    %c0_29 = arith.constant 0 : index
    %66 = vector.load %arg2[%c6, %c0_28, %c0_29] : memref<17x128x128xbf16, #tpu.memory_space<vmem>>, vector<1x128x128xbf16>
    %67 = vector.shape_cast %66 : vector<1x128x128xbf16> to vector<128x128xbf16>
    %cst_30 = arith.constant dense<0.000000e+00> : vector<8x128xf32>
    %68 = tpu.matmul %65, %67, %cst_30 {dimension_numbers = #tpu.dot_dimension_numbers<[1], [0], [0], [1], [0, 0, 1, 1], [], []>} : vector<8x128xbf16>, vector<128x128xbf16>, vector<8x128xf32> -> vector<8x128xf32>
    %69 = arith.addf %59, %68 : vector<8x128xf32>
    %70 = arith.mulf %64, %64 : vector<8x128xf32>
    %cst_31 = arith.constant dense<0.000000e+00> : vector<8xf32>
    %71 = vector.multi_reduction <add>, %70, %cst_31 [1] : vector<8x128xf32> to vector<8xf32>
    %72 = vector.shape_cast %71 : vector<8xf32> to vector<8x1xf32>
    %73 = arith.addf %63, %72 : vector<8x1xf32>
    %74 = vector.extract_strided_slice %1 {offsets = [3, 128], sizes = [8, 128], strides = [1, 1]} : vector<16x256xf32> to vector<8x128xf32>
    %75 = arith.truncf %74 : vector<8x128xf32> to vector<8x128xbf16>
    %c7 = arith.constant 7 : index
    %c0_32 = arith.constant 0 : index
    %c0_33 = arith.constant 0 : index
    %76 = vector.load %arg2[%c7, %c0_32, %c0_33] : memref<17x128x128xbf16, #tpu.memory_space<vmem>>, vector<1x128x128xbf16>
    %77 = vector.shape_cast %76 : vector<1x128x128xbf16> to vector<128x128xbf16>
    %cst_34 = arith.constant dense<0.000000e+00> : vector<8x128xf32>
    %78 = tpu.matmul %75, %77, %cst_34 {dimension_numbers = #tpu.dot_dimension_numbers<[1], [0], [0], [1], [0, 0, 1, 1], [], []>} : vector<8x128xbf16>, vector<128x128xbf16>, vector<8x128xf32> -> vector<8x128xf32>
    %79 = arith.addf %69, %78 : vector<8x128xf32>
    %80 = arith.mulf %74, %74 : vector<8x128xf32>
    %cst_35 = arith.constant dense<0.000000e+00> : vector<8xf32>
    %81 = vector.multi_reduction <add>, %80, %cst_35 [1] : vector<8x128xf32> to vector<8xf32>
    %82 = vector.shape_cast %81 : vector<8xf32> to vector<8x1xf32>
    %83 = arith.addf %73, %82 : vector<8x1xf32>
    %84 = vector.extract_strided_slice %1 {offsets = [4, 0], sizes = [8, 128], strides = [1, 1]} : vector<16x256xf32> to vector<8x128xf32>
    %85 = arith.truncf %84 : vector<8x128xf32> to vector<8x128xbf16>
    %c8 = arith.constant 8 : index
    %c0_36 = arith.constant 0 : index
    %c0_37 = arith.constant 0 : index
    %86 = vector.load %arg2[%c8, %c0_36, %c0_37] : memref<17x128x128xbf16, #tpu.memory_space<vmem>>, vector<1x128x128xbf16>
    %87 = vector.shape_cast %86 : vector<1x128x128xbf16> to vector<128x128xbf16>
    %cst_38 = arith.constant dense<0.000000e+00> : vector<8x128xf32>
    %88 = tpu.matmul %85, %87, %cst_38 {dimension_numbers = #tpu.dot_dimension_numbers<[1], [0], [0], [1], [0, 0, 1, 1], [], []>} : vector<8x128xbf16>, vector<128x128xbf16>, vector<8x128xf32> -> vector<8x128xf32>
    %89 = arith.addf %79, %88 : vector<8x128xf32>
    %90 = arith.mulf %84, %84 : vector<8x128xf32>
    %cst_39 = arith.constant dense<0.000000e+00> : vector<8xf32>
    %91 = vector.multi_reduction <add>, %90, %cst_39 [1] : vector<8x128xf32> to vector<8xf32>
    %92 = vector.shape_cast %91 : vector<8xf32> to vector<8x1xf32>
    %93 = arith.addf %83, %92 : vector<8x1xf32>
    %94 = vector.extract_strided_slice %1 {offsets = [4, 128], sizes = [8, 128], strides = [1, 1]} : vector<16x256xf32> to vector<8x128xf32>
    %95 = arith.truncf %94 : vector<8x128xf32> to vector<8x128xbf16>
    %c9 = arith.constant 9 : index
    %c0_40 = arith.constant 0 : index
    %c0_41 = arith.constant 0 : index
    %96 = vector.load %arg2[%c9, %c0_40, %c0_41] : memref<17x128x128xbf16, #tpu.memory_space<vmem>>, vector<1x128x128xbf16>
    %97 = vector.shape_cast %96 : vector<1x128x128xbf16> to vector<128x128xbf16>
    %cst_42 = arith.constant dense<0.000000e+00> : vector<8x128xf32>
    %98 = tpu.matmul %95, %97, %cst_42 {dimension_numbers = #tpu.dot_dimension_numbers<[1], [0], [0], [1], [0, 0, 1, 1], [], []>} : vector<8x128xbf16>, vector<128x128xbf16>, vector<8x128xf32> -> vector<8x128xf32>
    %99 = arith.addf %89, %98 : vector<8x128xf32>
    %100 = arith.mulf %94, %94 : vector<8x128xf32>
    %cst_43 = arith.constant dense<0.000000e+00> : vector<8xf32>
    %101 = vector.multi_reduction <add>, %100, %cst_43 [1] : vector<8x128xf32> to vector<8xf32>
    %102 = vector.shape_cast %101 : vector<8xf32> to vector<8x1xf32>
    %103 = arith.addf %93, %102 : vector<8x1xf32>
    %104 = vector.extract_strided_slice %1 {offsets = [5, 0], sizes = [8, 128], strides = [1, 1]} : vector<16x256xf32> to vector<8x128xf32>
    %105 = arith.truncf %104 : vector<8x128xf32> to vector<8x128xbf16>
    %c10 = arith.constant 10 : index
    %c0_44 = arith.constant 0 : index
    %c0_45 = arith.constant 0 : index
    %106 = vector.load %arg2[%c10, %c0_44, %c0_45] : memref<17x128x128xbf16, #tpu.memory_space<vmem>>, vector<1x128x128xbf16>
    %107 = vector.shape_cast %106 : vector<1x128x128xbf16> to vector<128x128xbf16>
    %cst_46 = arith.constant dense<0.000000e+00> : vector<8x128xf32>
    %108 = tpu.matmul %105, %107, %cst_46 {dimension_numbers = #tpu.dot_dimension_numbers<[1], [0], [0], [1], [0, 0, 1, 1], [], []>} : vector<8x128xbf16>, vector<128x128xbf16>, vector<8x128xf32> -> vector<8x128xf32>
    %109 = arith.addf %99, %108 : vector<8x128xf32>
    %110 = arith.mulf %104, %104 : vector<8x128xf32>
    %cst_47 = arith.constant dense<0.000000e+00> : vector<8xf32>
    %111 = vector.multi_reduction <add>, %110, %cst_47 [1] : vector<8x128xf32> to vector<8xf32>
    %112 = vector.shape_cast %111 : vector<8xf32> to vector<8x1xf32>
    %113 = arith.addf %103, %112 : vector<8x1xf32>
    %114 = vector.extract_strided_slice %1 {offsets = [5, 128], sizes = [8, 128], strides = [1, 1]} : vector<16x256xf32> to vector<8x128xf32>
    %115 = arith.truncf %114 : vector<8x128xf32> to vector<8x128xbf16>
    %c11 = arith.constant 11 : index
    %c0_48 = arith.constant 0 : index
    %c0_49 = arith.constant 0 : index
    %116 = vector.load %arg2[%c11, %c0_48, %c0_49] : memref<17x128x128xbf16, #tpu.memory_space<vmem>>, vector<1x128x128xbf16>
    %117 = vector.shape_cast %116 : vector<1x128x128xbf16> to vector<128x128xbf16>
    %cst_50 = arith.constant dense<0.000000e+00> : vector<8x128xf32>
    %118 = tpu.matmul %115, %117, %cst_50 {dimension_numbers = #tpu.dot_dimension_numbers<[1], [0], [0], [1], [0, 0, 1, 1], [], []>} : vector<8x128xbf16>, vector<128x128xbf16>, vector<8x128xf32> -> vector<8x128xf32>
    %119 = arith.addf %109, %118 : vector<8x128xf32>
    %120 = arith.mulf %114, %114 : vector<8x128xf32>
    %cst_51 = arith.constant dense<0.000000e+00> : vector<8xf32>
    %121 = vector.multi_reduction <add>, %120, %cst_51 [1] : vector<8x128xf32> to vector<8xf32>
    %122 = vector.shape_cast %121 : vector<8xf32> to vector<8x1xf32>
    %123 = arith.addf %113, %122 : vector<8x1xf32>
    %124 = vector.extract_strided_slice %1 {offsets = [6, 0], sizes = [8, 128], strides = [1, 1]} : vector<16x256xf32> to vector<8x128xf32>
    %125 = arith.truncf %124 : vector<8x128xf32> to vector<8x128xbf16>
    %c12 = arith.constant 12 : index
    %c0_52 = arith.constant 0 : index
    %c0_53 = arith.constant 0 : index
    %126 = vector.load %arg2[%c12, %c0_52, %c0_53] : memref<17x128x128xbf16, #tpu.memory_space<vmem>>, vector<1x128x128xbf16>
    %127 = vector.shape_cast %126 : vector<1x128x128xbf16> to vector<128x128xbf16>
    %cst_54 = arith.constant dense<0.000000e+00> : vector<8x128xf32>
    %128 = tpu.matmul %125, %127, %cst_54 {dimension_numbers = #tpu.dot_dimension_numbers<[1], [0], [0], [1], [0, 0, 1, 1], [], []>} : vector<8x128xbf16>, vector<128x128xbf16>, vector<8x128xf32> -> vector<8x128xf32>
    %129 = arith.addf %119, %128 : vector<8x128xf32>
    %130 = arith.mulf %124, %124 : vector<8x128xf32>
    %cst_55 = arith.constant dense<0.000000e+00> : vector<8xf32>
    %131 = vector.multi_reduction <add>, %130, %cst_55 [1] : vector<8x128xf32> to vector<8xf32>
    %132 = vector.shape_cast %131 : vector<8xf32> to vector<8x1xf32>
    %133 = arith.addf %123, %132 : vector<8x1xf32>
    %134 = vector.extract_strided_slice %1 {offsets = [6, 128], sizes = [8, 128], strides = [1, 1]} : vector<16x256xf32> to vector<8x128xf32>
    %135 = arith.truncf %134 : vector<8x128xf32> to vector<8x128xbf16>
    %c13 = arith.constant 13 : index
    %c0_56 = arith.constant 0 : index
    %c0_57 = arith.constant 0 : index
    %136 = vector.load %arg2[%c13, %c0_56, %c0_57] : memref<17x128x128xbf16, #tpu.memory_space<vmem>>, vector<1x128x128xbf16>
    %137 = vector.shape_cast %136 : vector<1x128x128xbf16> to vector<128x128xbf16>
    %cst_58 = arith.constant dense<0.000000e+00> : vector<8x128xf32>
    %138 = tpu.matmul %135, %137, %cst_58 {dimension_numbers = #tpu.dot_dimension_numbers<[1], [0], [0], [1], [0, 0, 1, 1], [], []>} : vector<8x128xbf16>, vector<128x128xbf16>, vector<8x128xf32> -> vector<8x128xf32>
    %139 = arith.addf %129, %138 : vector<8x128xf32>
    %140 = arith.mulf %134, %134 : vector<8x128xf32>
    %cst_59 = arith.constant dense<0.000000e+00> : vector<8xf32>
    %141 = vector.multi_reduction <add>, %140, %cst_59 [1] : vector<8x128xf32> to vector<8xf32>
    %142 = vector.shape_cast %141 : vector<8xf32> to vector<8x1xf32>
    %143 = arith.addf %133, %142 : vector<8x1xf32>
    %144 = vector.extract_strided_slice %1 {offsets = [7, 0], sizes = [8, 128], strides = [1, 1]} : vector<16x256xf32> to vector<8x128xf32>
    %145 = arith.truncf %144 : vector<8x128xf32> to vector<8x128xbf16>
    %c14 = arith.constant 14 : index
    %c0_60 = arith.constant 0 : index
    %c0_61 = arith.constant 0 : index
    %146 = vector.load %arg2[%c14, %c0_60, %c0_61] : memref<17x128x128xbf16, #tpu.memory_space<vmem>>, vector<1x128x128xbf16>
    %147 = vector.shape_cast %146 : vector<1x128x128xbf16> to vector<128x128xbf16>
    %cst_62 = arith.constant dense<0.000000e+00> : vector<8x128xf32>
    %148 = tpu.matmul %145, %147, %cst_62 {dimension_numbers = #tpu.dot_dimension_numbers<[1], [0], [0], [1], [0, 0, 1, 1], [], []>} : vector<8x128xbf16>, vector<128x128xbf16>, vector<8x128xf32> -> vector<8x128xf32>
    %149 = arith.addf %139, %148 : vector<8x128xf32>
    %150 = arith.mulf %144, %144 : vector<8x128xf32>
    %cst_63 = arith.constant dense<0.000000e+00> : vector<8xf32>
    %151 = vector.multi_reduction <add>, %150, %cst_63 [1] : vector<8x128xf32> to vector<8xf32>
    %152 = vector.shape_cast %151 : vector<8xf32> to vector<8x1xf32>
    %153 = arith.addf %143, %152 : vector<8x1xf32>
    %154 = vector.extract_strided_slice %1 {offsets = [7, 128], sizes = [8, 128], strides = [1, 1]} : vector<16x256xf32> to vector<8x128xf32>
    %155 = arith.truncf %154 : vector<8x128xf32> to vector<8x128xbf16>
    %c15 = arith.constant 15 : index
    %c0_64 = arith.constant 0 : index
    %c0_65 = arith.constant 0 : index
    %156 = vector.load %arg2[%c15, %c0_64, %c0_65] : memref<17x128x128xbf16, #tpu.memory_space<vmem>>, vector<1x128x128xbf16>
    %157 = vector.shape_cast %156 : vector<1x128x128xbf16> to vector<128x128xbf16>
    %cst_66 = arith.constant dense<0.000000e+00> : vector<8x128xf32>
    %158 = tpu.matmul %155, %157, %cst_66 {dimension_numbers = #tpu.dot_dimension_numbers<[1], [0], [0], [1], [0, 0, 1, 1], [], []>} : vector<8x128xbf16>, vector<128x128xbf16>, vector<8x128xf32> -> vector<8x128xf32>
    %159 = arith.addf %149, %158 : vector<8x128xf32>
    %160 = arith.mulf %154, %154 : vector<8x128xf32>
    %cst_67 = arith.constant dense<0.000000e+00> : vector<8xf32>
    %161 = vector.multi_reduction <add>, %160, %cst_67 [1] : vector<8x128xf32> to vector<8xf32>
    %162 = vector.shape_cast %161 : vector<8xf32> to vector<8x1xf32>
    %163 = arith.addf %153, %162 : vector<8x1xf32>
    %164 = vector.extract_strided_slice %1 {offsets = [8, 0], sizes = [8, 128], strides = [1, 1]} : vector<16x256xf32> to vector<8x128xf32>
    %165 = arith.truncf %164 : vector<8x128xf32> to vector<8x128xbf16>
    %c16 = arith.constant 16 : index
    %c0_68 = arith.constant 0 : index
    %c0_69 = arith.constant 0 : index
    %166 = vector.load %arg2[%c16, %c0_68, %c0_69] : memref<17x128x128xbf16, #tpu.memory_space<vmem>>, vector<1x128x128xbf16>
    %167 = vector.shape_cast %166 : vector<1x128x128xbf16> to vector<128x128xbf16>
    %cst_70 = arith.constant dense<0.000000e+00> : vector<8x128xf32>
    %168 = tpu.matmul %165, %167, %cst_70 {dimension_numbers = #tpu.dot_dimension_numbers<[1], [0], [0], [1], [0, 0, 1, 1], [], []>} : vector<8x128xbf16>, vector<128x128xbf16>, vector<8x128xf32> -> vector<8x128xf32>
    %169 = arith.addf %159, %168 : vector<8x128xf32>
    %170 = arith.mulf %164, %164 : vector<8x128xf32>
    %cst_71 = arith.constant dense<0.000000e+00> : vector<8xf32>
    %171 = vector.multi_reduction <add>, %170, %cst_71 [1] : vector<8x128xf32> to vector<8xf32>
    %172 = vector.shape_cast %171 : vector<8xf32> to vector<8x1xf32>
    %173 = arith.addf %163, %172 : vector<8x1xf32>
    %cst_72 = arith.constant 9.99999997E-7 : f32
    %174 = vector.broadcast %cst_72 : f32 to vector<8x1xf32>
    %175 = arith.addf %173, %174 : vector<8x1xf32>
    %176 = math.rsqrt %175 : vector<8x1xf32>
    %177 = math.absf %169 : vector<8x128xf32>
    %178 = vector.broadcast %176 : vector<8x1xf32> to vector<8x128xf32>
    %179 = arith.mulf %177, %178 : vector<8x128xf32>
    %cst_73 = arith.constant 9.99999997E-7 : f32
    %180 = vector.broadcast %cst_73 : f32 to vector<8x128xf32>
    %181 = arith.addf %179, %180 : vector<8x128xf32>
    %182 = arith.mulf %169, %181 : vector<8x128xf32>
    %cst_74 = arith.constant 4.28746462 : f32
    %183 = vector.broadcast %cst_74 : f32 to vector<8x128xf32>
    %184 = arith.mulf %182, %183 : vector<8x128xf32>
    %c0_75 = arith.constant 0 : index
    %c0_76 = arith.constant 0 : index
    %c0_77 = arith.constant 0 : index
    %185 = vector.load %arg3[%c0_75, %c0_76, %c0_77] : memref<1x8x128xf32, #tpu.memory_space<vmem>>, vector<1x8x128xf32>
    %186 = vector.shape_cast %185 : vector<1x8x128xf32> to vector<8x128xf32>
    %187 = vector.shape_cast %184 : vector<8x128xf32> to vector<1x8x128xf32>
    tpu.vector_store %arg3[%c0_75, %c0_76, %c0_77], %187 {strides = array<i32>} : memref<1x8x128xf32, #tpu.memory_space<vmem>>, vector<1x8x128xf32>,
    return
  }
  func.func @transform_0(%arg0: i32) -> (i32, i32, i32) {
    %c0_i32 = arith.constant 0 : i32
    %c0_i32_0 = arith.constant 0 : i32
    %c0_i32_1 = arith.constant 0 : i32
    return %arg0, %c0_i32, %c0_i32_0 : i32, i32, i32
  }
  func.func @transform_1(%arg0: i32) -> (i32, i32, i32) {
    %c0_i32 = arith.constant 0 : i32
    %c0_i32_0 = arith.constant 0 : i32
    %c0_i32_1 = arith.constant 0 : i32
    %c0_i32_2 = arith.constant 0 : i32
    return %c0_i32, %c0_i32_0, %c0_i32_1 : i32, i32, i32
  }
  func.func @transform_2(%arg0: i32) -> (i32, i32, i32) {
    %c0_i32 = arith.constant 0 : i32
    %c0_i32_0 = arith.constant 0 : i32
    %c0_i32_1 = arith.constant 0 : i32
    return %arg0, %c0_i32, %c0_i32_0 : i32, i32, i32
  }
}

module attributes {stable_mosaic.version = 11 : i64} {
  func.func @_bcos_dense_kernel(%arg0: i32, %arg1: memref<8x1024xf32, #tpu.memory_space<vmem>>, %arg2: memref<1024x128xbf16, #tpu.memory_space<vmem>>, %arg3: memref<8x128xf32, #tpu.memory_space<vmem>>) attributes {dimension_semantics = [#tpu.dimension_semantics<parallel>], iteration_bounds = array<i64: 1>, scalar_prefetch = 0 : i64, scratch_operands = 0 : i64, tpu.core_type = #tpu.core_type<tc>, window_params = [{transform_indices = @transform_0, window_bounds = array<i64: 8, 1024>}, {pipeline_mode = #tpu.pipeline_mode<synchronous>, transform_indices = @transform_1, window_bounds = array<i64: 1024, 128>}, {transform_indices = @transform_2, window_bounds = array<i64: 8, 128>}]} {
    %c0 = arith.constant 0 : index
    %c0_0 = arith.constant 0 : index
    %0 = vector.load %arg1[%c0, %c0_0] : memref<8x1024xf32, #tpu.memory_space<vmem>>, vector<8x1024xf32>
    %1 = arith.truncf %0 : vector<8x1024xf32> to vector<8x1024xbf16>
    %c0_1 = arith.constant 0 : index
    %c0_2 = arith.constant 0 : index
    %2 = vector.load %arg2[%c0_1, %c0_2] : memref<1024x128xbf16, #tpu.memory_space<vmem>>, vector<1024x128xbf16>
    %cst = arith.constant dense<0.000000e+00> : vector<8x128xf32>
    %3 = tpu.matmul %1, %2, %cst {dimension_numbers = #tpu.dot_dimension_numbers<[1], [0], [0], [1], [0, 0, 1, 1], [], []>} : vector<8x1024xbf16>, vector<1024x128xbf16>, vector<8x128xf32> -> vector<8x128xf32>
    %4 = arith.mulf %0, %0 : vector<8x1024xf32>
    %cst_3 = arith.constant dense<0.000000e+00> : vector<8xf32>
    %5 = vector.multi_reduction <add>, %4, %cst_3 [1] : vector<8x1024xf32> to vector<8xf32>
    %6 = vector.shape_cast %5 : vector<8xf32> to vector<8x1xf32>
    %cst_4 = arith.constant 9.99999997E-7 : f32
    %7 = vector.broadcast %cst_4 : f32 to vector<8x1xf32>
    %8 = arith.addf %6, %7 : vector<8x1xf32>
    %9 = math.rsqrt %8 : vector<8x1xf32>
    %10 = math.absf %3 : vector<8x128xf32>
    %11 = vector.broadcast %9 : vector<8x1xf32> to vector<8x128xf32>
    %12 = arith.mulf %10, %11 : vector<8x128xf32>
    %cst_5 = arith.constant 9.99999997E-7 : f32
    %13 = vector.broadcast %cst_5 : f32 to vector<8x128xf32>
    %14 = arith.addf %12, %13 : vector<8x128xf32>
    %15 = arith.mulf %3, %14 : vector<8x128xf32>
    %cst_6 = arith.constant 4.41941738 : f32
    %16 = vector.broadcast %cst_6 : f32 to vector<8x128xf32>
    %17 = arith.mulf %15, %16 : vector<8x128xf32>
    %18 = tpu.iota {dimensions = array<i32: 1>} : vector<8x128xi32>
    %c31_i32 = arith.constant 31 : i32
    %19 = vector.broadcast %c31_i32 : i32 to vector<8x128xi32>
    %20 = arith.cmpi eq, %18, %19 : vector<8x128xi32>
    %cst_7 = arith.constant 1.000000e+00 : f32
    %21 = vector.broadcast %cst_7 : f32 to vector<8x128xf32>
    %22 = arith.select %20, %21, %17 : vector<8x128xi1>, vector<8x128xf32>
    %c0_8 = arith.constant 0 : index
    %c0_9 = arith.constant 0 : index
    %23 = vector.load %arg3[%c0_8, %c0_9] : memref<8x128xf32, #tpu.memory_space<vmem>>, vector<8x128xf32>
    tpu.vector_store %arg3[%c0_8, %c0_9], %22 {strides = array<i32>} : memref<8x128xf32, #tpu.memory_space<vmem>>, vector<8x128xf32>,
    return
  }
  func.func @transform_0(%arg0: i32) -> (i32, i32) {
    %c0_i32 = arith.constant 0 : i32
    %c0_i32_0 = arith.constant 0 : i32
    return %arg0, %c0_i32 : i32, i32
  }
  func.func @transform_1(%arg0: i32) -> (i32, i32) {
    %c0_i32 = arith.constant 0 : i32
    %c0_i32_0 = arith.constant 0 : i32
    %c0_i32_1 = arith.constant 0 : i32
    return %c0_i32, %c0_i32_0 : i32, i32
  }
  func.func @transform_2(%arg0: i32) -> (i32, i32) {
    %c0_i32 = arith.constant 0 : i32
    %c0_i32_0 = arith.constant 0 : i32
    return %arg0, %c0_i32 : i32, i32
  }
}

module attributes {stable_mosaic.version = 11 : i64} {
  func.func @_bcos_dense_kernel(%arg0: i32, %arg1: memref<8x128xf32, #tpu.memory_space<vmem>>, %arg2: memref<128x128xbf16, #tpu.memory_space<vmem>>, %arg3: memref<8x128xf32, #tpu.memory_space<vmem>>) attributes {dimension_semantics = [#tpu.dimension_semantics<parallel>], iteration_bounds = array<i64: 1>, scalar_prefetch = 0 : i64, scratch_operands = 0 : i64, tpu.core_type = #tpu.core_type<tc>, window_params = [{transform_indices = @transform_0, window_bounds = array<i64: 8, 128>}, {pipeline_mode = #tpu.pipeline_mode<synchronous>, transform_indices = @transform_1, window_bounds = array<i64: 128, 128>}, {transform_indices = @transform_2, window_bounds = array<i64: 8, 128>}]} {
    %c0 = arith.constant 0 : index
    %c0_0 = arith.constant 0 : index
    %0 = vector.load %arg1[%c0, %c0_0] : memref<8x128xf32, #tpu.memory_space<vmem>>, vector<8x128xf32>
    %1 = arith.truncf %0 : vector<8x128xf32> to vector<8x128xbf16>
    %c0_1 = arith.constant 0 : index
    %c0_2 = arith.constant 0 : index
    %2 = vector.load %arg2[%c0_1, %c0_2] : memref<128x128xbf16, #tpu.memory_space<vmem>>, vector<128x128xbf16>
    %cst = arith.constant dense<0.000000e+00> : vector<8x128xf32>
    %3 = tpu.matmul %1, %2, %cst {dimension_numbers = #tpu.dot_dimension_numbers<[1], [0], [0], [1], [0, 0, 1, 1], [], []>} : vector<8x128xbf16>, vector<128x128xbf16>, vector<8x128xf32> -> vector<8x128xf32>
    %4 = arith.mulf %0, %0 : vector<8x128xf32>
    %cst_3 = arith.constant dense<0.000000e+00> : vector<8xf32>
    %5 = vector.multi_reduction <add>, %4, %cst_3 [1] : vector<8x128xf32> to vector<8xf32>
    %6 = vector.shape_cast %5 : vector<8xf32> to vector<8x1xf32>
    %cst_4 = arith.constant 9.99999997E-7 : f32
    %7 = vector.broadcast %cst_4 : f32 to vector<8x1xf32>
    %8 = arith.addf %6, %7 : vector<8x1xf32>
    %9 = math.rsqrt %8 : vector<8x1xf32>
    %10 = math.absf %3 : vector<8x128xf32>
    %11 = vector.broadcast %9 : vector<8x1xf32> to vector<8x128xf32>
    %12 = arith.mulf %10, %11 : vector<8x128xf32>
    %cst_5 = arith.constant 9.99999997E-7 : f32
    %13 = vector.broadcast %cst_5 : f32 to vector<8x128xf32>
    %14 = arith.addf %12, %13 : vector<8x128xf32>
    %15 = arith.mulf %3, %14 : vector<8x128xf32>
    %cst_6 = arith.constant 17.6776695 : f32
    %16 = vector.broadcast %cst_6 : f32 to vector<8x128xf32>
    %17 = arith.mulf %15, %16 : vector<8x128xf32>
    %18 = tpu.iota {dimensions = array<i32: 1>} : vector<8x128xi32>
    %c4_i32 = arith.constant 4 : i32
    %19 = vector.broadcast %c4_i32 : i32 to vector<8x128xi32>
    %20 = arith.cmpi eq, %18, %19 : vector<8x128xi32>
    %cst_7 = arith.constant 1.000000e+00 : f32
    %21 = vector.broadcast %cst_7 : f32 to vector<8x128xf32>
    %22 = arith.select %20, %21, %17 : vector<8x128xi1>, vector<8x128xf32>
    %c0_8 = arith.constant 0 : index
    %c0_9 = arith.constant 0 : index
    %23 = vector.load %arg3[%c0_8, %c0_9] : memref<8x128xf32, #tpu.memory_space<vmem>>, vector<8x128xf32>
    tpu.vector_store %arg3[%c0_8, %c0_9], %22 {strides = array<i32>} : memref<8x128xf32, #tpu.memory_space<vmem>>, vector<8x128xf32>,
    return
  }
  func.func @transform_0(%arg0: i32) -> (i32, i32) {
    %c0_i32 = arith.constant 0 : i32
    %c0_i32_0 = arith.constant 0 : i32
    return %arg0, %c0_i32 : i32, i32
  }
  func.func @transform_1(%arg0: i32) -> (i32, i32) {
    %c0_i32 = arith.constant 0 : i32
    %c0_i32_0 = arith.constant 0 : i32
    %c0_i32_1 = arith.constant 0 : i32
    return %c0_i32, %c0_i32_0 : i32, i32
  }
  func.func @transform_2(%arg0: i32) -> (i32, i32) {
    %c0_i32 = arith.constant 0 : i32
    %c0_i32_0 = arith.constant 0 : i32
    return %arg0, %c0_i32 : i32, i32
  }
}

module attributes {stable_mosaic.version = 11 : i64} {
  func.func @_bcos_attn_fc_kernel(%arg0: memref<8x128xf32, #tpu.memory_space<vmem>>, %arg1: memref<128x128xbf16, #tpu.memory_space<vmem>>, %arg2: memref<128x128xbf16, #tpu.memory_space<vmem>>, %arg3: memref<1x128xf32, #tpu.memory_space<vmem>>, %arg4: memref<1x128xf32, #tpu.memory_space<vmem>>, %arg5: memref<1x128xf32, #tpu.memory_space<vmem>>, %arg6: memref<1x128xf32, #tpu.memory_space<vmem>>, %arg7: memref<128x128xbf16, #tpu.memory_space<vmem>>, %arg8: memref<8x128xf32, #tpu.memory_space<vmem>>) attributes {dimension_semantics = [], scalar_prefetch = 0 : i64, scratch_operands = 0 : i64, tpu.core_type = #tpu.core_type<tc>} {
    %c0 = arith.constant 0 : index
    %c0_0 = arith.constant 0 : index
    %0 = vector.load %arg0[%c0, %c0_0] : memref<8x128xf32, #tpu.memory_space<vmem>>, vector<8x128xf32>
    %1 = tpu.iota {dimensions = array<i32: 0>} : vector<8x128xi32>
    %2 = tpu.iota {dimensions = array<i32: 1>} : vector<8x128xi32>
    %c2_i32 = arith.constant 2 : i32
    %3 = vector.broadcast %c2_i32 : i32 to vector<8x128xi32>
    %4 = arith.cmpi slt, %1, %3 : vector<8x128xi32>
    %c32_i32 = arith.constant 32 : i32
    %5 = vector.broadcast %c32_i32 : i32 to vector<8x128xi32>
    %6 = arith.cmpi slt, %2, %5 : vector<8x128xi32>
    %7 = arith.andi %4, %6 : vector<8x128xi1>
    %cst = arith.constant 0.000000e+00 : f32
    %8 = vector.broadcast %cst : f32 to vector<8x128xf32>
    %9 = arith.select %7, %0, %8 : vector<8x128xi1>, vector<8x128xf32>
    %10 = arith.truncf %9 : vector<8x128xf32> to vector<8x128xbf16>
    %c0_1 = arith.constant 0 : index
    %c0_2 = arith.constant 0 : index
    %11 = vector.load %arg1[%c0_1, %c0_2] : memref<128x128xbf16, #tpu.memory_space<vmem>>, vector<128x128xbf16>
    %cst_3 = arith.constant dense<0.000000e+00> : vector<8x128xf32>
    %12 = tpu.matmul %10, %11, %cst_3 {dimension_numbers = #tpu.dot_dimension_numbers<[1], [0], [0], [1], [0, 0, 1, 1], [], []>} : vector<8x128xbf16>, vector<128x128xbf16>, vector<8x128xf32> -> vector<8x128xf32>
    %c0_4 = arith.constant 0 : index
    %c0_5 = arith.constant 0 : index
    %13 = vector.load %arg2[%c0_4, %c0_5] : memref<128x128xbf16, #tpu.memory_space<vmem>>, vector<128x128xbf16>
    %cst_6 = arith.constant dense<0.000000e+00> : vector<8x128xf32>
    %14 = tpu.matmul %10, %13, %cst_6 {dimension_numbers = #tpu.dot_dimension_numbers<[1], [0], [0], [1], [0, 0, 1, 1], [], []>} : vector<8x128xbf16>, vector<128x128xbf16>, vector<8x128xf32> -> vector<8x128xf32>
    %c0_7 = arith.constant 0 : index
    %c0_8 = arith.constant 0 : index
    %15 = vector.load %arg3[%c0_7, %c0_8] : memref<1x128xf32, #tpu.memory_space<vmem>>, vector<1x128xf32>
    %c0_9 = arith.constant 0 : index
    %c0_10 = arith.constant 0 : index
    %16 = vector.load %arg4[%c0_9, %c0_10] : memref<1x128xf32, #tpu.memory_space<vmem>>, vector<1x128xf32>
    %cst_11 = arith.constant dense<0.000000e+00> : vector<8xf32>
    %17 = vector.multi_reduction <add>, %9, %cst_11 [1] : vector<8x128xf32> to vector<8xf32>
    %18 = vector.shape_cast %17 : vector<8xf32> to vector<8x1xf32>
    %cst_12 = arith.constant 3.125000e-02 : f32
    %19 = vector.broadcast %cst_12 : f32 to vector<8x1xf32>
    %20 = arith.mulf %18, %19 : vector<8x1xf32>
    %21 = arith.mulf %9, %9 : vector<8x128xf32>
    %cst_13 = arith.constant dense<0.000000e+00> : vector<8xf32>
    %22 = vector.multi_reduction <add>, %21, %cst_13 [1] : vector<8x128xf32> to vector<8xf32>
    %23 = vector.shape_cast %22 : vector<8xf32> to vector<8x1xf32>
    %cst_14 = arith.constant 3.125000e-02 : f32
    %24 = vector.broadcast %cst_14 : f32 to vector<8x1xf32>
    %25 = arith.mulf %23, %24 : vector<8x1xf32>
    %26 = arith.mulf %20, %20 : vector<8x1xf32>
    %27 = arith.subf %25, %26 : vector<8x1xf32>
    %cst_15 = arith.constant 0.000000e+00 : f32
    %28 = vector.broadcast %cst_15 : f32 to vector<8x1xf32>
    %29 = arith.maximumf %27, %28 : vector<8x1xf32>
    %30 = vector.broadcast %20 : vector<8x1xf32> to vector<8x128xf32>
    %31 = arith.subf %9, %30 : vector<8x128xf32>
    %cst_16 = arith.constant 9.99999974E-6 : f32
    %32 = vector.broadcast %cst_16 : f32 to vector<8x1xf32>
    %33 = arith.addf %29, %32 : vector<8x1xf32>
    %34 = math.rsqrt %33 : vector<8x1xf32>
    %35 = vector.broadcast %34 : vector<8x1xf32> to vector<8x128xf32>
    %36 = arith.mulf %31, %35 : vector<8x128xf32>
    %37 = vector.broadcast %15 : vector<1x128xf32> to vector<8x128xf32>
    %38 = arith.mulf %36, %37 : vector<8x128xf32>
    %39 = vector.broadcast %16 : vector<1x128xf32> to vector<8x128xf32>
    %40 = arith.addf %38, %39 : vector<8x128xf32>
    %41 = arith.mulf %40, %40 : vector<8x128xf32>
    %cst_17 = arith.constant dense<0.000000e+00> : vector<8xf32>
    %42 = vector.multi_reduction <add>, %41, %cst_17 [1] : vector<8x128xf32> to vector<8xf32>
    %43 = vector.shape_cast %42 : vector<8xf32> to vector<8x1xf32>
    %cst_18 = arith.constant 9.99999997E-7 : f32
    %44 = vector.broadcast %cst_18 : f32 to vector<8x1xf32>
    %45 = arith.addf %43, %44 : vector<8x1xf32>
    %46 = math.rsqrt %45 : vector<8x1xf32>
    %47 = math.absf %40 : vector<8x128xf32>
    %48 = vector.broadcast %46 : vector<8x1xf32> to vector<8x128xf32>
    %49 = arith.mulf %47, %48 : vector<8x128xf32>
    %cst_19 = arith.constant 9.99999997E-7 : f32
    %50 = vector.broadcast %cst_19 : f32 to vector<8x128xf32>
    %51 = arith.addf %49, %50 : vector<8x128xf32>
    %52 = arith.mulf %40, %51 : vector<8x128xf32>
    %cst_20 = arith.constant 17.6776695 : f32
    %53 = vector.broadcast %cst_20 : f32 to vector<8x128xf32>
    %54 = arith.mulf %52, %53 : vector<8x128xf32>
    %cst_21 = arith.constant dense<0.000000e+00> : vector<8x8xf32>
    %55 = tpu.matmul %12, %14, %cst_21 {dimension_numbers = #tpu.dot_dimension_numbers<[1], [1], [0], [0], [0, 0, 1, 0], [], []>} : vector<8x128xf32>, vector<8x128xf32>, vector<8x8xf32> -> vector<8x8xf32>
    %56 = tpu.iota {dimensions = array<i32: 1>} : vector<8x8xi32>
    %c2_i32_22 = arith.constant 2 : i32
    %57 = vector.broadcast %c2_i32_22 : i32 to vector<8x8xi32>
    %58 = arith.cmpi slt, %56, %57 : vector<8x8xi32>
    %cst_23 = arith.constant -1.000000e+30 : f32
    %59 = vector.broadcast %cst_23 : f32 to vector<8x8xf32>
    %60 = arith.select %58, %55, %59 : vector<8x8xi1>, vector<8x8xf32>
    %cst_24 = arith.constant dense<0xFF800000> : vector<8xf32>
    %61 = vector.multi_reduction <maximumf>, %60, %cst_24 [1] : vector<8x8xf32> to vector<8xf32>
    %62 = vector.shape_cast %61 : vector<8xf32> to vector<8x1xf32>
    %63 = vector.broadcast %62 : vector<8x1xf32> to vector<8x8xf32>
    %64 = arith.subf %60, %63 : vector<8x8xf32>
    %65 = math.exp %64 : vector<8x8xf32>
    %cst_25 = arith.constant dense<0.000000e+00> : vector<8xf32>
    %66 = vector.multi_reduction <add>, %65, %cst_25 [1] : vector<8x8xf32> to vector<8xf32>
    %67 = vector.shape_cast %66 : vector<8xf32> to vector<8x1xf32>
    %68 = tpu.reciprocal %67 {approx = true} : vector<8x1xf32> -> vector<8x1xf32>
    %69 = vector.broadcast %68 : vector<8x1xf32> to vector<8x8xf32>
    %70 = arith.mulf %65, %69 : vector<8x8xf32>
    %cst_26 = arith.constant dense<0.000000e+00> : vector<8x128xf32>
    %71 = tpu.matmul %70, %54, %cst_26 {dimension_numbers = #tpu.dot_dimension_numbers<[1], [0], [0], [1], [0, 0, 1, 1], [], []>} : vector<8x8xf32>, vector<8x128xf32>, vector<8x128xf32> -> vector<8x128xf32>
    %c0_27 = arith.constant 0 : index
    %c0_28 = arith.constant 0 : index
    %72 = vector.load %arg5[%c0_27, %c0_28] : memref<1x128xf32, #tpu.memory_space<vmem>>, vector<1x128xf32>
    %c0_29 = arith.constant 0 : index
    %c0_30 = arith.constant 0 : index
    %73 = vector.load %arg6[%c0_29, %c0_30] : memref<1x128xf32, #tpu.memory_space<vmem>>, vector<1x128xf32>
    %cst_31 = arith.constant dense<0.000000e+00> : vector<8xf32>
    %74 = vector.multi_reduction <add>, %71, %cst_31 [1] : vector<8x128xf32> to vector<8xf32>
    %75 = vector.shape_cast %74 : vector<8xf32> to vector<8x1xf32>
    %cst_32 = arith.constant 3.125000e-02 : f32
    %76 = vector.broadcast %cst_32 : f32 to vector<8x1xf32>
    %77 = arith.mulf %75, %76 : vector<8x1xf32>
    %78 = arith.mulf %71, %71 : vector<8x128xf32>
    %cst_33 = arith.constant dense<0.000000e+00> : vector<8xf32>
    %79 = vector.multi_reduction <add>, %78, %cst_33 [1] : vector<8x128xf32> to vector<8xf32>
    %80 = vector.shape_cast %79 : vector<8xf32> to vector<8x1xf32>
    %cst_34 = arith.constant 3.125000e-02 : f32
    %81 = vector.broadcast %cst_34 : f32 to vector<8x1xf32>
    %82 = arith.mulf %80, %81 : vector<8x1xf32>
    %83 = arith.mulf %77, %77 : vector<8x1xf32>
    %84 = arith.subf %82, %83 : vector<8x1xf32>
    %cst_35 = arith.constant 0.000000e+00 : f32
    %85 = vector.broadcast %cst_35 : f32 to vector<8x1xf32>
    %86 = arith.maximumf %84, %85 : vector<8x1xf32>
    %87 = vector.broadcast %77 : vector<8x1xf32> to vector<8x128xf32>
    %88 = arith.subf %71, %87 : vector<8x128xf32>
    %cst_36 = arith.constant 9.99999974E-6 : f32
    %89 = vector.broadcast %cst_36 : f32 to vector<8x1xf32>
    %90 = arith.addf %86, %89 : vector<8x1xf32>
    %91 = math.rsqrt %90 : vector<8x1xf32>
    %92 = vector.broadcast %91 : vector<8x1xf32> to vector<8x128xf32>
    %93 = arith.mulf %88, %92 : vector<8x128xf32>
    %94 = vector.broadcast %72 : vector<1x128xf32> to vector<8x128xf32>
    %95 = arith.mulf %93, %94 : vector<8x128xf32>
    %96 = vector.broadcast %73 : vector<1x128xf32> to vector<8x128xf32>
    %97 = arith.addf %95, %96 : vector<8x128xf32>
    %98 = arith.mulf %97, %97 : vector<8x128xf32>
    %cst_37 = arith.constant dense<0.000000e+00> : vector<8xf32>
    %99 = vector.multi_reduction <add>, %98, %cst_37 [1] : vector<8x128xf32> to vector<8xf32>
    %100 = vector.shape_cast %99 : vector<8xf32> to vector<8x1xf32>
    %cst_38 = arith.constant 9.99999997E-7 : f32
    %101 = vector.broadcast %cst_38 : f32 to vector<8x1xf32>
    %102 = arith.addf %100, %101 : vector<8x1xf32>
    %103 = math.rsqrt %102 : vector<8x1xf32>
    %104 = math.absf %97 : vector<8x128xf32>
    %105 = vector.broadcast %103 : vector<8x1xf32> to vector<8x128xf32>
    %106 = arith.mulf %104, %105 : vector<8x128xf32>
    %cst_39 = arith.constant 9.99999997E-7 : f32
    %107 = vector.broadcast %cst_39 : f32 to vector<8x128xf32>
    %108 = arith.addf %106, %107 : vector<8x128xf32>
    %109 = arith.mulf %97, %108 : vector<8x128xf32>
    %cst_40 = arith.constant 17.6776695 : f32
    %110 = vector.broadcast %cst_40 : f32 to vector<8x128xf32>
    %111 = arith.mulf %109, %110 : vector<8x128xf32>
    %cst_41 = arith.constant dense<0.000000e+00> : vector<8x8xf32>
    %112 = tpu.matmul %111, %71, %cst_41 {dimension_numbers = #tpu.dot_dimension_numbers<[1], [1], [0], [0], [0, 0, 1, 0], [], []>} : vector<8x128xf32>, vector<8x128xf32>, vector<8x8xf32> -> vector<8x8xf32>
    %cst_42 = arith.constant dense<0.000000e+00> : vector<8x128xf32>
    %113 = tpu.matmul %112, %9, %cst_42 {dimension_numbers = #tpu.dot_dimension_numbers<[1], [0], [0], [1], [0, 0, 1, 1], [], []>} : vector<8x8xf32>, vector<8x128xf32>, vector<8x128xf32> -> vector<8x128xf32>
    %114 = arith.mulf %113, %113 : vector<8x128xf32>
    %cst_43 = arith.constant dense<0.000000e+00> : vector<8xf32>
    %115 = vector.multi_reduction <add>, %114, %cst_43 [1] : vector<8x128xf32> to vector<8xf32>
    %116 = vector.shape_cast %115 : vector<8xf32> to vector<8x1xf32>
    %cst_44 = arith.constant 9.99999997E-7 : f32
    %117 = vector.broadcast %cst_44 : f32 to vector<8x1xf32>
    %118 = arith.addf %116, %117 : vector<8x1xf32>
    %119 = math.rsqrt %118 : vector<8x1xf32>
    %120 = math.absf %113 : vector<8x128xf32>
    %121 = vector.broadcast %119 : vector<8x1xf32> to vector<8x128xf32>
    %122 = arith.mulf %120, %121 : vector<8x128xf32>
    %cst_45 = arith.constant 9.99999997E-7 : f32
    %123 = vector.broadcast %cst_45 : f32 to vector<8x128xf32>
    %124 = arith.addf %122, %123 : vector<8x128xf32>
    %c32_i32_46 = arith.constant 32 : i32
    %125 = vector.broadcast %c32_i32_46 : i32 to vector<8x128xi32>
    %126 = arith.cmpi slt, %2, %125 : vector<8x128xi32>
    %cst_47 = arith.constant 0.000000e+00 : f32
    %127 = vector.broadcast %cst_47 : f32 to vector<8x128xf32>
    %128 = arith.select %126, %124, %127 : vector<8x128xi1>, vector<8x128xf32>
    %129 = arith.truncf %128 : vector<8x128xf32> to vector<8x128xbf16>
    %c0_48 = arith.constant 0 : index
    %c0_49 = arith.constant 0 : index
    %130 = vector.load %arg7[%c0_48, %c0_49] : memref<128x128xbf16, #tpu.memory_space<vmem>>, vector<128x128xbf16>
    %cst_50 = arith.constant dense<0.000000e+00> : vector<8x128xf32>
    %131 = tpu.matmul %129, %130, %cst_50 {dimension_numbers = #tpu.dot_dimension_numbers<[1], [0], [0], [1], [0, 0, 1, 1], [], []>} : vector<8x128xbf16>, vector<128x128xbf16>, vector<8x128xf32> -> vector<8x128xf32>
    %132 = arith.mulf %128, %128 : vector<8x128xf32>
    %cst_51 = arith.constant dense<0.000000e+00> : vector<8xf32>
    %133 = vector.multi_reduction <add>, %132, %cst_51 [1] : vector<8x128xf32> to vector<8xf32>
    %134 = vector.shape_cast %133 : vector<8xf32> to vector<8x1xf32>
    %cst_52 = arith.constant 9.99999997E-7 : f32
    %135 = vector.broadcast %cst_52 : f32 to vector<8x1xf32>
    %136 = arith.addf %134, %135 : vector<8x1xf32>
    %137 = math.rsqrt %136 : vector<8x1xf32>
    %138 = math.absf %131 : vector<8x128xf32>
    %139 = vector.broadcast %137 : vector<8x1xf32> to vector<8x128xf32>
    %140 = arith.mulf %138, %139 : vector<8x128xf32>
    %cst_53 = arith.constant 9.99999997E-7 : f32
    %141 = vector.broadcast %cst_53 : f32 to vector<8x128xf32>
    %142 = arith.addf %140, %141 : vector<8x128xf32>
    %143 = arith.mulf %131, %142 : vector<8x128xf32>
    %cst_54 = arith.constant 17.6776695 : f32
    %144 = vector.broadcast %cst_54 : f32 to vector<8x128xf32>
    %145 = arith.mulf %143, %144 : vector<8x128xf32>
    %c31_i32 = arith.constant 31 : i32
    %146 = vector.broadcast %c31_i32 : i32 to vector<8x128xi32>
    %147 = arith.cmpi eq, %2, %146 : vector<8x128xi32>
    %cst_55 = arith.constant 1.000000e+00 : f32
    %148 = vector.broadcast %cst_55 : f32 to vector<8x128xf32>
    %149 = arith.select %147, %148, %145 : vector<8x128xi1>, vector<8x128xf32>
    %c0_56 = arith.constant 0 : index
    %c0_57 = arith.constant 0 : index
    %150 = vector.load %arg8[%c0_56, %c0_57] : memref<8x128xf32, #tpu.memory_space<vmem>>, vector<8x128xf32>
    tpu.vector_store %arg8[%c0_56, %c0_57], %149 {strides = array<i32>} : memref<8x128xf32, #tpu.memory_space<vmem>>, vector<8x128xf32>,
    return
  }
}

</mosaic_0001>

<bundles_post_ra>
// kernel: bcos_transformer_forward.7
= control target key start
LH: loop header
LB: loop body
LE: loop exit
PB: predicated region body
PF: predicated region fallthrough
CT: control target
= control target key end

     0   :  { %7 = vsyncpa [#allocation3], 0  ;;  %s2295_s9 = smov 0   ;;  %s2908_s0 = inlined_call_operand.vmem [shape: f32[2,40,16], index: 0, kind: input, shape index: {}]   ;;  %s2909_s1 = inlined_call_operand.hbm [shape: bf16[17,8,128], index: 1, kind: input, shape index: {}]   ;;  %s2910_s2 = inlined_call_operand.vmem [shape: f32[2,32,128], index: 2, kind: output, shape index: {}]  }
   0x1 LB: > { %s2301_s10 = sadd.s32 4294967295, %s2273_s9   ;;  %p1922_p0 = scmp.ge.s32.totalorder %s2273_s9, 1  ;;  %s2273_s9 = sphi %s2295_s9, %s13_s9  }
   0x2   : > { %p91_p1 = scmp.lt.s32.totalorder %s2273_s9, 3  ;;  %s2275_s11 = smov [#allocation2]  }
   0x3   : > { %s103_s12 = sshll.u32 %s2275_s11, 4  ;;  %p2911_p3 = scmp.eq.s32.totalorder %s2301_s10, 0  ;;  %s104_s12 = int_to_ptr.vmem [resolvable:$true] %s103_s12 }
   0x4   : > { %p2305_p2 = pnand %p1922_p0, %p91_p1  ;;  %s2235_s17 = scalar_lea.hbm %s2909_s1, 1088 }
   0x5   : > { %p2236_p6 = scmp.ne.s32.totalorder %s2909_s1, %s2235_s17  ;;  %p2242_p10 = scmp.lt.u32.totalorder %s2235_s17, %s2909_s1 }
   0x6   : > { %s2913_s13 = scalar_select %p2305_p2, 1, 0 }
   0x7   : > { %p2206_p4 = pneg %p2305_p2 }
   0x9   : > { %p2314_p5 = pnand %p2911_p3, %p2206_p4 }
   0xb   : > { %p2237_p7 = pneg %p2314_p5 }
   0xd   : > { %p2238_p8 = pnand %p2237_p7, %p2236_p6 }
   0xf   : > { %p2239_p9 = pneg %p2238_p8 }
  0x11   : > { %p2244_p11 = pnand %p2242_p10, %p2239_p9 }
  0x13   : > { %2247 = shalt.err (!%p2244_p11)
}
  0x14   : > { %s2248_s22 = scalar_lea.vmem %s104_s12, 1088  ;;  %p2256_p1 = scmp.lt.s32.totalorder %s104_s12, %s104_s12 }
  0x15   : > { %p2249_p12 = scmp.ne.s32.totalorder %s104_s12, %s2248_s22  ;;  %p2257_p4 = scmp.lt.s32.totalorder %s2248_s22, %s2248_s22 }
  0x17   : > { %p2251_p13 = pnand %p2249_p12, %p2237_p7  ;;  %p2258_p3 = por %p2257_p4, %p2256_p1 }
  0x19   : > { %p2252_p0 = pneg %p2251_p13 }
  0x1b   : > { %p2259_p2 = pnand %p2258_p3, %p2252_p0 }
  0x1d   : > { %2262 = shalt.err (!%p2259_p2)
}
  0x1e   : > { %s2276_s23 = smov 64   ;;  %s2277_s24 = smov 4  }
  0x1f   : > { %2209 = dma.hbm_to_vmem [thread:$0]  (!%p2314_p5), %s2909_s1, 1088, %s104_s12, [#allocation3], %s2276_s23, %s2276_s23, %s2277_s24  }
  0x20   : > { %p2915_p6 = scmp.ne.s32.totalorder %s2913_s13, 0 }
  0x21   : > { %p2916_p8 = scmp.eq.s32.totalorder (!%p2915_p6), %s2301_s10, 0 }
  0x22   : > { %127 = sbr.rel (%p2915_p6) target bundleno = 629 (0x275), region = 28 }
  0x29   : > { %2268 = dma.done.wait (%p2916_p8), [#allocation3], 1088   ;;  %p2917_p7 = pmov %p2916_p8 }
  0x2a   : > { %p149_p2 = scmp.lt.s32.totalorder %s2301_s10, 1  ;;  %vm203_vm0 = vcmask 1043456   ;;  %v954_v6 = vld [vmem:[#allocation2 + $0x20] sm:$0xf]  ;;  %vm643_vm1 = vcmask 1045504   ;;  %s2278_s3 = smov 120  }
  0x2b   : > { %2270 = vsyncadd (%p2917_p7), [#allocation3], 4294966208  ;;  %vm1145_vm2 = vsmask.f32 5376  ;;  %2192 = vmatprep.subr.msk.bf16.mxu0 %vm203_vm0, %v954_v6  ;;  %v190_v9 = vld [vmem:[#allocation2 + $0x4] sm:$0xf] }
  0x2c   : > { %s2919_s10 = smov (!%p149_p2, %s2301_s10), 1  ;;  %vm172_vm3 = vcmask 64512   ;;  %2184 = vmatprep.subr.msk.bf16.mxu1 %vm203_vm0, %v190_v9  ;;  %vm349_vm4 = vsmask.f32 7424  ;;  %vm842_vm5 = vcmask 1044480   ;;  %vm444_vm6 = vcmask 1046528  }
  0x2d   : > { %s2201_s27 = smul.u32 40, %s2919_s10  ;;  %v1051_v46 = vld [vmem:[#allocation2 + $0x24] sm:$0xf]  ;;  %v968_v47 = vsel %vm203_vm0, %v954_v6, 0  ;;  %v2443_v48 = vld [vmem:[#allocation2] sm:$0xf] }
  0x2e   : > { %2067 = vmatpush3.bf16.msra.mxu0 %v968_v47  ;;  %v205_v52 = vsel %vm203_vm0, %v190_v9, 0  ;;  %v1063_v56 = vsel %vm203_vm0, %v1051_v46, 0  ;;  %v1144_v57 = vld [vmem:[#allocation2 + $0x28] sm:$0xf]  ;;  %vm1533_vm7 = vsmask.f32 4352 }
  0x2f   : > { %s153_s30 = scalar_lea.vmem %s2908_s0, %s2201_s27  ;;  %2019 = vmatpush3.bf16.msra.mxu1 %v205_v52  ;;  %2193 = vmatprep.subr.msk.bf16.mxu0 %vm203_vm0, %v1051_v46  ;;  %vm756_vm8 = vsmask.f32 6400  ;;  %v1439_v47 = vld [vmem:[#allocation2 + $0x34] sm:$0xf]  ;;  %v1532_v52 = vld [vmem:[#allocation2 + $0x38] sm:$0xf] }
  0x30   : > { %v2348_v0 = vld [vmem:[%s153_s30 + $0x10] sm:$0xff]  ;;  %v2350_v1 = vld [vmem:[%s153_s30 + $0x18] sm:$0xff]  ;;  %v2352_v2 = vld [vmem:[%s153_s30] sm:$0xff]  ;;  %2185 = vmatprep.subr.msk.bf16.mxu1 %vm203_vm0, %v2443_v48  ;;  %vm431_vm9 = vcmask 64513   ;;  %vm633_vm10 = vcmask 64514   ;;  %vm435_vm11 = vcmask 57344  }
  0x31   : > { %v2356_v3 = vpack.c.bf16 %v2350_v1, %v2348_v0  ;;  %v2358_v4 = vld [vmem:[%s153_s30 + $0x8] sm:$0xff]  ;;  %v2360_v5 = vld [vmem:[%s153_s30 + $0x20] sm:$0xff]  ;;  %vm832_vm12 = vcmask 64515   ;;  %vm637_vm13 = vcmask 58368   ;;  %vm1023_vm14 = vcmask 64516   ;;  %s1966_s4 = sshll.u32 %s2919_s10, 5 }
  0x32   : > { %v2364_v7 = vpack.c.bf16 %v2358_v4, %v2352_v2  ;;  %v2368_v8 = vpack.c.bf16 %v2360_v5, %v2360_v5  ;;  %vm836_vm15 = vcmask 59392   ;;  %s158_s7 = scalar_lea.vmem %s2910_s2, %s1966_s4 }
  0x33   : > { %195 = vrot.lane.b32.xlu1 %v2356_v3, %s2278_s3  ;;  %v957_v10 = vrot.slane %v2356_v3, 2  ;;  %v2375_v11 = vshll.u32 %v2356_v3, 16  ;;  %v2378_v12 = vshrl.u32 %v2356_v3, 16  ;;  %v1344_v38 = vrot.slane %v2356_v3, 3 }
  0x34   : > { %193 = vrot.lane.b32.xlu0 %v2364_v7, %s2278_s3  ;;  %v959_v13 = vrot.slane %v2368_v8, 2  ;;  %v956_v14 = vrot.slane %v2364_v7, 2  ;;  %v2386_v15 = vshll.u32 %v2368_v8, 16  ;;  %v2389_v16 = vshrl.u32 %v2368_v8, 16 }
  0x35   : > { %v1149_v17 = vrot.slane %v2378_v12, 2  ;;  %v1150_v18 = vrot.slane %v2375_v11, 3  ;;  %v2394_v19 = vshrl.u32 %v2364_v7, 16  ;;  %v2397_v20 = vshll.u32 %v2364_v7, 16 }
  0x36   : > { %v960_v21 = vsel %vm643_vm1, %v957_v10, %v959_v13  ;;  %v958_v22 = vsel %vm643_vm1, %v956_v14, %v957_v10  ;;  %v1153_v23 = vrot.slane %v2389_v16, 2  ;;  %v1154_v24 = vrot.slane %v2386_v15, 3 }
  0x37   : > { %1054 = vrot.lane.b32.xlu1 %v960_v21, %s2278_s3  ;;  %v1151_v25 = vor.u32 %v1150_v18, %v1149_v17  ;;  %v1146_v26 = vrot.slane %v2394_v19, 2  ;;  %v1147_v27 = vrot.slane %v2397_v20, 3  ;;  %v358_v28 = vrot.slane %v2375_v11, 1  ;;  %2068 = vmatprep.mubr.msk.bf16.mxu0 %vm172_vm3, %v958_v22 }
  0x38   : > { %1052 = vrot.lane.b32.xlu0 %v958_v22, %s2278_s3  ;;  %v1155_v29 = vor.u32 %v1154_v24, %v1153_v23  ;;  %v366_v30 = vrot.slane %v2386_v15, 1  ;;  %v354_v31 = vrot.slane %v2397_v20, 1  ;;  %v1346_v39 = vrot.slane %v2368_v8, 3  ;;  %2069 = vmatmul.mubr.msk.bf16.vlgmr.msra.gmra.mrb[0].mxu0 %vm172_vm3, %v960_v21 }
  0x39   : > { %v1148_v32 = vor.u32 %v1147_v27, %v1146_v26  ;;  %v362_v33 = vor.u32 %v2378_v12, %v358_v28  ;;  %v1343_v41 = vrot.slane %v2364_v7, 3  ;;  %v566_v42 = vrot.slane %v2364_v7, 1  ;;  %2073 = vmatpush3.bf16.msra.mxu0 %v1063_v56 }
  0x3a   : > { %v2413_v34 = vsel %vm1145_vm2, %v1151_v25, %v1155_v29  ;;  %v355_v35 = vor.u32 %v354_v31, %v2394_v19  ;;  %v567_v43 = vrot.slane %v2356_v3, 1  ;;  %v2437_v44 = vsel %vm842_vm5, %v1344_v38, %v1346_v39  ;;  %2194 = vmatprep.subr.msk.bf16.mxu0 %vm203_vm0, %v1144_v57  ;;  %v348_v31 = vld [vmem:[#allocation2 + $0x8] sm:$0xf] }
  0x3b   : > { %1251 = vrot.lane.b32.xlu1 %v2413_v34, %s2278_s3  ;;  %v2419_v36 = vsel %vm1145_vm2, %v1148_v32, %v1151_v25  ;;  %v2423_v37 = vsel %vm349_vm4, %v362_v33, %v366_v30  ;;  %v2440_v45 = vsel %vm842_vm5, %v1343_v41, %v1344_v38  ;;  %v569_v50 = vrot.slane %v2368_v8, 1  ;;  %v1248_v38 = vld [vmem:[#allocation2 + $0x2c] sm:$0xf] }
  0x3c   : > { %1249 = vrot.lane.b32.xlu0 %v2419_v36, %s2278_s3  ;;  %v2427_v40 = vsel %vm349_vm4, %v355_v35, %v358_v28  ;;  %v2448_v49 = vsel %vm444_vm6, %v566_v42, %v567_v43  ;;  %v1534_v51 = vrot.slane %v2394_v19, 3  ;;  %v1535_v53 = vrot.slane %v2397_v20, 4  ;;  %v463_v41 = vld [vmem:[#allocation2 + $0xc] sm:$0xf]  ;;  %v1341_v42 = vld [vmem:[#allocation2 + $0x30] sm:$0xf] }
  0x3d   : > { %v1537_v54 = vrot.slane %v2378_v12, 3  ;;  %v1538_v55 = vrot.slane %v2375_v11, 4  ;;  %v2466_v58 = vsel %vm444_vm6, %v567_v43, %v569_v50  ;;  %v1541_v61 = vrot.slane %v2389_v16, 3  ;;  %v662_v50 = vld [vmem:[#allocation2 + $0x14] sm:$0xf] }
  0x3e   : > { %v1536_v59 = vor.u32 %v1535_v53, %v1534_v51  ;;  %v1542_v62 = vrot.slane %v2386_v15, 4  ;;  %v757_v63 = vrot.slane %v2394_v19, 1  ;;  %v758_v6 = vrot.slane %v2397_v20, 2 }
  0x3f   : > { %466 = vrot.lane.b32.xlu1 %v2423_v37, %s2278_s3  ;;  %v1539_v60 = vor.u32 %v1538_v55, %v1537_v54  ;;  %v760_v10 = vrot.slane %v2378_v12, 1  ;;  %v761_v13 = vrot.slane %v2375_v11, 2  ;;  %v766_v14 = vrot.slane %v2389_v16, 1  ;;  %v755_v55 = vld [vmem:[#allocation2 + $0x18] sm:$0xf] }
  0x40   : > { %464 = vrot.lane.b32.xlu0 %v2427_v40, %s2278_s3  ;;  %v1543_v9 = vor.u32 %v1542_v62, %v1541_v61  ;;  %v759_v18 = vor.u32 %v758_v6, %v757_v63  ;;  %v767_v19 = vrot.slane %v2386_v15, 2  ;;  %v2497_v16 = vmul.f32 %v2352_v2, %v2352_v2  ;;  %v1731_v62 = vld [vmem:[#allocation2 + $0x40] sm:$0xf] }
  0x41   : > { %v2475_v8 = vsel %vm1533_vm7, %v1536_v59, %v1539_v60  ;;  %v762_v21 = vor.u32 %v761_v13, %v760_v10  ;;  %v170_v22 = vmul.f32 %v2348_v0, %v2348_v0  ;;  %v171_v24 = vmul.f32 %v2350_v1, %v2350_v1 }
  0x42   : > { %v2482_v17 = vsel %vm1533_vm7, %v1539_v60, %v1543_v9  ;;  %v768_v12 = vor.u32 %v767_v19, %v766_v14  ;;  %v173_v15 = vsel %vm172_vm3, %v2497_v16, 0.0  ;;  %v169_v2 = vmul.f32 %v2358_v4, %v2358_v4 }
  0x43   : > { %1442 = vrot.lane.b32.xlu1 %v2437_v44, %s2278_s3  ;;  %v2487_v20 = vsel %vm756_vm8, %v759_v18, %v762_v21  ;;  %v179_v23 = vsel %vm172_vm3, %v170_v22, 0.0  ;;  %v182_v25 = vsel %vm172_vm3, %v171_v24, 0.0  ;;  %v2515_v27 = vmul.f32 %v2360_v5, %v2360_v5 }
  0x44   : > { %1440 = vrot.lane.b32.xlu0 %v2440_v45, %s2278_s3  ;;  %v2491_v11 = vsel %vm756_vm8, %v762_v21, %v768_v12  ;;  %v176_v26 = vsel %vm172_vm3, %v169_v2, 0.0  ;;  %v263_v30 = vsel %vm203_vm0, %v2443_v48, 0  ;;  %v1164_v35 = vsel %vm203_vm0, %v1144_v57, 0 }
  0x45   : > { %v375_v39 = vsel %vm203_vm0, %v348_v31, 0  ;;  %v1451_v51 = vsel %vm203_vm0, %v1439_v47, 0  ;;  %v674_v54 = vsel %vm203_vm0, %v662_v50, 0  ;;  %v777_v59 = vsel %vm203_vm0, %v755_v55, 0 }
  0x46   : > { %v1728_v10 = vpack.c.bf16 %v2348_v0, %v2358_v4  ;;  %v1739_v13 = vsel %vm203_vm0, %v1731_v62, 0  ;;  %v1729_v19 = vpack.c.bf16 %v2360_v5, %v2350_v1  ;;  %v634_v5 = vsel %vm633_vm10, %v2497_v16, 0.0 }
  0x47   : > { %663 = vrot.lane.b32.xlu1 %v2448_v49, %s2278_s3  ;;  %vm1219_vm2 = vcmask 64517   ;;  %vm1027_vm4 = vcmask 60416   ;;  %vm1410_vm7 = vcmask 64518   ;;  %vm1223_vm8 = vcmask 61440  }
  0x4b   : > { %665 = vrot.lane.b32.xlu1 %v2466_v58, %s2278_s3 }
  0x4f   : > { %1637 = vrot.lane.b32.xlu1 %v2475_v8, %s2278_s3 }
  0x53   : > { %1639 = vrot.lane.b32.xlu1 %v2482_v17, %s2278_s3 }
  0x57   : > { %862 = vrot.lane.b32.xlu1 %v2487_v20, %s2278_s3 }
  0x5b   : > { %864 = vrot.lane.b32.xlu1 %v2491_v11, %s2278_s3 }
  0x63   : > { %174 = vadd.xlane.f32.xlu0 %v173_v15  ;;  %v432_v15 = vsel %vm431_vm9, %v2497_v16, 0.0 }
  0x67   : > { %180 = vadd.xlane.f32.xlu0 %v179_v23 }
  0x6b   : > { %183 = vadd.xlane.f32.xlu0 %v182_v25  ;;  %v436_v25 = vsel %vm435_vm11, %v2515_v27, 0.0 }
  0x7f   : > { %177 = vadd.xlane.f32.xlu1 %v176_v26 }
  0x81   : > { %318 = vrot.lane.b32.xlu0 %v2497_v16, %s2278_s3 }
  0x85   : > { %322 = vrot.lane.b32.xlu0 %v170_v22, %s2278_s3 }
  0x89   : > { %324 = vrot.lane.b32.xlu0 %v171_v24, %s2278_s3 }
  0x8d   : > { %531 = vrot.lane.b32.xlu0 %v2515_v27, %s2278_s3 }
  0x90   : > { %320 = vrot.lane.b32.xlu1 %v169_v2, %s2278_s3 }
  0xa5   : > { %v196_v28 = vpop.permute.xlu1 %195 }
  0xa6   : > { %v194_v29 = vpop.permute.xlu0 %193 }
  0xa7   : > { %2020 = vmatprep.mubr.msk.bf16.mxu1 %vm172_vm3, %v194_v29 }
  0xa8   : > { %2021 = vmatmul.mubr.msk.bf16.vlgmr.msra.gmra.mrb[0].mxu1 %vm172_vm3, %v196_v28  ;;  %v833_v28 = vsel %vm832_vm12, %v2497_v16, 0.0 }
  0xa9   : > { %v1055_v32 = vpop.permute.xlu1 %1054  ;;  %2025 = vmatpush3.bf16.msra.mxu1 %v263_v30  ;;  %2026 = vmatprep.mubr.msk.bf16.mxu1 %vm172_vm3, %v2364_v7  ;;  %v1260_v7 = vsel %vm203_vm0, %v1248_v38, 0  ;;  %v638_v30 = vsel %vm637_vm13, %v2515_v27, 0.0 }
  0xaa   : > { %v1053_v33 = vpop.permute.xlu0 %1052  ;;  %2186 = vmatprep.subr.msk.bf16.mxu1 %vm203_vm0, %v348_v31 }
  0xab   : > { %2074 = vmatprep.mubr.msk.bf16.mxu0 %vm172_vm3, %v1053_v33 }
  0xac   : > { %2075 = vmatmul.mubr.msk.bf16.vlgmr.msra.gmra.mrb[0].mxu0 %vm172_vm3, %v1055_v32  ;;  %v1024_v32 = vsel %vm1023_vm14, %v2497_v16, 0.0 }
  0xad   : > { %2079 = vmatpush3.bf16.msra.mxu0 %v1164_v35  ;;  %2080 = vmatprep.mubr.msk.bf16.mxu0 %vm172_vm3, %v2419_v36  ;;  %v563_v36 = vld [vmem:[#allocation2 + $0x10] sm:$0xf]  ;;  %v837_v35 = vsel %vm836_vm15, %v2515_v27, 0.0 }
  0xae   : > { %2195 = vmatprep.subr.msk.bf16.mxu0 %vm203_vm0, %v1248_v38  ;;  %v1250_v43 = vpop.permute.xlu0 %1249  ;;  %v578_v48 = vsel %vm203_vm0, %v563_v36, 0 }
  0xb2   : > { %v465_v46 = vpop.permute.xlu0 %464 }
  0xb4   : > { %2027 = vmatmul.mubr.msk.bf16.vlgmr.msra.gmra.mrb[0].mxu1 %vm172_vm3, %v2356_v3  ;;  %v475_v3 = vsel %vm203_vm0, %v463_v41, 0 }
  0xb5   : > { %2031 = vmatpush3.bf16.msra.mxu1 %v375_v39  ;;  %2032 = vmatprep.mubr.msk.bf16.mxu1 %vm172_vm3, %v2427_v40  ;;  %v1355_v40 = vsel %vm203_vm0, %v1341_v42, 0  ;;  %v1220_v39 = vsel %vm1219_vm2, %v2497_v16, 0.0 }
  0xb6   : > { %2187 = vmatprep.subr.msk.bf16.mxu1 %vm203_vm0, %v463_v41  ;;  %v1441_v53 = vpop.permute.xlu0 %1440 }
  0xb8   : > { %2081 = vmatmul.mubr.msk.bf16.vlgmr.msra.gmra.mrb[0].mxu0 %vm172_vm3, %v2413_v34  ;;  %v1252_v34 = vpop.permute.xlu1 %1251 }
  0xb9   : > { %2086 = vmatprep.mubr.msk.bf16.mxu0 %vm172_vm3, %v1250_v43  ;;  %2085 = vmatpush3.bf16.msra.mxu0 %v1260_v7  ;;  %v1028_v7 = vsel %vm1027_vm4, %v2515_v27, 0.0  ;;  %v1411_v43 = vsel %vm1410_vm7, %v2497_v16, 0.0 }
  0xba   : > { %2196 = vmatprep.subr.msk.bf16.mxu0 %vm203_vm0, %v1341_v42 }
  0xc0   : > { %2033 = vmatmul.mubr.msk.bf16.vlgmr.msra.gmra.mrb[0].mxu1 %vm172_vm3, %v2423_v37  ;;  %v467_v37 = vpop.permute.xlu1 %466 }
  0xc1   : > { %2038 = vmatprep.mubr.msk.bf16.mxu1 %vm172_vm3, %v465_v46  ;;  %2037 = vmatpush3.bf16.msra.mxu1 %v475_v3 }
  0xc2   : > { %2188 = vmatprep.subr.msk.bf16.mxu1 %vm203_vm0, %v563_v36  ;;  %v1224_v36 = vsel %vm1223_vm8, %v2515_v27, 0.0 }
  0xc4   : > { %2087 = vmatmul.mubr.msk.bf16.vlgmr.msra.gmra.mrb[0].mxu0 %vm172_vm3, %v1252_v34 }
  0xc5   : > { %2091 = vmatpush3.bf16.msra.mxu0 %v1355_v40  ;;  %2092 = vmatprep.mubr.msk.bf16.mxu0 %vm172_vm3, %v2440_v45  ;;  %v1443_v45 = vpop.permute.xlu1 %1442 }
  0xc6   : > { %2197 = vmatprep.subr.msk.bf16.mxu0 %vm203_vm0, %v1439_v47 }
  0xc9   : > { %v664_v56 = vpop.permute.xlu1 %663 }
  0xcc   : > { %2039 = vmatmul.mubr.msk.bf16.vlgmr.msra.gmra.mrb[0].mxu1 %vm172_vm3, %v467_v37  ;;  %v1794_v37 = vsel %vm172_vm3, %v2515_v27, 0.0 }
  0xcd   : > { %2043 = vmatpush3.bf16.msra.mxu1 %v578_v48  ;;  %2044 = vmatprep.mubr.msk.bf16.mxu1 %vm172_vm3, %v2448_v49  ;;  %v1552_v49 = vsel %vm203_vm0, %v1532_v52, 0  ;;  %v666_v57 = vpop.permute.xlu1 %665 }
  0xce   : > { %2189 = vmatprep.subr.msk.bf16.mxu1 %vm203_vm0, %v662_v50 }
  0xd0   : > { %2093 = vmatmul.mubr.msk.bf16.vlgmr.msra.gmra.mrb[0].mxu0 %vm172_vm3, %v2437_v44  ;;  %v1636_v44 = vld [vmem:[#allocation2 + $0x3c] sm:$0xf] }
  0xd1   : > { %2098 = vmatprep.mubr.msk.bf16.mxu0 %vm172_vm3, %v1441_v53  ;;  %2097 = vmatpush3.bf16.msra.mxu0 %v1451_v51  ;;  %v1638_v60 = vpop.permute.xlu1 %1637  ;;  %v1648_v61 = vsel %vm203_vm0, %v1636_v44, 0 }
  0xd2   : > { %2198 = vmatprep.subr.msk.bf16.mxu0 %vm203_vm0, %v1532_v52  ;;  %v2279_v52 = vmov 0  }
  0xd3   : > { %2226 = vset.pattern.permute.xlu0 %v2279_v52  ;;  %2225 = vset.pattern.permute.xlu1 %v2279_v52 }
  0xd5   : > { %v1640_v63 = vpop.permute.xlu1 %1639 }
  0xd8   : > { %2045 = vmatmul.mubr.msk.bf16.vlgmr.msra.gmra.mrb[0].mxu1 %vm172_vm3, %v2466_v58  ;;  %v861_v58 = vld [vmem:[#allocation2 + $0x1c] sm:$0xf] }
  0xd9   : > { %2050 = vmatprep.mubr.msk.bf16.mxu1 %vm172_vm3, %v664_v56  ;;  %2049 = vmatpush3.bf16.msra.mxu1 %v674_v54  ;;  %v873_v6 = vsel %vm203_vm0, %v861_v58, 0 }
  0xda   : > { %2190 = vmatprep.subr.msk.bf16.mxu1 %vm203_vm0, %v755_v55 }
  0xdc   : > { %2099 = vmatmul.mubr.msk.bf16.vlgmr.msra.gmra.mrb[0].mxu0 %vm172_vm3, %v1443_v45 }
  0xdd   : > { %2103 = vmatpush3.bf16.msra.mxu0 %v1552_v49  ;;  %2104 = vmatprep.mubr.msk.bf16.mxu0 %vm172_vm3, %v2475_v8  ;;  %v863_v8 = vpop.permute.xlu1 %862 }
  0xde   : > { %2199 = vmatprep.subr.msk.bf16.mxu0 %vm203_vm0, %v1636_v44 }
  0xe1   : > { %v865_v18 = vpop.permute.xlu1 %864 }
  0xe4   : > { %2051 = vmatmul.mubr.msk.bf16.vlgmr.msra.gmra.mrb[0].mxu1 %vm172_vm3, %v666_v57 }
  0xe5   : > { %2055 = vmatpush3.bf16.msra.mxu1 %v777_v59  ;;  %2056 = vmatprep.mubr.msk.bf16.mxu1 %vm172_vm3, %v2487_v20 }
  0xe6   : > { %2191 = vmatprep.subr.msk.bf16.mxu1 %vm203_vm0, %v861_v58 }
  0xe8   : > { %2105 = vmatmul.mubr.msk.bf16.vlgmr.msra.gmra.mrb[0].mxu0 %vm172_vm3, %v2482_v17 }
  0xe9   : > { %2110 = vmatprep.mubr.msk.bf16.mxu0 %vm172_vm3, %v1638_v60  ;;  %2109 = vmatpush3.bf16.msra.mxu0 %v1648_v61 }
  0xea   : > { %2200 = vmatprep.subr.msk.bf16.mxu0 %vm203_vm0, %v1731_v62 }
  0xf0   : > { %v2586_v9 = vpop.xlane.xlu0 %174  ;;  %2057 = vmatmul.mubr.msk.bf16.vlgmr.msra.gmra.mrb[0].mxu1 %vm172_vm3, %v2491_v11 }
  0xf1   : > { %2062 = vmatprep.mubr.msk.bf16.mxu1 %vm172_vm3, %v863_v8  ;;  %2061 = vmatpush3.bf16.msra.mxu1 %v873_v6 }
  0xf4   : > { %2111 = vmatmul.mubr.msk.bf16.vlgmr.msra.gmra.mrb[0].mxu0 %vm172_vm3, %v1640_v63  ;;  %v2595_v14 = vpop.xlane.xlu0 %180 }
  0xf5   : > { %2115 = vmatpush3.bf16.msra.mxu0 %v1739_v13  ;;  %2116 = vmatprep.mubr.msk.bf16.mxu0 %vm172_vm3, %v1728_v10  ;;  %v448_v56 = vrot.slane %v2595_v14, 1  ;;  %v647_v61 = vrot.slane %v2595_v14, 2 }
  0xf8   : > { %v2598_v17 = vpop.xlane.xlu0 %183 }
  0xf9   : > { %v450_v49 = vrot.slane %v2598_v17, 1  ;;  %v649_v63 = vrot.slane %v2598_v17, 2  ;;  %v1038_v52 = vrot.slane %v2598_v17, 4 }
  0xfb   : > { %v451_v59 = vsel %vm444_vm6, %v448_v56, %v450_v49 }
  0xfc   : > { %v2600_v21 = vpop.permute.xlu0 %318  ;;  %2063 = vmatmul.mubr.msk.bf16.vlgmr.msra.gmra.mrb[0].mxu1 %vm172_vm3, %v865_v18  ;;  %v650_v18 = vsel %vm643_vm1, %v647_v61, %v649_v63 }
  0xfd   : > { %v330_v0 = vsel %vm172_vm3, %v2600_v21, 0.0  ;;  %v534_v1 = vsel %vm431_vm9, %v2600_v21, 0.0  ;;  %v729_v26 = vsel %vm633_vm10, %v2600_v21, 0.0  ;;  %v928_v31 = vsel %vm832_vm12, %v2600_v21, 0.0 }
  0xfe   : > { %331 = vadd.xlane.f32.xlu0 %v330_v0  ;;  %v1118_v38 = vsel %vm1023_vm14, %v2600_v21, 0.0  ;;  %v1315_v42 = vsel %vm1219_vm2, %v2600_v21, 0.0  ;;  %v1506_v46 = vsel %vm1410_vm7, %v2600_v21, 0.0  ;;  %vm1607_vm9 = vcmask 64519  }
  0xff   : > { %v1608_v40 = vsel %vm1607_vm9, %v2497_v16, 0.0  ;;  %vm1414_vm10 = vcmask 62464   ;;  %v1703_v48 = vsel %vm1607_vm9, %v2600_v21, 0.0  ;;  %vm1420_vm12 = vcmask 1041408  }
 0x100   : > { %2117 = vmatmul.mubr.msk.bf16.vlgmr.msra.gmra.mrb[0].mxu0 %vm172_vm3, %v1729_v19  ;;  %v323_v4 = vpop.permute.xlu0 %322  ;;  %v1415_v47 = vsel %vm1414_vm10, %v2515_v27, 0.0 }
 0x101   : > { %v336_v20 = vsel %vm172_vm3, %v323_v4, 0.0 }
 0x102   : > { %337 = vadd.xlane.f32.xlu0 %v336_v20 }
 0x104   : > { %v325_v12 = vpop.permute.xlu0 %324 }
 0x105   : > { %v339_v11 = vsel %vm172_vm3, %v325_v12, 0.0 }
 0x106   : > { %340 = vadd.xlane.f32.xlu0 %v339_v11 }
 0x108   : > { %v532_v2 = vpop.permute.xlu0 %531 }
 0x109   : > { %v537_v29 = vsel %vm435_vm11, %v532_v2, 0.0  ;;  %v732_v33 = vsel %vm637_vm13, %v532_v2, 0.0  ;;  %v931_v41 = vsel %vm836_vm15, %v532_v2, 0.0  ;;  %v1121_v3 = vsel %vm1027_vm4, %v532_v2, 0.0 }
 0x10a   : > { %433 = vadd.xlane.f32.xlu0 %v432_v15  ;;  %v1318_v34 = vsel %vm1223_vm8, %v532_v2, 0.0  ;;  %v1509_v50 = vsel %vm1414_vm10, %v532_v2, 0.0  ;;  %vm1611_vm11 = vcmask 63488   ;;  %vm1617_vm13 = vcmask 1040384  }
 0x10b   : > { %v1612_v51 = vsel %vm1611_vm11, %v2515_v27, 0.0  ;;  %v1706_v16 = vsel %vm1611_vm11, %v532_v2, 0.0  ;;  %v848_v2 = vrot.slane %v2598_v17, 3 }
 0x10c   : > { %v2611_v22 = vpop.xlane.xlu1 %177 }
 0x10d   : > { %v446_v6 = vrot.slane %v2611_v22, 1  ;;  %v645_v12 = vrot.slane %v2611_v22, 2 }
 0x10e   : > { %535 = vadd.xlane.f32.xlu0 %v534_v1 }
 0x10f   : > { %v449_v20 = vsel %vm444_vm6, %v446_v6, %v448_v56 }
 0x110   : > { %v321_v23 = vpop.permute.xlu1 %320 }
 0x111   : > { %v333_v24 = vsel %vm172_vm3, %v321_v23, 0.0  ;;  %vm1229_vm3 = vcmask 1042432  }
 0x112   : > { %635 = vadd.xlane.f32.xlu0 %v634_v5  ;;  %334 = vadd.xlane.f32.xlu1 %v333_v24 }
 0x116   : > { %730 = vadd.xlane.f32.xlu0 %v729_v26  ;;  %437 = vadd.xlane.f32.xlu1 %v436_v25  ;;  %v846_v25 = vrot.slane %v2595_v14, 3 }
 0x11a   : > { %834 = vadd.xlane.f32.xlu0 %v833_v28  ;;  %538 = vadd.xlane.f32.xlu1 %v537_v29  ;;  %v648_v29 = vsel %vm643_vm1, %v645_v12, %v647_v61 }
 0x11e   : > { %929 = vadd.xlane.f32.xlu0 %v928_v31  ;;  %639 = vadd.xlane.f32.xlu1 %v638_v30  ;;  %v844_v30 = vrot.slane %v2611_v22, 3 }
 0x122   : > { %1025 = vadd.xlane.f32.xlu0 %v1024_v32  ;;  %733 = vadd.xlane.f32.xlu1 %v732_v33 }
 0x126   : > { %1119 = vadd.xlane.f32.xlu0 %v1118_v38  ;;  %838 = vadd.xlane.f32.xlu1 %v837_v35 }
 0x12a   : > { %1221 = vadd.xlane.f32.xlu0 %v1220_v39  ;;  %932 = vadd.xlane.f32.xlu1 %v931_v41  ;;  %v849_v41 = vsel %vm842_vm5, %v846_v25, %v848_v2 }
 0x12e   : > { %1316 = vadd.xlane.f32.xlu0 %v1315_v42  ;;  %1029 = vadd.xlane.f32.xlu1 %v1028_v7 }
 0x132   : > { %1412 = vadd.xlane.f32.xlu0 %v1411_v43  ;;  %1122 = vadd.xlane.f32.xlu1 %v1121_v3 }
 0x136   : > { %1507 = vadd.xlane.f32.xlu0 %v1506_v46  ;;  %1225 = vadd.xlane.f32.xlu1 %v1224_v36  ;;  %v847_v36 = vsel %vm842_vm5, %v844_v30, %v846_v25  ;;  %v1034_v46 = vrot.slane %v2611_v22, 4 }
 0x13a   : > { %1609 = vadd.xlane.f32.xlu0 %v1608_v40  ;;  %1319 = vadd.xlane.f32.xlu1 %v1318_v34 }
 0x13e   : > { %1704 = vadd.xlane.f32.xlu0 %v1703_v48  ;;  %1416 = vadd.xlane.f32.xlu1 %v1415_v47  ;;  %v1036_v47 = vrot.slane %v2595_v14, 4 }
 0x142   : > { %1510 = vadd.xlane.f32.xlu1 %v1509_v50  ;;  %1795 = vadd.xlane.f32.xlu0 %v1794_v37 }
 0x146   : > { %1613 = vadd.xlane.f32.xlu1 %v1612_v51 }
 0x14a   : > { %1707 = vadd.xlane.f32.xlu1 %v1706_v16  ;;  %v1231_v16 = vrot.slane %v2611_v22, 5 }
 0x18b   : > { %v2636_v53 = vpop.xlane.xlu0 %331 }
 0x18f   : > { %v2638_v45 = vpop.xlane.xlu0 %337 }
 0x190   : > { %v548_v55 = vrot.slane %v2638_v45, 1  ;;  %v344_v57 = vadd.f32 %v2638_v45, %v2595_v14  ;;  %v740_v0 = vrot.slane %v2638_v45, 2  ;;  %v939_v43 = vrot.slane %v2638_v45, 3 }
 0x191   : > { %v1129_v61 = vrot.slane %v2638_v45, 4 }
 0x192   : > { %v460_v62 = vadd.f32 %v451_v59, %v344_v57  ;;  %v342_v59 = vadd.f32 %v2636_v53, %v2586_v9 }
 0x193   : > { %v2640_v54 = vpop.xlane.xlu0 %340 }
 0x194   : > { %v550_v27 = vrot.slane %v2640_v54, 1  ;;  %v742_v4 = vrot.slane %v2640_v54, 2  ;;  %v941_v3 = vrot.slane %v2640_v54, 3 }
 0x196   : > { %v551_v58 = vsel %vm444_vm6, %v548_v55, %v550_v27  ;;  %v743_v28 = vsel %vm643_vm1, %v740_v0, %v742_v4  ;;  %v942_v57 = vsel %vm842_vm5, %v939_v43, %v941_v3 }
 0x197   : > { %v434_v44 = vpop.xlane.xlu0 %433  ;;  %v560_v8 = vadd.f32 %v551_v58, %v460_v62  ;;  %v1037_v58 = vsel %vm203_vm0, %v1034_v46, %v1036_v47 }
 0x198   : > { %v445_v7 = vrot.slane %v434_v44, 1 }
 0x199   : > { %v659_v11 = vadd.f32 %v650_v18, %v560_v8 }
 0x19b   : > { %v536_v60 = vpop.xlane.xlu0 %535  ;;  %v752_v31 = vadd.f32 %v743_v28, %v659_v11  ;;  %v1326_v28 = vrot.slane %v2638_v45, 5 }
 0x19c   : > { %v545_v56 = vrot.slane %v536_v60, 1  ;;  %v1233_v60 = vrot.slane %v2595_v14, 5 }
 0x19d   : > { %v858_v40 = vadd.f32 %v849_v41, %v752_v31 }
 0x19f   : > { %v2657_v10 = vpop.xlane.xlu0 %635  ;;  %v2659_v13 = vpop.xlane.xlu1 %334  ;;  %v951_v62 = vadd.f32 %v942_v57, %v858_v40 }
 0x1a0   : > { %v343_v21 = vadd.f32 %v2659_v13, %v2611_v22  ;;  %v546_v19 = vrot.slane %v2659_v13, 1  ;;  %v738_v5 = vrot.slane %v2659_v13, 2  ;;  %v937_v39 = vrot.slane %v2659_v13, 3 }
 0x1a1   : > { %v1127_v51 = vrot.slane %v2659_v13, 4  ;;  %v1324_v53 = vrot.slane %v2659_v13, 5 }
 0x1a2   : > { %v459_v15 = vadd.f32 %v449_v20, %v343_v21  ;;  %v549_v1 = vsel %vm444_vm6, %v546_v19, %v548_v55  ;;  %v741_v33 = vsel %vm643_vm1, %v738_v5, %v740_v0  ;;  %v940_v48 = vsel %vm842_vm5, %v937_v39, %v939_v43 }
 0x1a3   : > { %v2673_v23 = vpop.xlane.xlu0 %730  ;;  %v2675_v24 = vpop.xlane.xlu1 %437  ;;  %v447_v55 = vsel %vm444_vm6, %v445_v7, %v446_v6  ;;  %v547_v8 = vsel %vm444_vm6, %v545_v56, %v546_v19  ;;  %v1130_v9 = vsel %vm203_vm0, %v1127_v51, %v1129_v61  ;;  %v1039_v20 = vsel %vm203_vm0, %v1036_v47, %v1038_v52 }
 0x1a4   : > { %v559_v26 = vadd.f32 %v549_v1, %v459_v15  ;;  %v458_v6 = vadd.f32 %v447_v55, %v342_v59  ;;  %v644_v19 = vrot.slane %v2657_v10, 2  ;;  %v1422_v15 = vrot.slane %v2611_v22, 6 }
 0x1a5   : > { %v1131_v1 = vrot.slane %v2640_v54, 4  ;;  %v737_v31 = vrot.slane %v2673_v23, 2  ;;  %v1327_v10 = vsel %vm1229_vm3, %v1324_v53, %v1326_v28  ;;  %v1424_v7 = vrot.slane %v2595_v14, 6 }
 0x1a6   : > { %v658_v32 = vadd.f32 %v648_v29, %v559_v26  ;;  %v558_v25 = vadd.f32 %v547_v8, %v458_v6  ;;  %v1234_v26 = vsel %vm1229_vm3, %v1231_v16, %v1233_v60  ;;  %v1048_v29 = vadd.f32 %v1039_v20, %v951_v62 }
 0x1a7   : > { %v2689_v35 = vpop.xlane.xlu0 %834  ;;  %v2691_v38 = vpop.xlane.xlu1 %538  ;;  %v1235_v43 = vrot.slane %v2598_v17, 5  ;;  %v1132_v40 = vsel %vm203_vm0, %v1129_v61, %v1131_v1  ;;  %v1517_v56 = vrot.slane %v2638_v45, 6  ;;  %v1621_v62 = vrot.slane %v2595_v14, 7 }
 0x1a8   : > { %v751_v42 = vadd.f32 %v741_v33, %v658_v32  ;;  %v1141_v55 = vadd.f32 %v1132_v40, %v1048_v29  ;;  %v1712_v8 = vrot.slane %v2659_v13, 7 }
 0x1aa   : > { %v857_v34 = vadd.f32 %v847_v36, %v751_v42  ;;  %v1515_v42 = vrot.slane %v2659_v13, 6  ;;  %v646_v36 = vsel %vm643_vm1, %v644_v19, %v645_v12  ;;  %v843_v12 = vrot.slane %v2689_v35, 3 }
 0x1ab   : > { %v2707_v37 = vpop.xlane.xlu0 %929  ;;  %v2709_v50 = vpop.xlane.xlu1 %639  ;;  %v657_v47 = vadd.f32 %v646_v36, %v558_v25  ;;  %v1236_v35 = vsel %vm1229_vm3, %v1233_v60, %v1235_v43  ;;  %v1714_v25 = vrot.slane %v2638_v45, 7 }
 0x1ac   : > { %v950_v44 = vadd.f32 %v940_v48, %v857_v34  ;;  %v1619_v34 = vrot.slane %v2611_v22, 7  ;;  %v1425_v48 = vsel %vm1420_vm12, %v1422_v15, %v1424_v7  ;;  %v1518_v61 = vsel %vm1420_vm12, %v1515_v42, %v1517_v56 }
 0x1ad   : > { %v936_v6 = vrot.slane %v2707_v37, 3  ;;  %v1245_v19 = vadd.f32 %v1236_v35, %v1141_v55  ;;  %v845_v37 = vsel %vm842_vm5, %v843_v12, %v844_v30  ;;  %v1715_v36 = vsel %vm1617_vm13, %v1712_v8, %v1714_v25 }
 0x1ae   : > { %v1047_v18 = vadd.f32 %v1037_v58, %v950_v44  ;;  %v739_v44 = vsel %vm643_vm1, %v737_v31, %v738_v5  ;;  %v552_v31 = vrot.slane %v2691_v38, 1  ;;  %v651_v40 = vrot.slane %v2709_v50, 2 }
 0x1af   : > { %v2726_v21 = vpop.xlane.xlu0 %1025  ;;  %v2728_v0 = vpop.xlane.xlu1 %733  ;;  %v750_v20 = vadd.f32 %v739_v44, %v657_v47  ;;  %v345_v44 = vadd.f32 %v2640_v54, %v2598_v17 }
 0x1b0   : > { %v1140_v11 = vadd.f32 %v1130_v9, %v1047_v18  ;;  %v1426_v18 = vrot.slane %v2598_v17, 6  ;;  %v1328_v9 = vrot.slane %v2640_v54, 5  ;;  %v1033_v60 = vrot.slane %v2726_v21, 4 }
 0x1b1   : > { %v856_v38 = vadd.f32 %v845_v37, %v750_v20  ;;  %v553_v50 = vsel %vm444_vm6, %v550_v27, %v552_v31  ;;  %v652_v35 = vsel %vm643_vm1, %v649_v63, %v651_v40  ;;  %v1623_v63 = vrot.slane %v2598_v17, 7 }
 0x1b2   : > { %v1244_v32 = vadd.f32 %v1234_v26, %v1140_v11  ;;  %v1622_v11 = vsel %vm1617_vm13, %v1619_v34, %v1621_v62  ;;  %v452_v26 = vrot.slane %v2675_v24, 1  ;;  %v938_v24 = vsel %vm842_vm5, %v936_v6, %v937_v39 }
 0x1b3   : > { %v1120_v33 = vpop.xlane.xlu0 %1119  ;;  %v2745_v41 = vpop.xlane.xlu1 %838  ;;  %v1329_v30 = vsel %vm1229_vm3, %v1326_v28, %v1328_v9  ;;  %v1035_v39 = vsel %vm203_vm0, %v1033_v60, %v1034_v46  ;;  %v949_v12 = vadd.f32 %v938_v24, %v856_v38 }
 0x1b4   : > { %v1337_v23 = vadd.f32 %v1327_v10, %v1244_v32  ;;  %v1338_v47 = vadd.f32 %v1329_v30, %v1245_v19  ;;  %v453_v55 = vsel %vm444_vm6, %v450_v49, %v452_v26  ;;  %v744_v49 = vrot.slane %v2728_v0, 2 }
 0x1b5   : > { %v1046_v20 = vadd.f32 %v1035_v39, %v949_v12  ;;  %v850_v19 = vrot.slane %v2745_v41, 3 }
 0x1b6   : > { %v1435_v57 = vadd.f32 %v1425_v48, %v1337_v23  ;;  %v1126_v23 = vrot.slane %v1120_v33, 4  ;;  %v1427_v48 = vsel %vm1420_vm12, %v1424_v7, %v1426_v18  ;;  %v745_v41 = vsel %vm643_vm1, %v742_v4, %v744_v49 }
 0x1b7   : > { %v1222_v59 = vpop.xlane.xlu0 %1221  ;;  %v2768_v58 = vpop.xlane.xlu1 %932  ;;  %v1436_v27 = vadd.f32 %v1427_v48, %v1338_v47  ;;  %v1716_v47 = vrot.slane %v2640_v54, 7 }
 0x1b8   : > { %v1528_v5 = vadd.f32 %v1518_v61, %v1435_v57  ;;  %v1230_v33 = vrot.slane %v1222_v59, 5  ;;  %v1519_v61 = vrot.slane %v2640_v54, 6  ;;  %v1128_v46 = vsel %vm203_vm0, %v1126_v23, %v1127_v51 }
 0x1b9   : > { %v1139_v37 = vadd.f32 %v1128_v46, %v1046_v20  ;;  %v943_v31 = vrot.slane %v2768_v58, 3 }
 0x1ba   : > { %v1632_v29 = vadd.f32 %v1622_v11, %v1528_v5  ;;  %v461_v5 = vadd.f32 %v453_v55, %v345_v44  ;;  %v1232_v11 = vsel %vm1229_vm3, %v1230_v33, %v1231_v16 }
 0x1bb   : > { %v1317_v32 = vpop.xlane.xlu0 %1316  ;;  %v2793_v10 = vpop.xlane.xlu1 %1029  ;;  %v1243_v24 = vadd.f32 %v1232_v11, %v1139_v37 }
 0x1bc   : > { %v1725_v21 = vadd.f32 %v1715_v36, %v1632_v29  ;;  %v1323_v59 = vrot.slane %v1317_v32, 5  ;;  %v561_v26 = vadd.f32 %v553_v50, %v461_v5  ;;  %v1520_v29 = vsel %vm1420_vm12, %v1517_v56, %v1519_v61 }
 0x1bd   : > { %v1529_v23 = vadd.f32 %v1520_v29, %v1436_v27  ;;  %v851_v56 = vsel %vm842_vm5, %v848_v2, %v850_v19  ;;  %v1040_v30 = vrot.slane %v2793_v10, 4  ;;  %v944_v2 = vsel %vm842_vm5, %v941_v3, %v943_v31 }
 0x1be   : > { %v1798_v28 = vadd.f32 %v1725_v21, %v2595_v14  ;;  %v1325_v16 = vsel %vm1229_vm3, %v1323_v59, %v1324_v53  ;;  %v660_v36 = vadd.f32 %v652_v35, %v561_v26  ;;  %v1624_v53 = vsel %vm1617_vm13, %v1621_v62, %v1623_v63 }
 0x1bf   : > { %v1413_v7 = vpop.xlane.xlu0 %1412  ;;  %v1123_v57 = vpop.xlane.xlu1 %1122  ;;  %v1336_v58 = vadd.f32 %v1325_v16, %v1243_v24  ;;  %v1633_v33 = vadd.f32 %v1624_v53, %v1529_v23  ;;  %v1041_v14 = vsel %vm203_vm0, %v1038_v52, %v1040_v30  ;;  %v1717_v52 = vsel %vm1617_vm13, %v1714_v25, %v1716_v47 }
 0x1c0   : > { %v1802_v6 = vadd.f32 1e-06, %v1798_v28  ;;  %v1421_v0 = vrot.slane %v1413_v7, 6  ;;  %v753_v21 = vadd.f32 %v745_v41, %v660_v36  ;;  %v1133_v10 = vrot.slane %v1123_v57, 4 }
 0x1c2   : > { %2227 = vrsqrt.f32 %v1802_v6  ;;  %v1423_v4 = vsel %vm1420_vm12, %v1421_v0, %v1422_v15  ;;  %v859_v55 = vadd.f32 %v851_v56, %v753_v21 }
 0x1c3   : > { %v1508_v51 = vpop.xlane.xlu0 %1507  ;;  %v1226_v60 = vpop.xlane.xlu1 %1225  ;;  %v1434_v39 = vadd.f32 %v1423_v4, %v1336_v58 }
 0x1c4   : > { %v1514_v32 = vrot.slane %v1508_v51, 6  ;;  %v1237_v62 = vrot.slane %v1226_v60, 5  ;;  %v952_v44 = vadd.f32 %v944_v2, %v859_v55 }
 0x1c6   : > { %v1516_v15 = vsel %vm1420_vm12, %v1514_v32, %v1515_v42  ;;  %v1134_v42 = vsel %vm203_vm0, %v1131_v1, %v1133_v10  ;;  %v1049_v46 = vadd.f32 %v1041_v14, %v952_v44  ;;  %v1238_v6 = vsel %vm1229_vm3, %v1235_v43, %v1237_v62 }
 0x1c7   : > { %v1610_v38 = vpop.xlane.xlu0 %1609  ;;  %v1320_v40 = vpop.xlane.xlu1 %1319  ;;  %v1527_v3 = vadd.f32 %v1516_v15, %v1434_v39 }
 0x1c8   : > { %v1618_v48 = vrot.slane %v1610_v38, 7  ;;  %v1330_v57 = vrot.slane %v1320_v40, 5  ;;  %v1142_v35 = vadd.f32 %v1134_v42, %v1049_v46 }
 0x1ca   : > { %v1620_v28 = vsel %vm1617_vm13, %v1618_v48, %v1619_v34  ;;  %v1726_v34 = vadd.f32 %v1717_v52, %v1633_v33  ;;  %v1331_v45 = vsel %vm1229_vm3, %v1328_v9, %v1330_v57  ;;  %v1246_v0 = vadd.f32 %v1238_v6, %v1142_v35 }
 0x1cb   : > { %v1705_v50 = vpop.xlane.xlu0 %1704  ;;  %v1417_v12 = vpop.xlane.xlu1 %1416  ;;  %v1631_v59 = vadd.f32 %v1620_v28, %v1527_v3 }
 0x1cc   : > { %v2228_v7 = vpop.eup %2227  ;;  %v1711_v49 = vrot.slane %v1705_v50, 7  ;;  %v1428_v5 = vrot.slane %v1417_v12, 6  ;;  %v1799_v43 = vadd.f32 %v1726_v34, %v2598_v17  ;;  %v1339_v51 = vadd.f32 %v1331_v45, %v1246_v0 }
 0x1cd   : > { %1820 = vperm.xlu0 %2226, %v2228_v7  }
 0x1ce   : > { %v1713_v1 = vsel %vm1617_vm13, %v1711_v49, %v1712_v8  ;;  %v1429_v13 = vsel %vm1420_vm12, %v1426_v18, %v1428_v5  ;;  %v1803_v23 = vadd.f32 1e-06, %v1799_v43 }
 0x1cf   : > { %v1724_v20 = vadd.f32 %v1713_v1, %v1631_v59  ;;  %v2064_v27 = vpop.f32.mrb[0].mxu1  ;;  %v1511_v19 = vpop.xlane.xlu1 %1510 }
 0x1d0   : > { %v1521_v25 = vrot.slane %v1511_v19, 6  ;;  %v909_v11 = vpop.f32.mrb[1].mxu1  ;;  %v1796_v53 = vpop.xlane.xlu0 %1795 }
 0x1d1   : > { %v1797_v26 = vadd.f32 %v1724_v20, %v2611_v22  ;;  %v2065_v37 = vpop.f32.mrb[2].mxu1  ;;  %v1437_v22 = vadd.f32 %v1429_v13, %v1339_v51 }
 0x1d2   : > { %v912_v8 = vpop.f32.mrb[3].mxu1  ;;  %v1522_v9 = vsel %vm1420_vm12, %v1519_v61, %v1521_v25 }
 0x1d3   : > { %v1801_v60 = vadd.f32 1e-06, %v1797_v26  ;;  %v2118_v29 = vpop.f32.mrb[0].mxu0  ;;  %v1614_v41 = vpop.xlane.xlu1 %1613  ;;  %v1530_v4 = vadd.f32 %v1522_v9, %v1437_v22 }
 0x1d4   : > { %v2120_v31 = vadd.f32 %v2118_v29, %v2064_v27  ;;  %v1775_v16 = vpop.f32.mrb[1].mxu0  ;;  %v1625_v32 = vrot.slane %v1614_v41, 7 }
 0x1d5   : > { %2229 = vrsqrt.f32 %v1801_v60  ;;  %v2121_v36 = vadd.f32 %v1775_v16, %v909_v11  ;;  %v2119_v24 = vpop.f32.mrb[2].mxu0 }
 0x1d6   : > { %v1626_v18 = vsel %vm1617_vm13, %v1623_v63, %v1625_v32  ;;  %v2122_v56 = vadd.f32 %v2119_v24, %v2065_v37  ;;  %v1778_v30 = vpop.f32.mrb[3].mxu0  ;;  %2231 = vrsqrt.f32 %v1803_v23  ;;  %v1811_v50 = vand.u32 2147483647, %v2120_v31 }
 0x1d7   : > { %v2123_v21 = vadd.f32 %v1778_v30, %v912_v8  ;;  %v1708_v58 = vpop.xlane.xlu1 %1707  ;;  %v1634_v40 = vadd.f32 %v1626_v18, %v1530_v4  ;;  %v1809_v62 = vand.u32 2147483647, %v2121_v36 }
 0x1d8   : > { %v1718_v38 = vrot.slane %v1708_v58, 7  ;;  %v1812_v59 = vand.u32 2147483647, %v2122_v56 }
 0x1d9   : > { %v1810_v55 = vand.u32 2147483647, %v2123_v21 }
 0x1da   : > { %v1719_v61 = vsel %vm1617_vm13, %v1716_v47, %v1718_v38 }
 0x1db   : > { %v1727_v2 = vadd.f32 %v1719_v61, %v1634_v40 }
 0x1dd   : > { %v1800_v10 = vadd.f32 %v1796_v53, %v1727_v2 }
 0x1df   : > { %v2230_v15 = vpop.eup %2229  ;;  %v1804_v17 = vadd.f32 1e-06, %v1800_v10 }
 0x1e0   : > { %1815 = vperm.xlu1 %2225, %v2230_v15   ;;  %v2232_v63 = vpop.eup %2231 }
 0x1e1   : > { %2233 = vrsqrt.f32 %v1804_v17 }
 0x1e4   : > { %1825 = vperm.xlu1 %2225, %v2232_v63  }
 0x1eb   : > { %v2234_v48 = vpop.eup %2233 }
 0x1ec   : > { %1830 = vperm.xlu1 %2225, %v2234_v48  }
 0x24c   : > { %v1821_v39 = vpop.permute.xlu0 %1820 }
 0x24d   : > { %v1834_v33 = vmul.f32 %v1821_v39, %v1810_v55 }
 0x24f   : > { %v1838_v14 = vadd.f32 1e-06, %v1834_v33 }
 0x251   : > { %v1842_v54 = vmul.f32 %v2123_v21, %v1838_v14 }
 0x253   : > { %v1846_v47 = vmul.f32 8.574929, %v1842_v54 }
 0x255   : > { %1850 = vst [vmem:[%s158_s7 + $0x8] sm:$0xff] %v1846_v47 }
 0x25f   : > { %v1816_v28 = vpop.permute.xlu1 %1815 }
 0x260   : > { %v1833_v44 = vmul.f32 %v1816_v28, %v1809_v62 }
 0x262   : > { %v1837_v3 = vadd.f32 1e-06, %v1833_v44 }
 0x263   : > { %v1826_v12 = vpop.permute.xlu1 %1825 }
 0x264   : > { %v1841_v7 = vmul.f32 %v2121_v36, %v1837_v3  ;;  %v1835_v42 = vmul.f32 %v1826_v12, %v1811_v50 }
 0x266   : > { %v1845_v57 = vmul.f32 8.574929, %v1841_v7  ;;  %v1839_v49 = vadd.f32 1e-06, %v1835_v42 }
 0x268   : > { %1849 = vst [vmem:[%s158_s7] sm:$0xff] %v1845_v57  ;;  %v1843_v52 = vmul.f32 %v2120_v31, %v1839_v49 }
 0x26a   : > { %v1847_v46 = vmul.f32 8.574929, %v1843_v52 }
 0x26b   : > { %v1831_v34 = vpop.permute.xlu1 %1830 }
 0x26c   : > { %1851 = vst [vmem:[%s158_s7 + $0x10] sm:$0xff] %v1847_v46  ;;  %v1836_v6 = vmul.f32 %v1831_v34, %v1812_v59 }
 0x26e   : > { %v1840_v1 = vadd.f32 1e-06, %v1836_v6 }
 0x270   : > { %v1844_v5 = vmul.f32 %v2122_v56, %v1840_v1 }
 0x272   : > { %v1848_v35 = vmul.f32 8.574929, %v1844_v5 }
 0x274   : > { %1852 = vst [vmem:[%s158_s7 + $0x18] sm:$0xff] %v1848_v35 }
 0x275 PF: > { %s13_s9 = sadd.s32 1, %s2273_s9  }
 0x276   : > { %p10_p3 = scmp.ge.s32.totalorder %s13_s9, 4  }
 0x278   :  { %12 = sbr.rel (!%p10_p3) target bundleno = 1 (0x1), region = 79 }
 0x27f   :  { %1874 = vsyncpa [#allocation3], 1 }
 0x280   :  { %1876 = vsyncpa [#allocation3 + $0x1], 1 }

// kernel: bcos_transformer_forward.10
= control target key start
LH: loop header
LB: loop body
LE: loop exit
PB: predicated region body
PF: predicated region fallthrough
CT: control target
= control target key end

     0   :  { %s1191_s1 = inlined_call_operand.vmem [shape: bf16[1024,128], index: 1, kind: input, shape index: {}]   ;;  %s1192_s0 = inlined_call_operand.vmem [shape: f32[8,1024], index: 0, kind: input, shape index: {}]   ;;  %s1193_s2 = inlined_call_operand.vmem [shape: f32[8,128], index: 2, kind: output, shape index: {}]  }
   0x1   :  { %v885_v0 = vld [vmem:[%s1191_s1 + $0x40] sm:$0xff]   ;;  %v889_v4 = vld [vmem:[%s1191_s1 + $0x48] sm:$0xff]   ;;  %v893_v8 = vld [vmem:[%s1191_s1 + $0x50] sm:$0xff]  }
   0x2   :  { %v886_v1 = vld [vmem:[%s1191_s1 + $0xc0] sm:$0xff]   ;;  %797 = vmatprep.subr.bf16.mxu0 %v885_v0  ;;  %v890_v5 = vld [vmem:[%s1191_s1 + $0xc8] sm:$0xff]   ;;  %v894_v9 = vld [vmem:[%s1191_s1 + $0xd0] sm:$0xff]  }
   0x3   :  { %v887_v2 = vld [vmem:[%s1191_s1] sm:$0xff]   ;;  %819 = vmatprep.subr.bf16.mxu1 %v886_v1  ;;  %v891_v6 = vld [vmem:[%s1191_s1 + $0x8] sm:$0xff]   ;;  %v895_v10 = vld [vmem:[%s1191_s1 + $0x10] sm:$0xff]  }
   0x4   :  { %v888_v3 = vld [vmem:[%s1191_s1 + $0x80] sm:$0xff]   ;;  %798 = vmatpush3.bf16.msra.mxu0 %v887_v2  ;;  %v892_v7 = vld [vmem:[%s1191_s1 + $0x88] sm:$0xff]   ;;  %v896_v11 = vld [vmem:[%s1191_s1 + $0x90] sm:$0xff]  }
   0x5   :  { %820 = vmatpush3.bf16.msra.mxu1 %v888_v3  ;;  %799 = vmatprep.subr.bf16.mxu0 %v889_v4  ;;  %v897_v12 = vld [vmem:[%s1191_s1 + $0x58] sm:$0xff]   ;;  %v901_v16 = vld [vmem:[%s1191_s1 + $0x60] sm:$0xff]   ;;  %v905_v20 = vld [vmem:[%s1191_s1 + $0x68] sm:$0xff]  }
   0x6   :  { %821 = vmatprep.subr.bf16.mxu1 %v890_v5  ;;  %v898_v13 = vld [vmem:[%s1191_s1 + $0xd8] sm:$0xff]   ;;  %v902_v17 = vld [vmem:[%s1191_s1 + $0xe0] sm:$0xff]   ;;  %v906_v21 = vld [vmem:[%s1191_s1 + $0xe8] sm:$0xff]  }
   0x7   :  { %v899_v14 = vld [vmem:[%s1191_s1 + $0x18] sm:$0xff]   ;;  %v903_v18 = vld [vmem:[%s1191_s1 + $0x20] sm:$0xff]   ;;  %v907_v22 = vld [vmem:[%s1191_s1 + $0x28] sm:$0xff]  }
   0x8   :  { %800 = vmatpush3.bf16.msra.mxu0 %v891_v6  ;;  %v900_v15 = vld [vmem:[%s1191_s1 + $0x98] sm:$0xff]   ;;  %v904_v19 = vld [vmem:[%s1191_s1 + $0xa0] sm:$0xff]   ;;  %v908_v23 = vld [vmem:[%s1191_s1 + $0xa8] sm:$0xff]  }
   0x9   :  { %822 = vmatpush3.bf16.msra.mxu1 %v892_v7  ;;  %801 = vmatprep.subr.bf16.mxu0 %v893_v8  ;;  %v909_v24 = vld [vmem:[%s1191_s1 + $0x70] sm:$0xff]   ;;  %v913_v28 = vld [vmem:[%s1191_s1 + $0x78] sm:$0xff]   ;;  %v12_v32 = vld [vmem:[%s1192_s0] sm:$0xff] }
   0xa   :  { %823 = vmatprep.subr.bf16.mxu1 %v894_v9  ;;  %v910_v25 = vld [vmem:[%s1191_s1 + $0xf0] sm:$0xff]   ;;  %v914_v29 = vld [vmem:[%s1191_s1 + $0xf8] sm:$0xff]   ;;  %v13_v33 = vld [vmem:[%s1192_s0 + $0x8] sm:$0xff]  ;;  %v20_v38 = vpack.c.bf16 %v12_v32, %v12_v32  ;;  %v700_v59 = vmul.f32 %v12_v32, %v12_v32 }
   0xb   :  { %v911_v26 = vld [vmem:[%s1191_s1 + $0x30] sm:$0xff]   ;;  %v915_v30 = vld [vmem:[%s1191_s1 + $0x38] sm:$0xff]   ;;  %v21_v35 = vpack.c.bf16 %v13_v33, %v13_v33  ;;  %v917_v40 = vld [vmem:[%s1191_s1 + $0x140] sm:$0xff]   ;;  %v701_v60 = vmul.f32 %v13_v33, %v13_v33 }
   0xc   :  { %802 = vmatpush3.bf16.msra.mxu0 %v895_v10  ;;  %v912_v27 = vld [vmem:[%s1191_s1 + $0xb0] sm:$0xff]   ;;  %v916_v31 = vld [vmem:[%s1191_s1 + $0xb8] sm:$0xff]   ;;  %v918_v41 = vld [vmem:[%s1191_s1 + $0x1c0] sm:$0xff]  }
   0xd   :  { %824 = vmatpush3.bf16.msra.mxu1 %v896_v11  ;;  %803 = vmatprep.subr.bf16.mxu0 %v897_v12  ;;  %v14_v34 = vld [vmem:[%s1192_s0 + $0x10] sm:$0xff]  ;;  %v1074_v36 = vld [vmem:[%s1192_s0 + $0x18] sm:$0xff]  ;;  %v919_v42 = vld [vmem:[%s1191_s1 + $0x100] sm:$0xff]   ;;  %v708_v1 = vadd.f32 %v701_v60, %v700_v59 }
   0xe   :  { %825 = vmatprep.subr.bf16.mxu1 %v898_v13  ;;  %v23_v37 = vpack.c.bf16 %v1074_v36, %v1074_v36  ;;  %v22_v39 = vpack.c.bf16 %v14_v34, %v14_v34  ;;  %572 = vmatprep.mubr.bf16.mxu0 %v21_v35  ;;  %v920_v43 = vld [vmem:[%s1191_s1 + $0x180] sm:$0xff]   ;;  %v921_v44 = vld [vmem:[%s1191_s1 + $0x148] sm:$0xff]   ;;  %v925_v48 = vld [vmem:[%s1191_s1 + $0x150] sm:$0xff]   ;;  %v702_v2 = vmul.f32 %v14_v34, %v14_v34 }
   0xf   :  { %v922_v45 = vld [vmem:[%s1191_s1 + $0x1c8] sm:$0xff]   ;;  %v926_v49 = vld [vmem:[%s1191_s1 + $0x1d0] sm:$0xff]   ;;  %v929_v52 = vld [vmem:[%s1191_s1 + $0x158] sm:$0xff]   ;;  %v703_v7 = vmul.f32 %v1074_v36, %v1074_v36 }
  0x10   :  { %804 = vmatpush3.bf16.msra.mxu0 %v899_v14  ;;  %612 = vmatprep.mubr.bf16.mxu1 %v23_v37  ;;  %v923_v46 = vld [vmem:[%s1191_s1 + $0x108] sm:$0xff]   ;;  %v927_v50 = vld [vmem:[%s1191_s1 + $0x110] sm:$0xff]   ;;  %v930_v53 = vld [vmem:[%s1191_s1 + $0x1d8] sm:$0xff]   ;;  %v709_v8 = vadd.f32 %v708_v1, %v702_v2 }
  0x11   :  { %826 = vmatpush3.bf16.msra.mxu1 %v900_v15  ;;  %805 = vmatprep.subr.bf16.mxu0 %v901_v16  ;;  %v924_v47 = vld [vmem:[%s1191_s1 + $0x188] sm:$0xff]   ;;  %v928_v51 = vld [vmem:[%s1191_s1 + $0x190] sm:$0xff]   ;;  %v931_v54 = vld [vmem:[%s1191_s1 + $0x118] sm:$0xff]  }
  0x12   :  { %827 = vmatprep.subr.bf16.mxu1 %v902_v17  ;;  %v932_v55 = vld [vmem:[%s1191_s1 + $0x198] sm:$0xff]   ;;  %v933_v56 = vld [vmem:[%s1191_s1 + $0x160] sm:$0xff]   ;;  %v937_v62 = vld [vmem:[%s1191_s1 + $0x168] sm:$0xff]   ;;  %v710_v13 = vadd.f32 %v709_v8, %v703_v7 }
  0x13   :  { %v934_v57 = vld [vmem:[%s1191_s1 + $0x1e0] sm:$0xff]   ;;  %v938_v63 = vld [vmem:[%s1191_s1 + $0x1e8] sm:$0xff]   ;;  %v941_v4 = vld [vmem:[%s1191_s1 + $0x170] sm:$0xff]  }
  0x14   :  { %806 = vmatpush3.bf16.msra.mxu0 %v903_v18  ;;  %v935_v58 = vld [vmem:[%s1191_s1 + $0x120] sm:$0xff]   ;;  %v939_v0 = vld [vmem:[%s1191_s1 + $0x128] sm:$0xff]   ;;  %v942_v5 = vld [vmem:[%s1191_s1 + $0x1f0] sm:$0xff]  }
  0x15   :  { %828 = vmatpush3.bf16.msra.mxu1 %v904_v19  ;;  %807 = vmatprep.subr.bf16.mxu0 %v905_v20  ;;  %v936_v61 = vld [vmem:[%s1191_s1 + $0x1a0] sm:$0xff]   ;;  %v940_v3 = vld [vmem:[%s1191_s1 + $0x1a8] sm:$0xff]   ;;  %v943_v6 = vld [vmem:[%s1191_s1 + $0x130] sm:$0xff]  }
  0x16   :  { %829 = vmatprep.subr.bf16.mxu1 %v906_v21  ;;  %v944_v9 = vld [vmem:[%s1191_s1 + $0x1b0] sm:$0xff]   ;;  %v945_v10 = vld [vmem:[%s1191_s1 + $0x178] sm:$0xff]   ;;  %v17_v15 = vld [vmem:[%s1192_s0 + $0x28] sm:$0xff] }
  0x17   :  { %v946_v11 = vld [vmem:[%s1191_s1 + $0x1f8] sm:$0xff]   ;;  %v25_v17 = vpack.c.bf16 %v17_v15, %v17_v15  ;;  %v16_v19 = vld [vmem:[%s1192_s0 + $0x20] sm:$0xff]  ;;  %v18_v20 = vld [vmem:[%s1192_s0 + $0x30] sm:$0xff] }
  0x18   :  { %808 = vmatpush3.bf16.msra.mxu0 %v907_v22  ;;  %v947_v12 = vld [vmem:[%s1191_s1 + $0x138] sm:$0xff]   ;;  %v24_v21 = vpack.c.bf16 %v16_v19, %v16_v19  ;;  %v26_v22 = vpack.c.bf16 %v18_v20, %v18_v20 }
  0x19   :  { %830 = vmatpush3.bf16.msra.mxu1 %v908_v23  ;;  %809 = vmatprep.subr.bf16.mxu0 %v909_v24  ;;  %v948_v14 = vld [vmem:[%s1191_s1 + $0x1b8] sm:$0xff]   ;;  %v704_v23 = vmul.f32 %v16_v19, %v16_v19  ;;  %v705_v24 = vmul.f32 %v17_v15, %v17_v15 }
  0x1a   :  { %831 = vmatprep.subr.bf16.mxu1 %v910_v25  ;;  %v19_v16 = vld [vmem:[%s1192_s0 + $0x38] sm:$0xff]  ;;  %v706_v25 = vmul.f32 %v18_v20, %v18_v20 }
  0x1b   :  { %v27_v18 = vpack.c.bf16 %v19_v16, %v19_v16 }
  0x1c   :  { %810 = vmatpush3.bf16.msra.mxu0 %v911_v26  ;;  %v711_v26 = vadd.f32 %v710_v13, %v704_v23 }
  0x1d   :  { %832 = vmatpush3.bf16.msra.mxu1 %v912_v27  ;;  %811 = vmatprep.subr.bf16.mxu0 %v913_v28  ;;  %v707_v27 = vmul.f32 %v19_v16, %v19_v16 }
  0x1e   :  { %833 = vmatprep.subr.bf16.mxu1 %v914_v29  ;;  %v712_v28 = vadd.f32 %v711_v26, %v705_v24 }
  0x20   :  { %812 = vmatpush3.bf16.msra.mxu0 %v915_v30  ;;  %v713_v29 = vadd.f32 %v712_v28, %v706_v25 }
  0x21   :  { %834 = vmatpush3.bf16.msra.mxu1 %v916_v31  ;;  %841 = vmatprep.subr.bf16.mxu0 %v917_v40 }
  0x22   :  { %863 = vmatprep.subr.bf16.mxu1 %v918_v41  ;;  %v714_v30 = vadd.f32 %v713_v29, %v707_v27 }
  0x23   :  { %573 = vmatmul.mubr.bf16.vlgmr.msra.gmra.mrb[0].mxu0 %v20_v38 }
  0x24   :  { %613 = vmatmul.mubr.bf16.vlgmr.msra.gmra.mrb[0].mxu1 %v22_v39  ;;  %842 = vmatpush3.bf16.msra.mxu0 %v919_v42 }
  0x25   :  { %864 = vmatpush3.bf16.msra.mxu1 %v920_v43  ;;  %843 = vmatprep.subr.bf16.mxu0 %v921_v44 }
  0x26   :  { %865 = vmatprep.subr.bf16.mxu1 %v922_v45  ;;  %652 = vmatprep.mubr.bf16.mxu0 %v25_v17 }
  0x27   :  { %692 = vmatprep.mubr.bf16.mxu1 %v27_v18  ;;  %715 = vadd.xlane.f32.xlu0 %v714_v30 }
  0x28   :  { %844 = vmatpush3.bf16.msra.mxu0 %v923_v46 }
  0x29   :  { %866 = vmatpush3.bf16.msra.mxu1 %v924_v47  ;;  %845 = vmatprep.subr.bf16.mxu0 %v925_v48 }
  0x2a   :  { %867 = vmatprep.subr.bf16.mxu1 %v926_v49 }
  0x2c   :  { %846 = vmatpush3.bf16.msra.mxu0 %v927_v50 }
  0x2d   :  { %868 = vmatpush3.bf16.msra.mxu1 %v928_v51  ;;  %847 = vmatprep.subr.bf16.mxu0 %v929_v52 }
  0x2e   :  { %869 = vmatprep.subr.bf16.mxu1 %v930_v53 }
  0x30   :  { %848 = vmatpush3.bf16.msra.mxu0 %v931_v54 }
  0x31   :  { %870 = vmatpush3.bf16.msra.mxu1 %v932_v55  ;;  %849 = vmatprep.subr.bf16.mxu0 %v933_v56 }
  0x32   :  { %871 = vmatprep.subr.bf16.mxu1 %v934_v57  ;;  %v724_v57 = vlaneseq }
  0x34   :  { %850 = vmatpush3.bf16.msra.mxu0 %v935_v58  ;;  %v725_v60 = vand.u32 127, %v724_v57 }
  0x35   :  { %872 = vmatpush3.bf16.msra.mxu1 %v936_v61  ;;  %851 = vmatprep.subr.bf16.mxu0 %v937_v62 }
  0x36   :  { %873 = vmatprep.subr.bf16.mxu1 %v938_v63  ;;  %vm726_vm0 = vcmp.eq.s32.totalorder %v725_v60, 31 }
  0x38   :  { %852 = vmatpush3.bf16.msra.mxu0 %v939_v0 }
  0x39   :  { %874 = vmatpush3.bf16.msra.mxu1 %v940_v3  ;;  %853 = vmatprep.subr.bf16.mxu0 %v941_v4 }
  0x3a   :  { %875 = vmatprep.subr.bf16.mxu1 %v942_v5 }
  0x3c   :  { %854 = vmatpush3.bf16.msra.mxu0 %v943_v6 }
  0x3d   :  { %876 = vmatpush3.bf16.msra.mxu1 %v944_v9  ;;  %855 = vmatprep.subr.bf16.mxu0 %v945_v10 }
  0x3e   :  { %877 = vmatprep.subr.bf16.mxu1 %v946_v11 }
  0x40   :  { %856 = vmatpush3.bf16.msra.mxu0 %v947_v12 }
  0x41   :  { %878 = vmatpush3.bf16.msra.mxu1 %v948_v14 }
  0x43   :  { %653 = vmatmul.mubr.bf16.vlgmr.msra.gmra.mrb[4].mxu0 %v24_v21 }
  0x44   :  { %693 = vmatmul.mubr.bf16.vlgmr.msra.gmra.mrb[4].mxu1 %v26_v22 }
  0xb4   :  { %v716_v42 = vpop.xlane.xlu0 %715 }
  0xb5   :  { %v717_v43 = vadd.f32 1e-06, %v716_v42 }
  0xb7   :  { %949 = vrsqrt.f32 %v717_v43 }
  0xc1   :  { %v950_v56 = vpop.eup %949 }
  0xf6   :  { %v813_v31 = vpop.f32.mrb[0].mxu0 }
  0xf7   :  { %v835_v32 = vpop.f32.mrb[0].mxu1  ;;  %v814_v33 = vpop.f32.mrb[1].mxu0 }
  0xf8   :  { %v815_v34 = vadd.f32 %v814_v33, %v813_v31  ;;  %v836_v35 = vpop.f32.mrb[1].mxu1  ;;  %v816_v36 = vpop.f32.mrb[2].mxu0 }
  0xf9   :  { %v837_v37 = vadd.f32 %v836_v35, %v835_v32  ;;  %v838_v38 = vpop.f32.mrb[2].mxu1  ;;  %v817_v39 = vpop.f32.mrb[3].mxu0 }
  0xfa   :  { %v839_v40 = vpop.f32.mrb[3].mxu1 }
  0xfb   :  { %v615_v41 = vadd.f32 %v837_v37, %v815_v34 }
 0x116   :  { %v857_v44 = vpop.f32.mrb[4].mxu0 }
 0x117   :  { %v879_v45 = vpop.f32.mrb[4].mxu1  ;;  %v858_v46 = vpop.f32.mrb[5].mxu0 }
 0x118   :  { %v859_v47 = vadd.f32 %v858_v46, %v857_v44  ;;  %v880_v48 = vpop.f32.mrb[5].mxu1  ;;  %v860_v49 = vpop.f32.mrb[6].mxu0 }
 0x119   :  { %v881_v50 = vadd.f32 %v880_v48, %v879_v45  ;;  %v882_v51 = vpop.f32.mrb[6].mxu1  ;;  %v861_v52 = vpop.f32.mrb[7].mxu0 }
 0x11a   :  { %v655_v53 = vadd.f32 %v859_v47, %v615_v41  ;;  %v883_v54 = vpop.f32.mrb[7].mxu1 }
 0x11c   :  { %v695_v55 = vadd.f32 %v881_v50, %v655_v53 }
 0x11e   :  { %v719_v58 = vand.u32 2147483647, %v695_v55 }
 0x120   :  { %v720_v59 = vmul.f32 %v950_v56, %v719_v58 }
 0x122   :  { %v721_v61 = vadd.f32 1e-06, %v720_v59 }
 0x124   :  { %v722_v62 = vmul.f32 %v721_v61, %v695_v55 }
 0x126   :  { %v723_v63 = vmul.f32 4.4194174, %v722_v62 }
 0x128   :  { %v727_v0 = vsel %vm726_vm0, 1.0, %v723_v63 }
 0x129   :  { %728 = vst [vmem:[%s1193_s2] sm:$0xff] %v727_v0 }

// kernel: bcos_transformer_forward.8
= control target key start
LH: loop header
LB: loop body
LE: loop exit
PB: predicated region body
PF: predicated region fallthrough
CT: control target
= control target key end

     0   :  { %s3597_s9 = smov 0   ;;  %s4424_s0 = inlined_call_operand.vmem [shape: f32[2,24,256], index: 0, kind: input, shape index: {}]   ;;  %s4425_s1 = inlined_call_operand.vmem [shape: bf16[17,128,128], index: 1, kind: input, shape index: {}]   ;;  %s4426_s2 = inlined_call_operand.vmem [shape: f32[2,16,128], index: 2, kind: output, shape index: {}]  }
   0x1 LB: > { %s2457_s10 = sadd.s32 4294967295, %s3577_s9   ;;  %p2461_p0 = scmp.ge.s32.totalorder %s3577_s9, 1  ;;  %s3577_s9 = sphi %s3597_s9, %s12_s9  }
   0x2   : > { %p112_p1 = scmp.lt.s32.totalorder %s3577_s9, 3 }
   0x4   : > { %p113_p2 = pnand %p2461_p0, %p112_p1 }
   0x5   : > { %v3429_v0 = vld [vmem:[%s4425_s1 + $0x40] sm:$0xff] (!%p113_p2)   ;;  %v3579_v1 = vmov (!%p113_p2), 0.0   ;;  %v3431_v3 = vld [vmem:[%s4425_s1 + $0x48] sm:$0xff] (!%p113_p2)   ;;  %vm3580_vm0 = vmmov (!%p113_p2), 0   ;;  %p134_p3 = scmp.lt.s32.totalorder (!%p113_p2), %s2457_s10, 1  ;;  %v3433_v5 = vld [vmem:[%s4425_s1 + $0x50] sm:$0xff] (!%p113_p2)  }
   0x6   : > { %116 = sbr.rel (%p113_p2) target bundleno = 522 (0x20a), region = 28  ;;  %3013 = vmatprep.subr.bf16.mxu1 (!%p113_p2), %v3579_v1  ;;  %3173 = vmatprep.subr.bf16.mxu0 (!%p113_p2), %v3579_v1  ;;  %v3430_v2 = vld [vmem:[%s4425_s1 + $0x200] sm:$0xff] (!%p113_p2)   ;;  %v3432_v4 = vld [vmem:[%s4425_s1 + $0x208] sm:$0xff] (!%p113_p2)   ;;  %v3434_v6 = vld [vmem:[%s4425_s1 + $0x210] sm:$0xff] (!%p113_p2)   ;;  %vm504_vm1 = vcmask (!%p113_p2), 1047553   ;;  %vm791_vm2 = vcmask (!%p113_p2), 1045504  }
   0x7   : > { %3014 = vmatpush3.bf16.msra.mxu1 (!%p113_p2), %v3429_v0  ;;  %3029 = vmatprep.mubr.msk.bf16.mxu1 (!%p113_p2), %vm3580_vm0, %v3579_v1  ;;  %v3435_v7 = vld [vmem:[%s4425_s1 + $0x58] sm:$0xff] (!%p113_p2)   ;;  %v3437_v9 = vld [vmem:[%s4425_s1 + $0x60] sm:$0xff] (!%p113_p2)   ;;  %v3439_v11 = vld [vmem:[%s4425_s1 + $0x68] sm:$0xff] (!%p113_p2)   ;;  %vm508_vm3 = vcmask (!%p113_p2), 1040384   ;;  %vm781_vm4 = vcmask (!%p113_p2), 1047554   ;;  %vm785_vm5 = vcmask (!%p113_p2), 1041408  }
   0x8   : > { %3174 = vmatpush3.bf16.msra.mxu0 (!%p113_p2), %v3430_v2  ;;  %3015 = vmatprep.subr.bf16.mxu1 (!%p113_p2), %v3579_v1  ;;  %v3436_v8 = vld [vmem:[%s4425_s1 + $0x218] sm:$0xff] (!%p113_p2)   ;;  %v3438_v10 = vld [vmem:[%s4425_s1 + $0x220] sm:$0xff] (!%p113_p2)   ;;  %v3440_v13 = vld [vmem:[%s4425_s1 + $0x228] sm:$0xff] (!%p113_p2)   ;;  %vm1051_vm6 = vcmask (!%p113_p2), 1047555   ;;  %vm1055_vm7 = vcmask (!%p113_p2), 1042432   ;;  %vm1319_vm8 = vcmask (!%p113_p2), 1047556  }
   0x9   : > { %3175 = vmatprep.subr.bf16.mxu0 (!%p113_p2), %v3579_v1  ;;  %3189 = vmatprep.mubr.msk.bf16.mxu0 (!%p113_p2), %vm3580_vm0, %v3579_v1  ;;  %v3441_v20 = vld [vmem:[%s4425_s1 + $0x70] sm:$0xff] (!%p113_p2)   ;;  %v3443_v26 = vld [vmem:[%s4425_s1 + $0x78] sm:$0xff] (!%p113_p2)   ;;  %v3445_v32 = vld [vmem:[%s4425_s1] sm:$0xff] (!%p113_p2)   ;;  %vm1323_vm9 = vcmask (!%p113_p2), 1043456   ;;  %vm1584_vm10 = vcmask (!%p113_p2), 1047557   ;;  %vm1061_vm11 = vcmask (!%p113_p2), 1044480  }
   0xa   : > { %v3442_v23 = vld [vmem:[%s4425_s1 + $0x230] sm:$0xff] (!%p113_p2)   ;;  %v3444_v27 = vld [vmem:[%s4425_s1 + $0x238] sm:$0xff] (!%p113_p2)   ;;  %v3446_v35 = vld [vmem:[%s4425_s1 + $0x240] sm:$0xff] (!%p113_p2)   ;;  %vm1848_vm12 = vcmask (!%p113_p2), 1047558   ;;  %vm515_vm13 = vcmask (!%p113_p2), 1046528   ;;  %vm2112_vm14 = vcmask (!%p113_p2), 1047559  }
   0xb   : > { %3016 = vmatpush3.bf16.msra.mxu1 (!%p113_p2), %v3431_v3  ;;  %v3447_v36 = vld [vmem:[%s4425_s1 + $0x8] sm:$0xff] (!%p113_p2)   ;;  %v3449_v42 = vld [vmem:[%s4425_s1 + $0x10] sm:$0xff] (!%p113_p2)   ;;  %v3451_v46 = vld [vmem:[%s4425_s1 + $0x18] sm:$0xff] (!%p113_p2)   ;;  %vm398_vm15 = vsmask.f32 (!%p113_p2), 7424 }
   0xc   : > { %3176 = vmatpush3.bf16.msra.mxu0 (!%p113_p2), %v3432_v4  ;;  %3017 = vmatprep.subr.bf16.mxu1 (!%p113_p2), %v3579_v1  ;;  %v3448_v39 = vld [vmem:[%s4425_s1 + $0x248] sm:$0xff] (!%p113_p2)   ;;  %v3450_v44 = vld [vmem:[%s4425_s1 + $0x250] sm:$0xff] (!%p113_p2)   ;;  %v3452_v48 = vld [vmem:[%s4425_s1 + $0x258] sm:$0xff] (!%p113_p2)  }
   0xd   : > { %s4428_s10 = smov (!%p134_p3, %s2457_s10), 1  ;;  %3177 = vmatprep.subr.bf16.mxu0 %v3579_v1  ;;  %v3453_v50 = vld [vmem:[%s4425_s1 + $0x20] sm:$0xff]   ;;  %v3455_v54 = vld [vmem:[%s4425_s1 + $0x28] sm:$0xff]   ;;  %v3457_v58 = vld [vmem:[%s4425_s1 + $0x30] sm:$0xff]  }
   0xe   : > { %s3415_s25 = smul.u32 48, %s4428_s10  ;;  %v3454_v52 = vld [vmem:[%s4425_s1 + $0x260] sm:$0xff]   ;;  %v3456_v56 = vld [vmem:[%s4425_s1 + $0x268] sm:$0xff]   ;;  %v3458_v60 = vld [vmem:[%s4425_s1 + $0x270] sm:$0xff]  }
   0xf   : > { %3018 = vmatpush3.bf16.msra.mxu1 %v3433_v5  ;;  %v3459_v63 = vld [vmem:[%s4425_s1 + $0x38] sm:$0xff]  }
  0x10   : > { %3178 = vmatpush3.bf16.msra.mxu0 %v3434_v6  ;;  %3019 = vmatprep.subr.bf16.mxu1 %v3579_v1  ;;  %s3650_s4 = scalar_lea.vmem %s4424_s0, %s3415_s25  ;;  %v3460_v2 = vld [vmem:[%s4425_s1 + $0x278] sm:$0xff]   ;;  %v3461_v6 = vld [vmem:[%s4425_s1 + $0x80] sm:$0xff]  }
  0x11   : > { %3179 = vmatprep.subr.bf16.mxu0 %v3579_v1  ;;  %v145_v12 = vld [vmem:[%s3650_s4] sm:$0xff]  ;;  %v148_v14 = vld [vmem:[%s3650_s4 + $0x18] sm:$0xff]  ;;  %v147_v16 = vld [vmem:[%s3650_s4 + $0x10] sm:$0xff] }
  0x12   : > { %v3665_v15 = vmul.f32 %v145_v12, %v145_v12  ;;  %v149_v17 = vld [vmem:[%s3650_s4 + $0x20] sm:$0xff]  ;;  %v169_v18 = vmul.f32 %v147_v16, %v147_v16  ;;  %v373_v19 = vmul.f32 %v148_v14, %v148_v14  ;;  %v146_v21 = vld [vmem:[%s3650_s4 + $0x8] sm:$0xff]  ;;  %v3682_v24 = vpack.c.bf16 %v147_v16, %v145_v12 }
  0x13   : > { %3020 = vmatpush3.bf16.msra.mxu1 %v3435_v7  ;;  %v3676_v22 = vmul.f32 %v146_v21, %v146_v21  ;;  %v3684_v25 = vpack.c.bf16 %v149_v17, %v149_v17  ;;  %v3700_v31 = vpack.c.bf16 %v148_v14, %v146_v21  ;;  %v3706_v33 = vmul.f32 %v149_v17, %v149_v17  ;;  %v150_v37 = vld [vmem:[%s3650_s4 + $0x28] sm:$0xff]  ;;  %v3465_v14 = vld [vmem:[%s4425_s1 + $0x90] sm:$0xff]   ;;  %v3468_v21 = vld [vmem:[%s4425_s1 + $0x298] sm:$0xff]  }
  0x14   : > { %3180 = vmatpush3.bf16.msra.mxu0 %v3436_v8  ;;  %3021 = vmatprep.subr.bf16.mxu1 %v3579_v1  ;;  %v505_v28 = vsel %vm504_vm1, %v3665_v15, 0.0  ;;  %v1224_v29 = vrot.slane %v3682_v24, 2  ;;  %v3724_v40 = vmul.f32 %v150_v37, %v150_v37  ;;  %v782_v43 = vsel %vm781_vm4, %v3665_v15, 0.0  ;;  %v3464_v12 = vld [vmem:[%s4425_s1 + $0x288] sm:$0xff]   ;;  %v3466_v17 = vld [vmem:[%s4425_s1 + $0x290] sm:$0xff]  }
  0x15   : > { %3181 = vmatprep.subr.bf16.mxu0 %v3579_v1  ;;  %170 = vadd.xlane.f32.xlu1 %v3665_v15  ;;  %v1225_v30 = vrot.slane %v3684_v25, 2  ;;  %v648_v38 = vsel %vm504_vm1, %v3676_v22, 0.0  ;;  %v509_v41 = vsel %vm508_vm3, %v3706_v33, 0.0  ;;  %v915_v47 = vsel %vm781_vm4, %v3676_v22, 0.0 }
  0x16   : > { %172 = vadd.xlane.f32.xlu0 %v169_v18  ;;  %v651_v45 = vsel %vm508_vm3, %v3724_v40, 0.0  ;;  %v786_v49 = vsel %vm785_vm5, %v3706_v33, 0.0  ;;  %v1052_v51 = vsel %vm1051_vm6, %v3665_v15, 0.0  ;;  %v918_v53 = vsel %vm785_vm5, %v3724_v40, 0.0 }
  0x17   : > { %3022 = vmatpush3.bf16.msra.mxu1 %v3437_v9  ;;  %v1226_v34 = vsel %vm791_vm2, %v1224_v29, %v1225_v30  ;;  %v1189_v55 = vsel %vm1051_vm6, %v3676_v22, 0.0  ;;  %v1056_v57 = vsel %vm1055_vm7, %v3706_v33, 0.0  ;;  %v1320_v59 = vsel %vm1319_vm8, %v3665_v15, 0.0  ;;  %v3462_v9 = vld [vmem:[%s4425_s1 + $0x280] sm:$0xff]  }
  0x18   : > { %3182 = vmatpush3.bf16.msra.mxu0 %v3438_v10  ;;  %3023 = vmatprep.subr.bf16.mxu1 %v3579_v1  ;;  %v3790_v61 = vpack.c.bf16 %v150_v37, %v150_v37  ;;  %v1192_v62 = vsel %vm1055_vm7, %v3724_v40, 0.0  ;;  %v1355_v0 = vrot.slane %v3700_v31, 2  ;;  %v1450_v3 = vsel %vm1319_vm8, %v3676_v22, 0.0  ;;  %v3463_v10 = vld [vmem:[%s4425_s1 + $0x88] sm:$0xff]  }
  0x19   : > { %3183 = vmatprep.subr.bf16.mxu0 %v3579_v1  ;;  %376 = vadd.xlane.f32.xlu1 %v373_v19  ;;  %v1324_v5 = vsel %vm1323_vm9, %v3706_v33, 0.0  ;;  %v1585_v7 = vsel %vm1584_vm10, %v3665_v15, 0.0  ;;  %v1588_v16 = vsel %vm1061_vm11, %v3706_v33, 0.0  ;;  %v1849_v18 = vsel %vm1848_vm12, %v3665_v15, 0.0  ;;  %v3467_v19 = vld [vmem:[%s4425_s1 + $0x98] sm:$0xff]  }
  0x1a   : > { %374 = vadd.xlane.f32.xlu0 %v3676_v22  ;;  %v1356_v4 = vrot.slane %v3790_v61, 2  ;;  %v1754_v30 = vrot.slane %v3684_v25, 3  ;;  %v821_v37 = vrot.slane %v3790_v61, 1  ;;  %vm1484_vm1 = vsmask.f32 5376 }
  0x1b   : > { %3024 = vmatpush3.bf16.msra.mxu1 %v3439_v11  ;;  %v1453_v11 = vsel %vm1323_vm9, %v3724_v40, 0.0  ;;  %vm2012_vm4 = vsmask.f32 4352 }
  0x1c   : > { %3184 = vmatpush3.bf16.msra.mxu0 %v3440_v13  ;;  %3025 = vmatprep.subr.bf16.mxu1 %v3579_v1  ;;  %v1357_v8 = vsel %vm791_vm2, %v1355_v0, %v1356_v4  ;;  %v1718_v13 = vsel %vm1584_vm10, %v3676_v22, 0.0  ;;  %v3479_v4 = vld [vmem:[%s4425_s1 + $0xc8] sm:$0xff]  }
  0x1d   : > { %3185 = vmatprep.subr.bf16.mxu0 %v3579_v1  ;;  %510 = vadd.xlane.f32.xlu1 %v509_v41  ;;  %v2113_v41 = vsel %vm2112_vm14, %v3665_v15, 0.0 }
  0x1e   : > { %506 = vadd.xlane.f32.xlu0 %v505_v28  ;;  %v1978_v28 = vsel %vm1848_vm12, %v3676_v22, 0.0 }
  0x1f   : > { %3026 = vmatpush3.bf16.msra.mxu1 %v3441_v20  ;;  %v686_v20 = vrot.slane %v3682_v24, 1 }
  0x20   : > { %3186 = vmatpush3.bf16.msra.mxu0 %v3442_v23  ;;  %3027 = vmatprep.subr.bf16.mxu1 %v3579_v1  ;;  %v1721_v23 = vsel %vm1061_vm11, %v3724_v40, 0.0 }
  0x21   : > { %3187 = vmatprep.subr.bf16.mxu0 %v3579_v1  ;;  %652 = vadd.xlane.f32.xlu1 %v651_v45  ;;  %v3894_v45 = vshll.u32 %v3682_v24, 16 }
  0x22   : > { %649 = vadd.xlane.f32.xlu0 %v648_v38  ;;  %v1852_v38 = vsel %vm791_vm2, %v3706_v33, 0.0 }
  0x23   : > { %3028 = vmatpush3.bf16.msra.mxu1 %v3443_v26  ;;  %v687_v26 = vrot.slane %v3684_v25, 1 }
  0x24   : > { %3188 = vmatpush3.bf16.msra.mxu0 %v3444_v27  ;;  %3033 = vmatprep.subr.bf16.mxu1 %v3579_v1  ;;  %v1753_v27 = vrot.slane %v3682_v24, 3 }
  0x25   : > { %3193 = vmatprep.subr.bf16.mxu0 %v3579_v1  ;;  %787 = vadd.xlane.f32.xlu1 %v786_v49  ;;  %v3864_v29 = vsel %vm515_vm13, %v686_v20, %v687_v26  ;;  %v2246_v49 = vsel %vm2112_vm14, %v3676_v22, 0.0  ;;  %v2116_v22 = vsel %vm515_vm13, %v3706_v33, 0.0 }
  0x26   : > { %3030 = vmatmul.mubr.bf16.vlgmr.msra.gmra.mrb[0].mxu1 %v3700_v31  ;;  %783 = vadd.xlane.f32.xlu0 %v782_v43  ;;  %v1884_v43 = vrot.slane %v3790_v61, 3 }
  0x27   : > { %3034 = vmatpush3.bf16.msra.mxu1 %v3445_v32  ;;  %3190 = vmatmul.mubr.bf16.vlgmr.msra.gmra.mrb[0].mxu0 %v1226_v34  ;;  %v3469_v32 = vld [vmem:[%s4425_s1 + $0xa0] sm:$0xff]   ;;  %v820_v34 = vrot.slane %v3700_v31, 1 }
  0x28   : > { %3194 = vmatpush3.bf16.msra.mxu0 %v3446_v35  ;;  %3035 = vmatprep.subr.bf16.mxu1 %v3579_v1  ;;  %v3470_v35 = vld [vmem:[%s4425_s1 + $0x2a0] sm:$0xff]  }
  0x29   : > { %3195 = vmatprep.subr.bf16.mxu0 %v3579_v1  ;;  %3049 = vmatprep.mubr.msk.bf16.mxu1 %vm3580_vm0, %v3579_v1 }
  0x2a   : > { %3209 = vmatprep.mubr.msk.bf16.mxu0 %vm3580_vm0, %v3579_v1  ;;  %916 = vadd.xlane.f32.xlu0 %v915_v47  ;;  %v3900_v47 = vshrl.u32 %v3684_v25, 16 }
  0x2b   : > { %3036 = vmatpush3.bf16.msra.mxu1 %v3447_v36  ;;  %919 = vadd.xlane.f32.xlu1 %v918_v53  ;;  %v3876_v36 = vsel %vm1061_vm11, %v1753_v27, %v1754_v30  ;;  %v3491_v27 = vld [vmem:[%s4425_s1 + $0xf8] sm:$0xff]  }
  0x2c   : > { %3196 = vmatpush3.bf16.msra.mxu0 %v3448_v39  ;;  %3037 = vmatprep.subr.bf16.mxu1 %v3579_v1  ;;  %v1883_v39 = vrot.slane %v3700_v31, 3  ;;  %v1488_v53 = vrot.slane %v3900_v47, 2 }
  0x2d   : > { %3197 = vmatprep.subr.bf16.mxu0 %v3579_v1 }
  0x2e   : > { %1053 = vadd.xlane.f32.xlu0 %v1052_v51  ;;  %v3903_v15 = vsel %vm1061_vm11, %v1883_v39, %v1884_v43  ;;  %v3495_v43 = vld [vmem:[%s4425_s1 + $0x108] sm:$0xff]  }
  0x2f   : > { %3038 = vmatpush3.bf16.msra.mxu1 %v3449_v42  ;;  %1057 = vadd.xlane.f32.xlu1 %v1056_v57  ;;  %v3886_v42 = vsel %vm515_vm13, %v820_v34, %v821_v37 }
  0x30   : > { %3198 = vmatpush3.bf16.msra.mxu0 %v3450_v44  ;;  %3039 = vmatprep.subr.bf16.mxu1 %v3579_v1  ;;  %v3891_v44 = vshrl.u32 %v3682_v24, 16 }
  0x31   : > { %3199 = vmatprep.subr.bf16.mxu0 %v3579_v1 }
  0x32   : > { %1190 = vadd.xlane.f32.xlu0 %v1189_v55  ;;  %v1485_v51 = vrot.slane %v3891_v44, 2  ;;  %v3474_v55 = vld [vmem:[%s4425_s1 + $0x2b0] sm:$0xff]  }
  0x33   : > { %3040 = vmatpush3.bf16.msra.mxu1 %v3451_v46  ;;  %1193 = vadd.xlane.f32.xlu1 %v1192_v62  ;;  %v3897_v46 = vshll.u32 %v3684_v25, 16  ;;  %v3472_v25 = vld [vmem:[%s4425_s1 + $0x2a8] sm:$0xff]   ;;  %v3476_v62 = vld [vmem:[%s4425_s1 + $0x2b8] sm:$0xff]  }
  0x34   : > { %3200 = vmatpush3.bf16.msra.mxu0 %v3452_v48  ;;  %3041 = vmatprep.subr.bf16.mxu1 %v3579_v1  ;;  %v3471_v48 = vld [vmem:[%s4425_s1 + $0xa8] sm:$0xff]  }
  0x35   : > { %3201 = vmatprep.subr.bf16.mxu0 %v3579_v1  ;;  %v409_v57 = vrot.slane %v3897_v46, 1 }
  0x36   : > { %1321 = vadd.xlane.f32.xlu0 %v1320_v59 }
  0x37   : > { %3042 = vmatpush3.bf16.msra.mxu1 %v3453_v50  ;;  %1325 = vadd.xlane.f32.xlu1 %v1324_v5  ;;  %v404_v50 = vrot.slane %v3894_v45, 1  ;;  %v3480_v5 = vld [vmem:[%s4425_s1 + $0x2c8] sm:$0xff]  }
  0x38   : > { %3202 = vmatpush3.bf16.msra.mxu0 %v3454_v52  ;;  %3043 = vmatprep.subr.bf16.mxu1 %v3579_v1  ;;  %v1486_v52 = vrot.slane %v3894_v45, 3 }
  0x39   : > { %3203 = vmatprep.subr.bf16.mxu0 %v3579_v1  ;;  %v405_v59 = vor.u32 %v404_v50, %v3891_v44  ;;  %v3500_v50 = vld [vmem:[%s4425_s1 + $0x318] sm:$0xff]  }
  0x3a   : > { %1451 = vadd.xlane.f32.xlu0 %v1450_v3  ;;  %v3478_v3 = vld [vmem:[%s4425_s1 + $0x2c0] sm:$0xff]  }
  0x3b   : > { %3044 = vmatpush3.bf16.msra.mxu1 %v3455_v54  ;;  %1454 = vadd.xlane.f32.xlu1 %v1453_v11  ;;  %v3473_v54 = vld [vmem:[%s4425_s1 + $0xb0] sm:$0xff]   ;;  %v3486_v11 = vld [vmem:[%s4425_s1 + $0x2e0] sm:$0xff]  }
  0x3c   : > { %3204 = vmatpush3.bf16.msra.mxu0 %v3456_v56  ;;  %3045 = vmatprep.subr.bf16.mxu1 %v3579_v1  ;;  %v1489_v56 = vrot.slane %v3897_v46, 3 }
  0x3d   : > { %3205 = vmatprep.subr.bf16.mxu0 %v3579_v1 }
  0x3e   : > { %1586 = vadd.xlane.f32.xlu0 %v1585_v7  ;;  %v1490_v0 = vor.u32 %v1489_v56, %v1488_v53  ;;  %v3482_v7 = vld [vmem:[%s4425_s1 + $0x2d0] sm:$0xff]   ;;  %v3503_v53 = vld [vmem:[%s4425_s1 + $0x128] sm:$0xff]   ;;  %v3507_v56 = vld [vmem:[%s4425_s1 + $0x138] sm:$0xff]  }
  0x3f   : > { %3046 = vmatpush3.bf16.msra.mxu1 %v3457_v58  ;;  %1589 = vadd.xlane.f32.xlu1 %v1588_v16  ;;  %v3475_v58 = vld [vmem:[%s4425_s1 + $0xb8] sm:$0xff]   ;;  %v4001_v16 = vshrl.u32 %v3790_v61, 16 }
  0x40   : > { %3206 = vmatpush3.bf16.msra.mxu0 %v3458_v60  ;;  %3047 = vmatprep.subr.bf16.mxu1 %v3579_v1  ;;  %v2249_v60 = vsel %vm515_vm13, %v3724_v40, 0.0 }
  0x41   : > { %3207 = vmatprep.subr.bf16.mxu0 %v3579_v1 }
  0x42   : > { %1719 = vadd.xlane.f32.xlu0 %v1718_v13  ;;  %v3995_v13 = vshrl.u32 %v3700_v31, 16 }
  0x43   : > { %3048 = vmatpush3.bf16.msra.mxu1 %v3459_v63  ;;  %1722 = vadd.xlane.f32.xlu1 %v1721_v23  ;;  %v1487_v63 = vor.u32 %v1486_v52, %v1485_v51  ;;  %v1622_v23 = vrot.slane %v4001_v16, 2  ;;  %v3501_v51 = vld [vmem:[%s4425_s1 + $0x120] sm:$0xff]  }
  0x44   : > { %3208 = vmatpush3.bf16.msra.mxu0 %v3460_v2  ;;  %3053 = vmatprep.subr.bf16.mxu1 %v3579_v1  ;;  %v410_v2 = vsel %vm398_vm15, %v405_v59, %v409_v57  ;;  %v3502_v52 = vld [vmem:[%s4425_s1 + $0x320] sm:$0xff]   ;;  %v3508_v57 = vld [vmem:[%s4425_s1 + $0x338] sm:$0xff]  }
  0x45   : > { %3213 = vmatprep.subr.bf16.mxu0 %v3579_v1  ;;  %v3510_v59 = vld [vmem:[%s4425_s1 + $0x340] sm:$0xff]  }
  0x46   : > { %3050 = vmatmul.mubr.bf16.vlgmr.msra.gmra.mrb[0].mxu1 %v3682_v24  ;;  %1850 = vadd.xlane.f32.xlu0 %v1849_v18  ;;  %v1981_v24 = vsel %vm791_vm2, %v3724_v40, 0.0  ;;  %v1491_v40 = vsel %vm1484_vm1, %v1487_v63, %v1490_v0  ;;  %v3514_v0 = vld [vmem:[%s4425_s1 + $0x350] sm:$0xff]  }
  0x47   : > { %3054 = vmatpush3.bf16.msra.mxu1 %v3461_v6  ;;  %3210 = vmatmul.mubr.bf16.vlgmr.msra.gmra.mrb[0].mxu0 %v1357_v8  ;;  %v3481_v6 = vld [vmem:[%s4425_s1 + $0xd0] sm:$0xff]   ;;  %v3483_v8 = vld [vmem:[%s4425_s1 + $0xd8] sm:$0xff]  }
  0x48   : > { %3214 = vmatpush3.bf16.msra.mxu0 %v3462_v9  ;;  %3055 = vmatprep.subr.bf16.mxu1 %v3579_v1  ;;  %v3484_v9 = vld [vmem:[%s4425_s1 + $0x2d8] sm:$0xff]  }
  0x49   : > { %3215 = vmatprep.subr.bf16.mxu0 %v3579_v1  ;;  %3069 = vmatprep.mubr.msk.bf16.mxu1 %vm3580_vm0, %v3579_v1 }
  0x4a   : > { %3229 = vmatprep.mubr.msk.bf16.mxu0 %vm3580_vm0, %v3579_v1  ;;  %1979 = vadd.xlane.f32.xlu0 %v1978_v28 }
  0x4b   : > { %3056 = vmatpush3.bf16.msra.mxu1 %v3463_v10  ;;  %1853 = vadd.xlane.f32.xlu1 %v1852_v38  ;;  %v3485_v10 = vld [vmem:[%s4425_s1 + $0xe0] sm:$0xff]  }
  0x4c   : > { %3216 = vmatpush3.bf16.msra.mxu0 %v3464_v12  ;;  %3057 = vmatprep.subr.bf16.mxu1 %v3579_v1  ;;  %v3991_v12 = vshll.u32 %v3700_v31, 16  ;;  %v4009_v31 = vshll.u32 %v3790_v61, 16  ;;  %v3490_v61 = vld [vmem:[%s4425_s1 + $0x2f0] sm:$0xff]   ;;  %v3493_v38 = vld [vmem:[%s4425_s1 + $0x100] sm:$0xff]  }
  0x4d   : > { %3217 = vmatprep.subr.bf16.mxu0 %v3579_v1 }
  0x4e   : > { %2114 = vadd.xlane.f32.xlu0 %v2113_v41  ;;  %v548_v18 = vrot.slane %v3991_v12, 1  ;;  %v1620_v20 = vrot.slane %v3991_v12, 3  ;;  %v1623_v26 = vrot.slane %v4009_v31, 3  ;;  %v553_v30 = vrot.slane %v4009_v31, 1  ;;  %v3494_v41 = vld [vmem:[%s4425_s1 + $0x300] sm:$0xff]  }
  0x4f   : > { %3058 = vmatpush3.bf16.msra.mxu1 %v3465_v14  ;;  %1982 = vadd.xlane.f32.xlu1 %v1981_v24  ;;  %v3487_v14 = vld [vmem:[%s4425_s1 + $0xe8] sm:$0xff]   ;;  %v3497_v24 = vld [vmem:[%s4425_s1 + $0x110] sm:$0xff]  }
  0x50   : > { %3218 = vmatpush3.bf16.msra.mxu0 %v3466_v17  ;;  %3059 = vmatprep.subr.bf16.mxu1 %v3579_v1  ;;  %v3488_v17 = vld [vmem:[%s4425_s1 + $0x2e8] sm:$0xff]   ;;  %v549_v28 = vor.u32 %v548_v18, %v3995_v13 }
  0x51   : > { %3219 = vmatprep.subr.bf16.mxu0 %v3579_v1 }
  0x52   : > { %2247 = vadd.xlane.f32.xlu0 %v2246_v49  ;;  %v554_v37 = vsel %vm398_vm15, %v549_v28, %v553_v30  ;;  %v3499_v49 = vld [vmem:[%s4425_s1 + $0x118] sm:$0xff]   ;;  %v3521_v28 = vld [vmem:[%s4425_s1 + $0x170] sm:$0xff]  }
  0x53   : > { %3060 = vmatpush3.bf16.msra.mxu1 %v3467_v19  ;;  %2117 = vadd.xlane.f32.xlu1 %v2116_v22  ;;  %v1619_v19 = vrot.slane %v3995_v13, 2  ;;  %v3505_v22 = vld [vmem:[%s4425_s1 + $0x130] sm:$0xff]  }
  0x54   : > { %3220 = vmatpush3.bf16.msra.mxu0 %v3468_v21  ;;  %3061 = vmatprep.subr.bf16.mxu1 %v3579_v1  ;;  %v3489_v21 = vld [vmem:[%s4425_s1 + $0xf0] sm:$0xff]  }
  0x55   : > { %3221 = vmatprep.subr.bf16.mxu0 %v3579_v1  ;;  %v1621_v34 = vor.u32 %v1620_v20, %v1619_v19  ;;  %v3520_v19 = vld [vmem:[%s4425_s1 + $0x368] sm:$0xff]  }
  0x56   : > { %2372 = vadd.xlane.f32.xlu0 %v3706_v33  ;;  %v3477_v33 = vld [vmem:[%s4425_s1 + $0xc0] sm:$0xff]  }
  0x57   : > { %3062 = vmatpush3.bf16.msra.mxu1 %v3469_v32  ;;  %2250 = vadd.xlane.f32.xlu1 %v2249_v60  ;;  %v3492_v32 = vld [vmem:[%s4425_s1 + $0x2f8] sm:$0xff]   ;;  %v3511_v60 = vld [vmem:[%s4425_s1 + $0x148] sm:$0xff]  }
  0x58   : > { %3222 = vmatpush3.bf16.msra.mxu0 %v3470_v35  ;;  %3063 = vmatprep.subr.bf16.mxu1 %v3579_v1  ;;  %v1624_v35 = vor.u32 %v1623_v26, %v1622_v23 }
  0x59   : > { %3223 = vmatprep.subr.bf16.mxu0 %v3579_v1 }
  0x5a   : > { %v1625_v39 = vsel %vm1484_vm1, %v1621_v34, %v1624_v35  ;;  %v3522_v34 = vld [vmem:[%s4425_s1 + $0x370] sm:$0xff]  }
  0x5b   : > { %3064 = vmatpush3.bf16.msra.mxu1 %v3471_v48  ;;  %v3496_v48 = vld [vmem:[%s4425_s1 + $0x308] sm:$0xff]  }
  0x5c   : > { %3224 = vmatpush3.bf16.msra.mxu0 %v3472_v25  ;;  %3065 = vmatprep.subr.bf16.mxu1 %v3579_v1  ;;  %v3498_v25 = vld [vmem:[%s4425_s1 + $0x310] sm:$0xff]  }
  0x5d   : > { %3225 = vmatprep.subr.bf16.mxu0 %v3579_v1 }
  0x5f   : > { %3066 = vmatpush3.bf16.msra.mxu1 %v3473_v54  ;;  %v3504_v54 = vld [vmem:[%s4425_s1 + $0x328] sm:$0xff]  }
  0x60   : > { %3226 = vmatpush3.bf16.msra.mxu0 %v3474_v55  ;;  %3067 = vmatprep.subr.bf16.mxu1 %v3579_v1  ;;  %v3506_v55 = vld [vmem:[%s4425_s1 + $0x330] sm:$0xff]  }
  0x61   : > { %3227 = vmatprep.subr.bf16.mxu0 %v3579_v1 }
  0x63   : > { %3068 = vmatpush3.bf16.msra.mxu1 %v3475_v58  ;;  %v3509_v58 = vld [vmem:[%s4425_s1 + $0x140] sm:$0xff]  }
  0x64   : > { %3228 = vmatpush3.bf16.msra.mxu0 %v3476_v62  ;;  %3073 = vmatprep.subr.bf16.mxu1 %v3579_v1  ;;  %v3512_v62 = vld [vmem:[%s4425_s1 + $0x348] sm:$0xff]  }
  0x65   : > { %3233 = vmatprep.subr.bf16.mxu0 %v3579_v1 }
  0x66   : > { %3070 = vmatmul.mubr.bf16.vlgmr.msra.gmra.mrb[0].mxu1 %v410_v2 }
  0x67   : > { %3074 = vmatpush3.bf16.msra.mxu1 %v3477_v33  ;;  %3230 = vmatmul.mubr.bf16.vlgmr.msra.gmra.mrb[0].mxu0 %v1491_v40  ;;  %v3515_v40 = vld [vmem:[%s4425_s1 + $0x158] sm:$0xff]  }
  0x68   : > { %3234 = vmatpush3.bf16.msra.mxu0 %v3478_v3  ;;  %3075 = vmatprep.subr.bf16.mxu1 %v3579_v1  ;;  %v3516_v3 = vld [vmem:[%s4425_s1 + $0x358] sm:$0xff]  }
  0x69   : > { %3235 = vmatprep.subr.bf16.mxu0 %v3579_v1  ;;  %3089 = vmatprep.mubr.msk.bf16.mxu1 %vm3580_vm0, %v3579_v1 }
  0x6a   : > { %3249 = vmatprep.mubr.msk.bf16.mxu0 %vm3580_vm0, %v3579_v1 }
  0x6b   : > { %3076 = vmatpush3.bf16.msra.mxu1 %v3479_v4 }
  0x6c   : > { %3236 = vmatpush3.bf16.msra.mxu0 %v3480_v5  ;;  %3077 = vmatprep.subr.bf16.mxu1 %v3579_v1 }
  0x6d   : > { %3237 = vmatprep.subr.bf16.mxu0 %v3579_v1 }
  0x6f   : > { %3078 = vmatpush3.bf16.msra.mxu1 %v3481_v6 }
  0x70   : > { %3238 = vmatpush3.bf16.msra.mxu0 %v3482_v7  ;;  %3079 = vmatprep.subr.bf16.mxu1 %v3579_v1 }
  0x71   : > { %3239 = vmatprep.subr.bf16.mxu0 %v3579_v1 }
  0x73   : > { %3080 = vmatpush3.bf16.msra.mxu1 %v3483_v8  ;;  %v3517_v8 = vld [vmem:[%s4425_s1 + $0x160] sm:$0xff]  }
  0x74   : > { %3240 = vmatpush3.bf16.msra.mxu0 %v3484_v9  ;;  %3081 = vmatprep.subr.bf16.mxu1 %v3579_v1  ;;  %v3518_v9 = vld [vmem:[%s4425_s1 + $0x360] sm:$0xff]  }
  0x75   : > { %3241 = vmatprep.subr.bf16.mxu0 %v3579_v1 }
  0x77   : > { %3082 = vmatpush3.bf16.msra.mxu1 %v3485_v10 }
  0x78   : > { %3242 = vmatpush3.bf16.msra.mxu0 %v3486_v11  ;;  %3083 = vmatprep.subr.bf16.mxu1 %v3579_v1 }
  0x79   : > { %3243 = vmatprep.subr.bf16.mxu0 %v3579_v1 }
  0x7b   : > { %3084 = vmatpush3.bf16.msra.mxu1 %v3487_v14 }
  0x7c   : > { %3244 = vmatpush3.bf16.msra.mxu0 %v3488_v17  ;;  %3085 = vmatprep.subr.bf16.mxu1 %v3579_v1  ;;  %v3519_v17 = vld [vmem:[%s4425_s1 + $0x168] sm:$0xff]  }
  0x7d   : > { %3245 = vmatprep.subr.bf16.mxu0 %v3579_v1 }
  0x7f   : > { %3086 = vmatpush3.bf16.msra.mxu1 %v3489_v21 }
  0x80   : > { %3246 = vmatpush3.bf16.msra.mxu0 %v3490_v61  ;;  %3087 = vmatprep.subr.bf16.mxu1 %v3579_v1 }
  0x81   : > { %3247 = vmatprep.subr.bf16.mxu0 %v3579_v1 }
  0x83   : > { %3088 = vmatpush3.bf16.msra.mxu1 %v3491_v27 }
  0x84   : > { %3248 = vmatpush3.bf16.msra.mxu0 %v3492_v32  ;;  %3093 = vmatprep.subr.bf16.mxu1 %v3579_v1 }
  0x85   : > { %3253 = vmatprep.subr.bf16.mxu0 %v3579_v1 }
  0x86   : > { %3090 = vmatmul.mubr.bf16.vlgmr.msra.gmra.mrb[0].mxu1 %v554_v37 }
  0x87   : > { %3094 = vmatpush3.bf16.msra.mxu1 %v3493_v38  ;;  %3250 = vmatmul.mubr.bf16.vlgmr.msra.gmra.mrb[0].mxu0 %v1625_v39 }
  0x88   : > { %3254 = vmatpush3.bf16.msra.mxu0 %v3494_v41  ;;  %3095 = vmatprep.subr.bf16.mxu1 %v3579_v1 }
  0x89   : > { %3255 = vmatprep.subr.bf16.mxu0 %v3579_v1  ;;  %3109 = vmatprep.mubr.msk.bf16.mxu1 %vm3580_vm0, %v3579_v1 }
  0x8a   : > { %3269 = vmatprep.mubr.msk.bf16.mxu0 %vm3580_vm0, %v3579_v1 }
  0x8b   : > { %3096 = vmatpush3.bf16.msra.mxu1 %v3495_v43 }
  0x8c   : > { %3256 = vmatpush3.bf16.msra.mxu0 %v3496_v48  ;;  %3097 = vmatprep.subr.bf16.mxu1 %v3579_v1 }
  0x8d   : > { %3257 = vmatprep.subr.bf16.mxu0 %v3579_v1 }
  0x8f   : > { %3098 = vmatpush3.bf16.msra.mxu1 %v3497_v24  ;;  %v3523_v24 = vld [vmem:[%s4425_s1 + $0x178] sm:$0xff]  }
  0x90   : > { %3258 = vmatpush3.bf16.msra.mxu0 %v3498_v25  ;;  %3099 = vmatprep.subr.bf16.mxu1 %v3579_v1 }
  0x91   : > { %3259 = vmatprep.subr.bf16.mxu0 %v3579_v1 }
  0x93   : > { %3100 = vmatpush3.bf16.msra.mxu1 %v3499_v49 }
  0x94   : > { %3260 = vmatpush3.bf16.msra.mxu0 %v3500_v50  ;;  %3101 = vmatprep.subr.bf16.mxu1 %v3579_v1  ;;  %v3524_v50 = vld [vmem:[%s4425_s1 + $0x378] sm:$0xff]  }
  0x95   : > { %3261 = vmatprep.subr.bf16.mxu0 %v3579_v1 }
  0x97   : > { %3102 = vmatpush3.bf16.msra.mxu1 %v3501_v51 }
  0x98   : > { %3262 = vmatpush3.bf16.msra.mxu0 %v3502_v52  ;;  %3103 = vmatprep.subr.bf16.mxu1 %v3579_v1 }
  0x99   : > { %3263 = vmatprep.subr.bf16.mxu0 %v3579_v1 }
  0x9b   : > { %3104 = vmatpush3.bf16.msra.mxu1 %v3503_v53 }
  0x9c   : > { %3264 = vmatpush3.bf16.msra.mxu0 %v3504_v54  ;;  %3105 = vmatprep.subr.bf16.mxu1 %v3579_v1 }
  0x9d   : > { %3265 = vmatprep.subr.bf16.mxu0 %v3579_v1 }
  0x9f   : > { %3106 = vmatpush3.bf16.msra.mxu1 %v3505_v22 }
  0xa0   : > { %3266 = vmatpush3.bf16.msra.mxu0 %v3506_v55  ;;  %3107 = vmatprep.subr.bf16.mxu1 %v3579_v1 }
  0xa1   : > { %3267 = vmatprep.subr.bf16.mxu0 %v3579_v1 }
  0xa2   : > { %v171_v33 = vpop.xlane.xlu1 %170 }
  0xa3   : > { %3108 = vmatpush3.bf16.msra.mxu1 %v3507_v56  ;;  %v4121_v63 = vpop.xlane.xlu0 %172 }
  0xa4   : > { %3268 = vmatpush3.bf16.msra.mxu0 %v3508_v57  ;;  %3113 = vmatprep.subr.bf16.mxu1 %v3579_v1  ;;  %v517_v5 = vrot.slane %v4121_v63, 1  ;;  %v793_v27 = vrot.slane %v4121_v63, 2  ;;  %v1063_v56 = vrot.slane %v4121_v63, 3  ;;  %v3525_v57 = vld [vmem:[%s4425_s1 + $0x180] sm:$0xff]  }
  0xa5   : > { %3273 = vmatprep.subr.bf16.mxu0 %v3579_v1 }
  0xa6   : > { %3110 = vmatmul.mubr.bf16.vlgmr.msra.gmra.mrb[0].mxu1 %v3864_v29  ;;  %v3581_v29 = vmov 0   ;;  %v4145_v7 = vpop.xlane.xlu1 %376 }
  0xa7   : > { %3114 = vmatpush3.bf16.msra.mxu1 %v3509_v58  ;;  %3270 = vmatmul.mubr.bf16.vlgmr.msra.gmra.mrb[0].mxu0 %v3876_v36  ;;  %v3513_v36 = vld [vmem:[%s4425_s1 + $0x150] sm:$0xff]   ;;  %v375_v2 = vpop.xlane.xlu0 %374  ;;  %v658_v14 = vrot.slane %v4145_v7, 1  ;;  %v379_v30 = vadd.f32 %v4145_v7, %v4121_v63  ;;  %v924_v48 = vrot.slane %v4145_v7, 2 }
  0xa8   : > { %3274 = vmatpush3.bf16.msra.mxu0 %v3510_v59  ;;  %3115 = vmatprep.subr.bf16.mxu1 %v3579_v1  ;;  %v378_v10 = vadd.f32 %v375_v2, %v171_v33 }
  0xa9   : > { %3275 = vmatprep.subr.bf16.mxu0 %v3579_v1  ;;  %3129 = vmatprep.mubr.msk.bf16.mxu1 %vm3580_vm0, %v3579_v1 }
  0xaa   : > { %3289 = vmatprep.mubr.msk.bf16.mxu0 %vm3580_vm0, %v3579_v1  ;;  %3427 = vset.pattern.permute.xlu1 %v3581_v29  ;;  %v511_v23 = vpop.xlane.xlu1 %510 }
  0xab   : > { %3116 = vmatpush3.bf16.msra.mxu1 %v3511_v60  ;;  %3428 = vset.pattern.permute.xlu0 %v3581_v29  ;;  %v507_v4 = vpop.xlane.xlu0 %506  ;;  %v519_v61 = vrot.slane %v511_v23, 1  ;;  %v3526_v60 = vld [vmem:[%s4425_s1 + $0x380] sm:$0xff]  }
  0xac   : > { %3276 = vmatpush3.bf16.msra.mxu0 %v3512_v62  ;;  %3117 = vmatprep.subr.bf16.mxu1 %v3579_v1  ;;  %v516_v6 = vrot.slane %v507_v4, 1 }
  0xad   : > { %3277 = vmatprep.subr.bf16.mxu0 %v3579_v1  ;;  %v520_v37 = vsel %vm515_vm13, %v517_v5, %v519_v61 }
  0xae   : > { %v518_v11 = vsel %vm515_vm13, %v516_v6, %v517_v5  ;;  %v653_v39 = vpop.xlane.xlu1 %652  ;;  %v524_v25 = vadd.f32 %v520_v37, %v379_v30  ;;  %v1459_v30 = vrot.slane %v4145_v7, 4  ;;  %v3532_v37 = vld [vmem:[%s4425_s1 + $0x398] sm:$0xff]  }
  0xaf   : > { %3118 = vmatpush3.bf16.msra.mxu1 %v3513_v36  ;;  %v650_v18 = vpop.xlane.xlu0 %649  ;;  %v523_v20 = vadd.f32 %v518_v11, %v378_v10  ;;  %v660_v41 = vrot.slane %v653_v39, 1 }
  0xb0   : > { %3278 = vmatpush3.bf16.msra.mxu0 %v3514_v0  ;;  %3119 = vmatprep.subr.bf16.mxu1 %v3579_v1  ;;  %v657_v21 = vrot.slane %v650_v18, 1 }
  0xb1   : > { %3279 = vmatprep.subr.bf16.mxu0 %v3579_v1  ;;  %v661_v52 = vsel %vm515_vm13, %v658_v14, %v660_v41 }
  0xb2   : > { %v659_v26 = vsel %vm515_vm13, %v657_v21, %v658_v14  ;;  %v788_v54 = vpop.xlane.xlu1 %787  ;;  %v665_v58 = vadd.f32 %v661_v52, %v524_v25  ;;  %v1330_v14 = vrot.slane %v4121_v63, 4  ;;  %v1594_v25 = vrot.slane %v4121_v63, 5  ;;  %v3534_v52 = vld [vmem:[%s4425_s1 + $0x3a0] sm:$0xff]  }
  0xb3   : > { %3120 = vmatpush3.bf16.msra.mxu1 %v3515_v40  ;;  %v784_v32 = vpop.xlane.xlu0 %783  ;;  %v664_v35 = vadd.f32 %v659_v26, %v523_v20  ;;  %v795_v22 = vrot.slane %v788_v54, 2  ;;  %v1198_v40 = vrot.slane %v4145_v7, 3  ;;  %v3530_v20 = vld [vmem:[%s4425_s1 + $0x390] sm:$0xff]  }
  0xb4   : > { %3280 = vmatpush3.bf16.msra.mxu0 %v3516_v3  ;;  %3121 = vmatprep.subr.bf16.mxu1 %v3579_v1  ;;  %v792_v38 = vrot.slane %v784_v32, 2  ;;  %v3527_v3 = vld [vmem:[%s4425_s1 + $0x188] sm:$0xff]   ;;  %v3531_v32 = vld [vmem:[%s4425_s1 + $0x198] sm:$0xff]  }
  0xb5   : > { %3281 = vmatprep.subr.bf16.mxu0 %v3579_v1  ;;  %v796_v29 = vsel %vm791_vm2, %v793_v27, %v795_v22 }
  0xb6   : > { %v794_v43 = vsel %vm791_vm2, %v792_v38, %v793_v27  ;;  %v800_v4 = vadd.f32 %v796_v29, %v665_v58 }
  0xb7   : > { %3122 = vmatpush3.bf16.msra.mxu1 %v3517_v8  ;;  %v917_v49 = vpop.xlane.xlu0 %916  ;;  %v799_v51 = vadd.f32 %v794_v43, %v664_v35 }
  0xb8   : > { %3282 = vmatpush3.bf16.msra.mxu0 %v3518_v9  ;;  %3123 = vmatprep.subr.bf16.mxu1 %v3579_v1  ;;  %v923_v53 = vrot.slane %v917_v49, 2  ;;  %v920_v0 = vpop.xlane.xlu1 %919  ;;  %v3533_v49 = vld [vmem:[%s4425_s1 + $0x1a0] sm:$0xff]  }
  0xb9   : > { %3283 = vmatprep.subr.bf16.mxu0 %v3579_v1  ;;  %v926_v2 = vrot.slane %v920_v0, 2  ;;  %v950_v0 = vrot.slane %v3891_v44, 1 }
  0xba   : > { %v925_v55 = vsel %vm791_vm2, %v923_v53, %v924_v48 }
  0xbb   : > { %3124 = vmatpush3.bf16.msra.mxu1 %v3519_v17  ;;  %v1054_v59 = vpop.xlane.xlu0 %1053  ;;  %v930_v62 = vadd.f32 %v925_v55, %v799_v51  ;;  %v927_v8 = vsel %vm791_vm2, %v924_v48, %v926_v2  ;;  %v3529_v17 = vld [vmem:[%s4425_s1 + $0x190] sm:$0xff]   ;;  %v951_v2 = vrot.slane %v3894_v45, 2  ;;  %vm949_vm2 = vsmask.f32 6400 }
  0xbc   : > { %3284 = vmatpush3.bf16.msra.mxu0 %v3520_v19  ;;  %3125 = vmatprep.subr.bf16.mxu1 %v3579_v1  ;;  %v1062_v36 = vrot.slane %v1054_v59, 3  ;;  %v1058_v10 = vpop.xlane.xlu1 %1057  ;;  %v931_v18 = vadd.f32 %v927_v8, %v800_v4  ;;  %v1727_v59 = vrot.slane %v4145_v7, 5  ;;  %v2013_v4 = vrot.slane %v3891_v44, 3  ;;  %v3538_v44 = vld [vmem:[%s4425_s1 + $0x3b0] sm:$0xff]  }
  0xbd   : > { %3285 = vmatprep.subr.bf16.mxu0 %v3579_v1 }
  0xbe   : > { %v1064_v33 = vsel %vm1061_vm11, %v1062_v36, %v1063_v56 }
  0xbf   : > { %3126 = vmatpush3.bf16.msra.mxu1 %v3521_v28  ;;  %v1191_v5 = vpop.xlane.xlu0 %1190  ;;  %v1069_v6 = vadd.f32 %v1064_v33, %v930_v62 }
  0xc0   : > { %3286 = vmatpush3.bf16.msra.mxu0 %v3522_v34  ;;  %3127 = vmatprep.subr.bf16.mxu1 %v3579_v1  ;;  %v1197_v9 = vrot.slane %v1191_v5, 3  ;;  %v1194_v26 = vpop.xlane.xlu1 %1193 }
  0xc1   : > { %3287 = vmatprep.subr.bf16.mxu0 %v3579_v1  ;;  %v1200_v27 = vrot.slane %v1194_v26, 3 }
  0xc2   : > { %v1199_v11 = vsel %vm1061_vm11, %v1197_v9, %v1198_v40 }
  0xc3   : > { %3128 = vmatpush3.bf16.msra.mxu1 %v3523_v24  ;;  %v1322_v19 = vpop.xlane.xlu0 %1321  ;;  %v1204_v21 = vadd.f32 %v1199_v11, %v1069_v6  ;;  %v1201_v39 = vsel %vm1061_vm11, %v1198_v40, %v1200_v27  ;;  %v955_v40 = vrot.slane %v3900_v47, 1  ;;  %v2014_v6 = vrot.slane %v3894_v45, 4 }
  0xc4   : > { %3288 = vmatpush3.bf16.msra.mxu0 %v3524_v50  ;;  %3133 = vmatprep.subr.bf16.mxu1 %v3579_v1  ;;  %v1329_v61 = vrot.slane %v1322_v19, 4  ;;  %v1326_v43 = vpop.xlane.xlu1 %1325  ;;  %v2016_v11 = vrot.slane %v3900_v47, 3 }
  0xc5   : > { %3293 = vmatprep.subr.bf16.mxu0 %v3579_v1  ;;  %v1332_v48 = vrot.slane %v1326_v43, 4  ;;  %v2015_v26 = vor.u32 %v2014_v6, %v2013_v4  ;;  %v3541_v43 = vld [vmem:[%s4425_s1 + $0x1c0] sm:$0xff]  }
  0xc6   : > { %3130 = vmatmul.mubr.bf16.vlgmr.msra.gmra.mrb[0].mxu1 %v3886_v42  ;;  %v3528_v42 = vld [vmem:[%s4425_s1 + $0x388] sm:$0xff]   ;;  %v1331_v28 = vsel %vm1323_vm9, %v1329_v61, %v1330_v14  ;;  %v3539_v61 = vld [vmem:[%s4425_s1 + $0x1b8] sm:$0xff]  }
  0xc7   : > { %3134 = vmatpush3.bf16.msra.mxu1 %v3525_v57  ;;  %3290 = vmatmul.mubr.bf16.vlgmr.msra.gmra.mrb[0].mxu0 %v3903_v15  ;;  %v1065_v15 = vrot.slane %v1058_v10, 3  ;;  %v1452_v35 = vpop.xlane.xlu0 %1451  ;;  %v1336_v38 = vadd.f32 %v1331_v28, %v1204_v21  ;;  %v1333_v54 = vsel %vm1323_vm9, %v1330_v14, %v1332_v48  ;;  %v2017_v14 = vrot.slane %v3897_v46, 4 }
  0xc8   : > { %3294 = vmatpush3.bf16.msra.mxu0 %v3526_v60  ;;  %3135 = vmatprep.subr.bf16.mxu1 %v3579_v1  ;;  %v1458_v41 = vrot.slane %v1452_v35, 4  ;;  %v1455_v58 = vpop.xlane.xlu1 %1454  ;;  %v3536_v60 = vld [vmem:[%s4425_s1 + $0x3a8] sm:$0xff]   ;;  %v1987_v28 = vrot.slane %v4145_v7, 6 }
  0xc9   : > { %3295 = vmatprep.subr.bf16.mxu0 %v3579_v1  ;;  %3149 = vmatprep.mubr.msk.bf16.mxu1 %vm3580_vm0, %v3579_v1  ;;  %v1066_v23 = vsel %vm1061_vm11, %v1063_v56, %v1065_v15  ;;  %v3535_v56 = vld [vmem:[%s4425_s1 + $0x1a8] sm:$0xff]   ;;  %v1461_v29 = vrot.slane %v1455_v58, 4  ;;  %v1858_v15 = vrot.slane %v4121_v63, 6 }
  0xca   : > { %3309 = vmatprep.mubr.msk.bf16.mxu0 %vm3580_vm0, %v3579_v1  ;;  %v1070_v34 = vadd.f32 %v1066_v23, %v931_v18  ;;  %v1460_v24 = vsel %vm1323_vm9, %v1458_v41, %v1459_v30 }
  0xcb   : > { %3136 = vmatpush3.bf16.msra.mxu1 %v3527_v3  ;;  %v1587_v51 = vpop.xlane.xlu0 %1586  ;;  %v1465_v53 = vadd.f32 %v1460_v24, %v1336_v38  ;;  %v956_v3 = vrot.slane %v3897_v46, 2  ;;  %v1462_v5 = vsel %vm1323_vm9, %v1459_v30, %v1461_v29  ;;  %v3540_v30 = vld [vmem:[%s4425_s1 + $0x3b8] sm:$0xff]  }
  0xcc   : > { %3296 = vmatpush3.bf16.msra.mxu0 %v3528_v42  ;;  %3137 = vmatprep.subr.bf16.mxu1 %v3579_v1  ;;  %v1205_v50 = vadd.f32 %v1201_v39, %v1070_v34  ;;  %v1593_v22 = vrot.slane %v1587_v51, 5  ;;  %v3537_v42 = vld [vmem:[%s4425_s1 + $0x1b0] sm:$0xff]   ;;  %v1590_v10 = vpop.xlane.xlu1 %1589  ;;  %v3542_v51 = vld [vmem:[%s4425_s1 + $0x3c0] sm:$0xff]  }
  0xcd   : > { %3297 = vmatprep.subr.bf16.mxu0 %v3579_v1  ;;  %v1596_v18 = vrot.slane %v1590_v10, 5  ;;  %v957_v21 = vor.u32 %v956_v3, %v955_v40  ;;  %v3547_v10 = vld [vmem:[%s4425_s1 + $0x1d8] sm:$0xff]  }
  0xce   : > { %v1595_v55 = vsel %vm1055_vm7, %v1593_v22, %v1594_v25  ;;  %v1337_v57 = vadd.f32 %v1333_v54, %v1205_v50 }
  0xcf   : > { %3138 = vmatpush3.bf16.msra.mxu1 %v3529_v17  ;;  %v1600_v62 = vadd.f32 %v1595_v55, %v1465_v53  ;;  %v1720_v36 = vpop.xlane.xlu0 %1719  ;;  %v1597_v23 = vsel %vm1055_vm7, %v1594_v25, %v1596_v18 }
  0xd0   : > { %3298 = vmatpush3.bf16.msra.mxu0 %v3530_v20  ;;  %3139 = vmatprep.subr.bf16.mxu1 %v3579_v1  ;;  %v1726_v33 = vrot.slane %v1720_v36, 5  ;;  %v1466_v8 = vadd.f32 %v1462_v5, %v1337_v57  ;;  %v952_v20 = vor.u32 %v951_v2, %v950_v0  ;;  %v1723_v46 = vpop.xlane.xlu1 %1722  ;;  %v3546_v5 = vld [vmem:[%s4425_s1 + $0x3d0] sm:$0xff]  }
  0xd1   : > { %3299 = vmatprep.subr.bf16.mxu0 %v3579_v1  ;;  %v1729_v35 = vrot.slane %v1723_v46, 5  ;;  %v1089_v46 = vrot.slane %v3991_v12, 2 }
  0xd2   : > { %v1728_v9 = vsel %vm1055_vm7, %v1726_v33, %v1727_v59  ;;  %v1601_v27 = vadd.f32 %v1597_v23, %v1466_v8  ;;  %v958_v41 = vsel %vm949_vm2, %v952_v20, %v957_v21  ;;  %v3545_v33 = vld [vmem:[%s4425_s1 + $0x1d0] sm:$0xff]   ;;  %v3550_v20 = vld [vmem:[%s4425_s1 + $0x3e0] sm:$0xff]   ;;  %v3551_v23 = vld [vmem:[%s4425_s1 + $0x1e8] sm:$0xff]  }
  0xd3   : > { %3140 = vmatpush3.bf16.msra.mxu1 %v3531_v32  ;;  %v1733_v17 = vadd.f32 %v1728_v9, %v1600_v62  ;;  %v1851_v45 = vpop.xlane.xlu0 %1850  ;;  %v2018_v32 = vor.u32 %v2017_v14, %v2016_v11  ;;  %v1730_v39 = vsel %vm1055_vm7, %v1727_v59, %v1729_v35  ;;  %v3544_v62 = vld [vmem:[%s4425_s1 + $0x3c8] sm:$0xff]   ;;  %v3548_v11 = vld [vmem:[%s4425_s1 + $0x3d8] sm:$0xff]   ;;  %v2147_v35 = vrot.slane %v3995_v13, 3 }
  0xd4   : > { %3300 = vmatpush3.bf16.msra.mxu0 %v3532_v37  ;;  %3141 = vmatprep.subr.bf16.mxu1 %v3579_v1  ;;  %v1857_v19 = vrot.slane %v1851_v45, 6  ;;  %v1734_v48 = vadd.f32 %v1730_v39, %v1601_v27  ;;  %v3549_v45 = vld [vmem:[%s4425_s1 + $0x1e0] sm:$0xff]   ;;  %v3553_v27 = vld [vmem:[%s4425_s1 + $0x1f0] sm:$0xff]   ;;  %v2151_v39 = vrot.slane %v4009_v31, 4 }
  0xd5   : > { %3301 = vmatprep.subr.bf16.mxu0 %v3579_v1  ;;  %v2019_v50 = vsel %vm2012_vm4, %v2015_v26, %v2018_v32  ;;  %v3552_v26 = vld [vmem:[%s4425_s1 + $0x3e8] sm:$0xff]  }
  0xd6   : > { %v1859_v47 = vsel %vm785_vm5, %v1857_v19, %v1858_v15 }
  0xd7   : > { %3142 = vmatpush3.bf16.msra.mxu1 %v3533_v49  ;;  %v1864_v34 = vadd.f32 %v1859_v47, %v1733_v17  ;;  %v1980_v37 = vpop.xlane.xlu0 %1979  ;;  %v2122_v49 = vrot.slane %v4121_v63, 7  ;;  %v1088_v47 = vrot.slane %v3995_v13, 1 }
  0xd8   : > { %3302 = vmatpush3.bf16.msra.mxu0 %v3534_v52  ;;  %3143 = vmatprep.subr.bf16.mxu1 %v3579_v1  ;;  %v1986_v38 = vrot.slane %v1980_v37, 6  ;;  %v1854_v25 = vpop.xlane.xlu1 %1853  ;;  %v2148_v37 = vrot.slane %v3991_v12, 4  ;;  %v3556_v12 = vld [vmem:[%s4425_s1 + $0x3f8] sm:$0xff]  }
  0xd9   : > { %3303 = vmatprep.subr.bf16.mxu0 %v3579_v1  ;;  %v1860_v53 = vrot.slane %v1854_v25, 6 }
  0xda   : > { %v1988_v24 = vsel %vm785_vm5, %v1986_v38, %v1987_v28  ;;  %v2150_v38 = vrot.slane %v4001_v16, 3  ;;  %v2149_v13 = vor.u32 %v2148_v37, %v2147_v35 }
  0xdb   : > { %3144 = vmatpush3.bf16.msra.mxu1 %v3535_v56  ;;  %v1993_v52 = vadd.f32 %v1988_v24, %v1864_v34  ;;  %v2115_v54 = vpop.xlane.xlu0 %2114  ;;  %v1861_v55 = vsel %vm785_vm5, %v1858_v15, %v1860_v53  ;;  %v3543_v56 = vld [vmem:[%s4425_s1 + $0x1c8] sm:$0xff]   ;;  %v3554_v34 = vld [vmem:[%s4425_s1 + $0x3f0] sm:$0xff]   ;;  %v3561_v53 = vld [vmem:[%s4425_s1 + $0x420] sm:$0xff]  }
  0xdc   : > { %3304 = vmatpush3.bf16.msra.mxu0 %v3536_v60  ;;  %3145 = vmatprep.subr.bf16.mxu1 %v3579_v1  ;;  %v2121_v22 = vrot.slane %v2115_v54, 7  ;;  %v1865_v57 = vadd.f32 %v1861_v55, %v1734_v48  ;;  %v1983_v59 = vpop.xlane.xlu1 %1982  ;;  %v2255_v60 = vrot.slane %v4145_v7, 7  ;;  %v3562_v54 = vld [vmem:[%s4425_s1 + $0x428] sm:$0xff]   ;;  %v3564_v55 = vld [vmem:[%s4425_s1 + $0x438] sm:$0xff]  }
  0xdd   : > { %3305 = vmatprep.subr.bf16.mxu0 %v3579_v1  ;;  %v1989_v36 = vrot.slane %v1983_v59, 6 }
  0xde   : > { %v2123_v58 = vsel %vm508_vm3, %v2121_v22, %v2122_v49  ;;  %v3563_v22 = vld [vmem:[%s4425_s1 + $0x430] sm:$0xff]  }
  0xdf   : > { %3146 = vmatpush3.bf16.msra.mxu1 %v3537_v42  ;;  %v2128_v29 = vadd.f32 %v2123_v58, %v1993_v52  ;;  %v2248_v0 = vpop.xlane.xlu0 %2247  ;;  %v1990_v7 = vsel %vm785_vm5, %v1987_v28, %v1989_v36  ;;  %v1093_v28 = vrot.slane %v4001_v16, 1  ;;  %v2152_v16 = vor.u32 %v2151_v39, %v2150_v38  ;;  %v3560_v52 = vld [vmem:[%s4425_s1 + $0x418] sm:$0xff]  }
  0xe0   : > { %3306 = vmatpush3.bf16.msra.mxu0 %v3538_v44  ;;  %3147 = vmatprep.subr.bf16.mxu1 %v3579_v1  ;;  %v2254_v2 = vrot.slane %v2248_v0, 7  ;;  %v1994_v40 = vadd.f32 %v1990_v7, %v1865_v57  ;;  %v2118_v4 = vpop.xlane.xlu1 %2117  ;;  %v3570_v57 = vld [vmem:[%s3650_s4 + $0x20] sm:$0xff] }
  0xe1   : > { %3307 = vmatprep.subr.bf16.mxu0 %v3579_v1  ;;  %v2124_v6 = vrot.slane %v2118_v4, 7  ;;  %v2153_v25 = vsel %vm2012_vm4, %v2149_v13, %v2152_v16 }
  0xe2   : > { %v2256_v3 = vsel %vm508_vm3, %v2254_v2, %v2255_v60 }
  0xe3   : > { %3148 = vmatpush3.bf16.msra.mxu1 %v3539_v61  ;;  %v2261_v42 = vadd.f32 %v2256_v3, %v2128_v29  ;;  %v2125_v9 = vsel %vm508_vm3, %v2122_v49, %v2124_v6  ;;  %v2373_v18 = vpop.xlane.xlu0 %2372  ;;  %v3557_v49 = vld [vmem:[%s4425_s1 + $0x400] sm:$0xff]  }
  0xe4   : > { %3308 = vmatpush3.bf16.msra.mxu0 %v3540_v30  ;;  %3153 = vmatprep.subr.bf16.mxu1 %v3579_v1  ;;  %v2251_v15 = vpop.xlane.xlu1 %2250  ;;  %v2129_v44 = vadd.f32 %v2125_v9, %v1994_v40  ;;  %v1094_v30 = vrot.slane %v4009_v31, 2 }
  0xe5   : > { %3313 = vmatprep.subr.bf16.mxu0 %v3579_v1  ;;  %v2374_v8 = vadd.f32 %v2261_v42, %v4121_v63  ;;  %v2257_v17 = vrot.slane %v2251_v15, 7 }
  0xe6   : > { %3150 = vmatmul.mubr.bf16.vlgmr.msra.gmra.mrb[0].mxu1 %v958_v41  ;;  %v3555_v41 = vld [vmem:[%s4425_s1 + $0x1f8] sm:$0xff]   ;;  %v1095_v48 = vor.u32 %v1094_v30, %v1093_v28 }
  0xe7   : > { %3154 = vmatpush3.bf16.msra.mxu1 %v3541_v43  ;;  %3310 = vmatmul.mubr.bf16.vlgmr.msra.gmra.mrb[0].mxu0 %v2019_v50  ;;  %v2376_v14 = vadd.f32 1e-06, %v2374_v8  ;;  %v2258_v63 = vsel %vm508_vm3, %v2255_v60, %v2257_v17  ;;  %v1090_v43 = vor.u32 %v1089_v46, %v1088_v47  ;;  %v3558_v50 = vld [vmem:[%s4425_s1 + $0x408] sm:$0xff]  }
  0xe8   : > { %3314 = vmatpush3.bf16.msra.mxu0 %v3542_v51  ;;  %3155 = vmatprep.subr.bf16.mxu1 %v3579_v1  ;;  %v2262_v19 = vadd.f32 %v2258_v63, %v2129_v44  ;;  %v3559_v51 = vld [vmem:[%s4425_s1 + $0x410] sm:$0xff]  }
  0xe9   : > { %3315 = vmatprep.subr.bf16.mxu0 %v3579_v1  ;;  %3169 = vmatprep.mubr.msk.bf16.mxu1 %vm3580_vm0, %v3579_v1  ;;  %3565 = vrsqrt.f32 %v2376_v14  ;;  %v1096_v24 = vsel %vm949_vm2, %v1090_v43, %v1095_v48 }
  0xea   : > { %3329 = vmatprep.mubr.msk.bf16.mxu0 %vm3580_vm0, %v3579_v1  ;;  %v2375_v21 = vadd.f32 %v2373_v18, %v2262_v19 }
  0xeb   : > { %3156 = vmatpush3.bf16.msra.mxu1 %v3543_v56  ;;  %v3569_v56 = vld [vmem:[%s3650_s4 + $0x10] sm:$0xff]  ;;  %s2859_s4 = sshll.u32 %s4428_s10, 4 }
  0xec   : > { %3316 = vmatpush3.bf16.msra.mxu0 %v3544_v62  ;;  %3157 = vmatprep.subr.bf16.mxu1 %v3579_v1  ;;  %v2377_v61 = vadd.f32 1e-06, %v2375_v21  ;;  %v2263_v58 = vpack.c.bf16 %v3570_v57, %v3569_v56  ;;  %s143_s13 = scalar_lea.vmem %s4426_s2, %s2859_s4 }
  0xed   : > { %3317 = vmatprep.subr.bf16.mxu0 %v3579_v1 }
  0xee   : > { %3567 = vrsqrt.f32 %v2377_v61 }
  0xef   : > { %3158 = vmatpush3.bf16.msra.mxu1 %v3545_v33 }
  0xf0   : > { %3318 = vmatpush3.bf16.msra.mxu0 %v3546_v5  ;;  %3159 = vmatprep.subr.bf16.mxu1 %v3579_v1 }
  0xf1   : > { %3319 = vmatprep.subr.bf16.mxu0 %v3579_v1 }
  0xf3   : > { %3160 = vmatpush3.bf16.msra.mxu1 %v3547_v10  ;;  %v3566_v32 = vpop.eup %3565 }
  0xf4   : > { %3320 = vmatpush3.bf16.msra.mxu0 %v3548_v11  ;;  %3161 = vmatprep.subr.bf16.mxu1 %v3579_v1 }
  0xf5   : > { %3321 = vmatprep.subr.bf16.mxu0 %v3579_v1  ;;  %2384 = vperm.xlu1 %3427, %v3566_v32  }
  0xf7   : > { %3162 = vmatpush3.bf16.msra.mxu1 %v3549_v45 }
  0xf8   : > { %3322 = vmatpush3.bf16.msra.mxu0 %v3550_v20  ;;  %3163 = vmatprep.subr.bf16.mxu1 %v3579_v1  ;;  %v3568_v31 = vpop.eup %3567 }
  0xf9   : > { %3323 = vmatprep.subr.bf16.mxu0 %v3579_v1  ;;  %2389 = vperm.xlu0 %3428, %v3568_v31  }
  0xfb   : > { %3164 = vmatpush3.bf16.msra.mxu1 %v3551_v23 }
  0xfc   : > { %3324 = vmatpush3.bf16.msra.mxu0 %v3552_v26  ;;  %3165 = vmatprep.subr.bf16.mxu1 %v3579_v1 }
  0xfd   : > { %3325 = vmatprep.subr.bf16.mxu0 %v3579_v1 }
  0xff   : > { %3166 = vmatpush3.bf16.msra.mxu1 %v3553_v27 }
 0x100   : > { %3326 = vmatpush3.bf16.msra.mxu0 %v3554_v34  ;;  %3167 = vmatprep.subr.bf16.mxu1 %v3579_v1 }
 0x101   : > { %3327 = vmatprep.subr.bf16.mxu0 %v3579_v1 }
 0x103   : > { %3168 = vmatpush3.bf16.msra.mxu1 %v3555_v41 }
 0x104   : > { %3328 = vmatpush3.bf16.msra.mxu0 %v3556_v12 }
 0x105   : > { %3333 = vmatprep.subr.bf16.mxu0 %v3579_v1 }
 0x106   : > { %3170 = vmatmul.mubr.bf16.vlgmr.msra.gmra.mrb[0].mxu1 %v1096_v24 }
 0x107   : > { %3330 = vmatmul.mubr.bf16.vlgmr.msra.gmra.mrb[0].mxu0 %v2153_v25 }
 0x108   : > { %3334 = vmatpush3.bf16.msra.mxu0 %v3557_v49  ;;  %3349 = vmatprep.mubr.msk.bf16.mxu0 %vm3580_vm0, %v3579_v1 }
 0x109   : > { %3335 = vmatprep.subr.bf16.mxu0 %v3579_v1 }
 0x10c   : > { %3336 = vmatpush3.bf16.msra.mxu0 %v3558_v50 }
 0x10d   : > { %3337 = vmatprep.subr.bf16.mxu0 %v3579_v1 }
 0x110   : > { %3338 = vmatpush3.bf16.msra.mxu0 %v3559_v51 }
 0x111   : > { %3339 = vmatprep.subr.bf16.mxu0 %v3579_v1 }
 0x114   : > { %3340 = vmatpush3.bf16.msra.mxu0 %v3560_v52 }
 0x115   : > { %3341 = vmatprep.subr.bf16.mxu0 %v3579_v1 }
 0x118   : > { %3342 = vmatpush3.bf16.msra.mxu0 %v3561_v53 }
 0x119   : > { %3343 = vmatprep.subr.bf16.mxu0 %v3579_v1 }
 0x11c   : > { %3344 = vmatpush3.bf16.msra.mxu0 %v3562_v54 }
 0x11d   : > { %3345 = vmatprep.subr.bf16.mxu0 %v3579_v1 }
 0x120   : > { %3346 = vmatpush3.bf16.msra.mxu0 %v3563_v22 }
 0x121   : > { %3347 = vmatprep.subr.bf16.mxu0 %v3579_v1 }
 0x124   : > { %3348 = vmatpush3.bf16.msra.mxu0 %v3564_v55 }
 0x127   : > { %3350 = vmatmul.mubr.bf16.vlgmr.msra.gmra.mrb[0].mxu0 %v2263_v58 }
 0x174   : > { %v2385_v4 = vpop.permute.xlu1 %2384 }
 0x178   : > { %v2390_v42 = vpop.permute.xlu0 %2389 }
 0x1d9   : > { %v1180_v59 = vpop.f32.mrb[0].mxu1 }
 0x1da   : > { %v3171_v60 = vpop.f32.mrb[1].mxu1 }
 0x1db   : > { %v1183_v62 = vpop.f32.mrb[2].mxu1 }
 0x1dc   : > { %v3172_v29 = vpop.f32.mrb[3].mxu1 }
 0x1fa   : > { %v2363_v36 = vpop.f32.mrb[0].mxu0 }
 0x1fb   : > { %v3353_v0 = vadd.f32 %v2363_v36, %v1180_v59  ;;  %v3351_v2 = vpop.f32.mrb[1].mxu0 }
 0x1fc   : > { %v2366_v7 = vpop.f32.mrb[2].mxu0 }
 0x1fd   : > { %v2380_v33 = vand.u32 2147483647, %v3353_v0  ;;  %v3354_v40 = vadd.f32 %v2366_v7, %v1183_v62  ;;  %v3352_v3 = vpop.f32.mrb[3].mxu0 }
 0x1ff   : > { %v2392_v5 = vmul.f32 %v2385_v4, %v2380_v33  ;;  %v2381_v1 = vand.u32 2147483647, %v3354_v40 }
 0x201   : > { %v2394_v6 = vadd.f32 1e-06, %v2392_v5  ;;  %v2393_v8 = vmul.f32 %v2390_v42, %v2381_v1 }
 0x203   : > { %v2396_v9 = vmul.f32 %v3353_v0, %v2394_v6  ;;  %v2395_v10 = vadd.f32 1e-06, %v2393_v8 }
 0x205   : > { %v2398_v15 = vmul.f32 6.0633907, %v2396_v9  ;;  %v2397_v44 = vmul.f32 %v3354_v40, %v2395_v10 }
 0x207   : > { %2400 = vst [vmem:[%s143_s13] sm:$0xff] %v2398_v15  ;;  %v2399_v11 = vmul.f32 6.0633907, %v2397_v44 }
 0x209   : > { %2401 = vst [vmem:[%s143_s13 + $0x8] sm:$0xff] %v2399_v11 }
 0x20a PF: > { %s12_s9 = sadd.s32 1, %s3577_s9  }
 0x20b   : > { %p9_p4 = scmp.ge.s32.totalorder %s12_s9, 4  }
 0x20d   :  { %11 = sbr.rel (!%p9_p4) target bundleno = 1 (0x1), region = 74 }

// kernel: bcos_transformer_forward.13
= control target key start
LH: loop header
LB: loop body
LE: loop exit
PB: predicated region body
PF: predicated region fallthrough
CT: control target
= control target key end

     0   :  { %v186_v0 = vmov 0.0   ;;  %vm187_vm0 = vmmov 0   ;;  %v128_v16 = vlaneseq  ;;  %s233_s1 = inlined_call_operand.vmem [shape: bf16[128,128], index: 1, kind: input, shape index: {}]   ;;  %s234_s0 = inlined_call_operand.vmem [shape: f32[8,128], index: 0, kind: input, shape index: {}]   ;;  %s235_s2 = inlined_call_operand.vmem [shape: f32[8,128], index: 2, kind: output, shape index: {}]  }
   0x1   :  { %154 = vmatprep.subr.bf16.mxu0 %v186_v0  ;;  %v176_v1 = vld [vmem:[%s233_s1] sm:$0xff]   ;;  %170 = vmatprep.mubr.msk.bf16.mxu0 %vm187_vm0, %v186_v0  ;;  %v177_v2 = vld [vmem:[%s233_s1 + $0x8] sm:$0xff]   ;;  %v178_v3 = vld [vmem:[%s233_s1 + $0x10] sm:$0xff]  }
   0x2   :  { %155 = vmatpush3.bf16.msra.mxu0 %v176_v1  ;;  %v12_v4 = vld [vmem:[%s234_s0] sm:$0xff]  ;;  %v179_v6 = vld [vmem:[%s233_s1 + $0x18] sm:$0xff]   ;;  %v181_v8 = vld [vmem:[%s233_s1 + $0x28] sm:$0xff]   ;;  %v129_v22 = vand.u32 127, %v128_v16 }
   0x3   :  { %156 = vmatprep.subr.bf16.mxu0 %v186_v0  ;;  %v118_v5 = vmul.f32 %v12_v4, %v12_v4  ;;  %v180_v7 = vld [vmem:[%s233_s1 + $0x20] sm:$0xff]   ;;  %v182_v9 = vld [vmem:[%s233_s1 + $0x30] sm:$0xff]   ;;  %v183_v10 = vld [vmem:[%s233_s1 + $0x38] sm:$0xff]   ;;  %v13_v11 = vpack.c.bf16 %v12_v4, %v12_v4 }
   0x4   :  { %vm130_vm1 = vcmp.eq.s32.totalorder %v129_v22, 4 }
   0x5   :  { %119 = vadd.xlane.f32.xlu0 %v118_v5 }
   0x6   :  { %157 = vmatpush3.bf16.msra.mxu0 %v177_v2 }
   0x7   :  { %158 = vmatprep.subr.bf16.mxu0 %v186_v0 }
   0xa   :  { %159 = vmatpush3.bf16.msra.mxu0 %v178_v3 }
   0xb   :  { %160 = vmatprep.subr.bf16.mxu0 %v186_v0 }
   0xe   :  { %161 = vmatpush3.bf16.msra.mxu0 %v179_v6 }
   0xf   :  { %162 = vmatprep.subr.bf16.mxu0 %v186_v0 }
  0x12   :  { %163 = vmatpush3.bf16.msra.mxu0 %v180_v7 }
  0x13   :  { %164 = vmatprep.subr.bf16.mxu0 %v186_v0 }
  0x16   :  { %165 = vmatpush3.bf16.msra.mxu0 %v181_v8 }
  0x17   :  { %166 = vmatprep.subr.bf16.mxu0 %v186_v0 }
  0x1a   :  { %167 = vmatpush3.bf16.msra.mxu0 %v182_v9 }
  0x1b   :  { %168 = vmatprep.subr.bf16.mxu0 %v186_v0 }
  0x1e   :  { %169 = vmatpush3.bf16.msra.mxu0 %v183_v10 }
  0x21   :  { %171 = vmatmul.mubr.bf16.vlgmr.msra.gmra.mrb[0].mxu0 %v13_v11 }
  0x92   :  { %v120_v12 = vpop.xlane.xlu0 %119 }
  0x93   :  { %v121_v13 = vadd.f32 1e-06, %v120_v12 }
  0x95   :  { %184 = vrsqrt.f32 %v121_v13 }
  0x9f   :  { %v185_v14 = vpop.eup %184 }
  0xf4   :  { %v112_v15 = vpop.f32.mrb[0].mxu0 }
  0xf5   :  { %v123_v17 = vand.u32 2147483647, %v112_v15  ;;  %v172_v18 = vpop.f32.mrb[1].mxu0 }
  0xf6   :  { %v115_v19 = vpop.f32.mrb[2].mxu0 }
  0xf7   :  { %v124_v20 = vmul.f32 %v185_v14, %v123_v17  ;;  %v173_v21 = vpop.f32.mrb[3].mxu0 }
  0xf9   :  { %v125_v23 = vadd.f32 1e-06, %v124_v20 }
  0xfb   :  { %v126_v24 = vmul.f32 %v125_v23, %v112_v15 }
  0xfd   :  { %v127_v25 = vmul.f32 17.67767, %v126_v24 }
  0xff   :  { %v131_v26 = vsel %vm130_vm1, 1.0, %v127_v25 }
 0x100   :  { %132 = vst [vmem:[%s235_s2] sm:$0xff] %v131_v26 }

// kernel: bcos_transformer_forward.9
= control target key start
LH: loop header
LB: loop body
LE: loop exit
PB: predicated region body
PF: predicated region fallthrough
CT: control target
= control target key end

     0   :  { %s3415_s9 = smov 0   ;;  %s4159_s0 = inlined_call_operand.vmem [shape: f32[2,16,256], index: 0, kind: input, shape index: {}]   ;;  %s4160_s1 = inlined_call_operand.vmem [shape: bf16[17,128,128], index: 1, kind: input, shape index: {}]   ;;  %s4161_s2 = inlined_call_operand.vmem [shape: f32[2,8,128], index: 2, kind: output, shape index: {}]  }
   0x1 LB: > { %s2280_s10 = sadd.s32 4294967295, %s3395_s9   ;;  %p2284_p0 = scmp.ge.s32.totalorder %s3395_s9, 1  ;;  %s3395_s9 = sphi %s3415_s9, %s12_s9  }
   0x2   : > { %p112_p1 = scmp.lt.s32.totalorder %s3395_s9, 3 }
   0x4   : > { %p113_p2 = pnand %p2284_p0, %p112_p1 }
   0x5   : > { %v3250_v0 = vld [vmem:[%s4160_s1 + $0x40] sm:$0xff] (!%p113_p2)   ;;  %v3397_v1 = vmov (!%p113_p2), 0.0   ;;  %v3252_v3 = vld [vmem:[%s4160_s1 + $0x48] sm:$0xff] (!%p113_p2)   ;;  %vm3398_vm0 = vmmov (!%p113_p2), 0   ;;  %p133_p3 = scmp.lt.s32.totalorder (!%p113_p2), %s2280_s10, 1  ;;  %v3254_v5 = vld [vmem:[%s4160_s1 + $0x50] sm:$0xff] (!%p113_p2)  }
   0x6   : > { %116 = sbr.rel (%p113_p2) target bundleno = 520 (0x208), region = 28  ;;  %2836 = vmatprep.subr.bf16.mxu1 (!%p113_p2), %v3397_v1  ;;  %2996 = vmatprep.subr.bf16.mxu0 (!%p113_p2), %v3397_v1  ;;  %v3251_v2 = vld [vmem:[%s4160_s1 + $0x200] sm:$0xff] (!%p113_p2)   ;;  %v3253_v4 = vld [vmem:[%s4160_s1 + $0x208] sm:$0xff] (!%p113_p2)   ;;  %v3255_v6 = vld [vmem:[%s4160_s1 + $0x210] sm:$0xff] (!%p113_p2)   ;;  %vm482_vm1 = vcmask (!%p113_p2), 1047553   ;;  %vm486_vm2 = vcmask (!%p113_p2), 1040384  }
   0x7   : > { %2837 = vmatpush3.bf16.msra.mxu1 (!%p113_p2), %v3250_v0  ;;  %2852 = vmatprep.mubr.msk.bf16.mxu1 (!%p113_p2), %vm3398_vm0, %v3397_v1  ;;  %v3256_v7 = vld [vmem:[%s4160_s1 + $0x58] sm:$0xff] (!%p113_p2)   ;;  %v3258_v9 = vld [vmem:[%s4160_s1 + $0x60] sm:$0xff] (!%p113_p2)   ;;  %v3260_v12 = vld [vmem:[%s4160_s1 + $0x68] sm:$0xff] (!%p113_p2)   ;;  %vm740_vm3 = vcmask (!%p113_p2), 1041408   ;;  %vm736_vm4 = vcmask (!%p113_p2), 1047554   ;;  %vm988_vm5 = vcmask (!%p113_p2), 1042432  }
   0x8   : > { %2997 = vmatpush3.bf16.msra.mxu0 (!%p113_p2), %v3251_v2  ;;  %2838 = vmatprep.subr.bf16.mxu1 (!%p113_p2), %v3397_v1  ;;  %v3257_v8 = vld [vmem:[%s4160_s1 + $0x218] sm:$0xff] (!%p113_p2)   ;;  %v3259_v10 = vld [vmem:[%s4160_s1 + $0x220] sm:$0xff] (!%p113_p2)   ;;  %v3261_v14 = vld [vmem:[%s4160_s1 + $0x228] sm:$0xff] (!%p113_p2)   ;;  %vm984_vm6 = vcmask (!%p113_p2), 1047555   ;;  %vm1235_vm7 = vcmask (!%p113_p2), 1043456   ;;  %vm1231_vm8 = vcmask (!%p113_p2), 1047556  }
   0x9   : > { %2998 = vmatprep.subr.bf16.mxu0 (!%p113_p2), %v3397_v1  ;;  %3012 = vmatprep.mubr.msk.bf16.mxu0 (!%p113_p2), %vm3398_vm0, %v3397_v1  ;;  %v3262_v18 = vld [vmem:[%s4160_s1 + $0x70] sm:$0xff] (!%p113_p2)   ;;  %v3264_v21 = vld [vmem:[%s4160_s1 + $0x78] sm:$0xff] (!%p113_p2)   ;;  %v3266_v28 = vld [vmem:[%s4160_s1] sm:$0xff] (!%p113_p2)   ;;  %vm994_vm9 = vcmask (!%p113_p2), 1044480   ;;  %vm1477_vm10 = vcmask (!%p113_p2), 1047557   ;;  %vm746_vm11 = vcmask (!%p113_p2), 1045504  }
   0xa   : > { %v3263_v19 = vld [vmem:[%s4160_s1 + $0x230] sm:$0xff] (!%p113_p2)   ;;  %v3265_v23 = vld [vmem:[%s4160_s1 + $0x238] sm:$0xff] (!%p113_p2)   ;;  %v3267_v30 = vld [vmem:[%s4160_s1 + $0x240] sm:$0xff] (!%p113_p2)   ;;  %vm1722_vm12 = vcmask (!%p113_p2), 1047558   ;;  %vm492_vm13 = vcmask (!%p113_p2), 1046528   ;;  %vm1967_vm14 = vcmask (!%p113_p2), 1047559  }
   0xb   : > { %2839 = vmatpush3.bf16.msra.mxu1 (!%p113_p2), %v3252_v3  ;;  %v3268_v32 = vld [vmem:[%s4160_s1 + $0x8] sm:$0xff] (!%p113_p2)   ;;  %v3270_v36 = vld [vmem:[%s4160_s1 + $0x10] sm:$0xff] (!%p113_p2)   ;;  %v3272_v40 = vld [vmem:[%s4160_s1 + $0x18] sm:$0xff] (!%p113_p2)  }
   0xc   : > { %2999 = vmatpush3.bf16.msra.mxu0 (!%p113_p2), %v3253_v4  ;;  %2840 = vmatprep.subr.bf16.mxu1 (!%p113_p2), %v3397_v1  ;;  %v3269_v34 = vld [vmem:[%s4160_s1 + $0x248] sm:$0xff] (!%p113_p2)   ;;  %v3271_v38 = vld [vmem:[%s4160_s1 + $0x250] sm:$0xff] (!%p113_p2)   ;;  %v3273_v41 = vld [vmem:[%s4160_s1 + $0x258] sm:$0xff] (!%p113_p2)  }
   0xd   : > { %s4163_s10 = smov (!%p133_p3, %s2280_s10), 1  ;;  %3000 = vmatprep.subr.bf16.mxu0 %v3397_v1  ;;  %v3274_v44 = vld [vmem:[%s4160_s1 + $0x20] sm:$0xff]   ;;  %v3276_v48 = vld [vmem:[%s4160_s1 + $0x28] sm:$0xff]   ;;  %v3278_v52 = vld [vmem:[%s4160_s1 + $0x30] sm:$0xff]  }
   0xe   : > { %s2682_s25 = sshll.u32 %s4163_s10, 5  ;;  %v3275_v46 = vld [vmem:[%s4160_s1 + $0x260] sm:$0xff]   ;;  %v3277_v49 = vld [vmem:[%s4160_s1 + $0x268] sm:$0xff]   ;;  %v3279_v54 = vld [vmem:[%s4160_s1 + $0x270] sm:$0xff]   ;;  %s2287_s11 = sshll.u32 %s4163_s10, 3 }
   0xf   : > { %2841 = vmatpush3.bf16.msra.mxu1 %v3254_v5  ;;  %s3465_s30 = scalar_lea.vmem %s4159_s0, %s2682_s25  ;;  %v3280_v57 = vld [vmem:[%s4160_s1 + $0x38] sm:$0xff]   ;;  %v3282_v63 = vld [vmem:[%s4160_s1 + $0x80] sm:$0xff]   ;;  %v3284_v3 = vld [vmem:[%s4160_s1 + $0x88] sm:$0xff]   ;;  %s141_s13 = scalar_lea.vmem %s4161_s2, %s2287_s11 }
  0x10   : > { %3001 = vmatpush3.bf16.msra.mxu0 %v3255_v6  ;;  %2842 = vmatprep.subr.bf16.mxu1 %v3397_v1  ;;  %v3476_v11 = vld [vmem:[%s3465_s30] sm:$0xff]  ;;  %v3490_v15 = vld [vmem:[%s3465_s30 + $0x8] sm:$0xff]  ;;  %v145_v20 = vld [vmem:[%s3465_s30 + $0x10] sm:$0xff] }
  0x11   : > { %3002 = vmatprep.subr.bf16.mxu0 %v3397_v1  ;;  %v3483_v13 = vmul.f32 %v3476_v11, %v3476_v11  ;;  %v3497_v17 = vmul.f32 %v3490_v15, %v3490_v15  ;;  %v3514_v22 = vpack.c.bf16 %v145_v20, %v3476_v11  ;;  %v3521_v24 = vmul.f32 %v145_v20, %v145_v20  ;;  %v3524_v25 = vld [vmem:[%s3465_s30 + $0x18] sm:$0xff]  ;;  %v3283_v2 = vld [vmem:[%s4160_s1 + $0x280] sm:$0xff]   ;;  %v3285_v5 = vld [vmem:[%s4160_s1 + $0x288] sm:$0xff]  }
  0x12   : > { %v168_v26 = vpack.c.bf16 %v3490_v15, %v3490_v15  ;;  %v3530_v27 = vmul.f32 %v3524_v25, %v3524_v25  ;;  %v3621_v56 = vpack.c.bf16 %v3524_v25, %v3490_v15  ;;  %v3281_v58 = vld [vmem:[%s4160_s1 + $0x278] sm:$0xff]   ;;  %v147_v61 = vpack.c.bf16 %v3476_v11, %v3476_v11  ;;  %v3293_v25 = vld [vmem:[%s4160_s1 + $0x2a8] sm:$0xff]  }
  0x13   : > { %2843 = vmatpush3.bf16.msra.mxu1 %v3256_v7  ;;  %v483_v16 = vsel %vm482_vm1, %v3483_v13, 0.0  ;;  %165 = vadd.xlane.f32.xlu1 %v3483_v13  ;;  %v1140_v29 = vrot.slane %v3514_v22, 2  ;;  %v487_v31 = vsel %vm486_vm2, %v3521_v24, 0.0  ;;  %v614_v35 = vsel %vm482_vm1, %v3497_v17, 0.0  ;;  %v3286_v7 = vld [vmem:[%s4160_s1 + $0x90] sm:$0xff]   ;;  %v3288_v11 = vld [vmem:[%s4160_s1 + $0x98] sm:$0xff]  }
  0x14   : > { %3003 = vmatpush3.bf16.msra.mxu0 %v3257_v8  ;;  %2844 = vmatprep.subr.bf16.mxu1 %v3397_v1  ;;  %v617_v33 = vsel %vm486_vm2, %v3530_v27, 0.0  ;;  %v741_v37 = vsel %vm740_vm3, %v3521_v24, 0.0  ;;  %v737_v39 = vsel %vm736_vm4, %v3483_v13, 0.0  ;;  %v864_v42 = vsel %vm740_vm3, %v3530_v27, 0.0  ;;  %v3287_v8 = vld [vmem:[%s4160_s1 + $0x290] sm:$0xff]  }
  0x15   : > { %3004 = vmatprep.subr.bf16.mxu0 %v3397_v1  ;;  %484 = vadd.xlane.f32.xlu0 %v483_v16  ;;  %v861_v43 = vsel %vm736_vm4, %v3497_v17, 0.0  ;;  %v989_v45 = vsel %vm988_vm5, %v3521_v24, 0.0  ;;  %v985_v47 = vsel %vm984_vm6, %v3483_v13, 0.0  ;;  %v1113_v50 = vsel %vm988_vm5, %v3530_v27, 0.0  ;;  %v3290_v16 = vld [vmem:[%s4160_s1 + $0xa0] sm:$0xff]  }
  0x16   : > { %v1110_v51 = vsel %vm984_vm6, %v3497_v17, 0.0  ;;  %v1236_v53 = vsel %vm1235_vm7, %v3521_v24, 0.0  ;;  %v1232_v55 = vsel %vm1231_vm8, %v3483_v13, 0.0  ;;  %v1357_v59 = vsel %vm1235_vm7, %v3530_v27, 0.0 }
  0x17   : > { %2845 = vmatpush3.bf16.msra.mxu1 %v3258_v9  ;;  %363 = vadd.xlane.f32.xlu1 %v3497_v17  ;;  %v1354_v60 = vsel %vm1231_vm8, %v3497_v17, 0.0  ;;  %v1263_v62 = vrot.slane %v3621_v56, 2  ;;  %v1481_v0 = vsel %vm994_vm9, %v3521_v24, 0.0  ;;  %v1478_v4 = vsel %vm1477_vm10, %v3483_v13, 0.0 }
  0x18   : > { %3005 = vmatpush3.bf16.msra.mxu0 %v3259_v10  ;;  %2846 = vmatprep.subr.bf16.mxu1 %v3397_v1  ;;  %v1604_v6 = vsel %vm994_vm9, %v3530_v27, 0.0  ;;  %v1601_v9 = vsel %vm1477_vm10, %v3497_v17, 0.0  ;;  %v1726_v10 = vsel %vm746_vm11, %v3521_v24, 0.0  ;;  %v1847_v15 = vsel %vm746_vm11, %v3530_v27, 0.0 }
  0x19   : > { %3006 = vmatprep.subr.bf16.mxu0 %v3397_v1  ;;  %488 = vadd.xlane.f32.xlu0 %v487_v31  ;;  %v1971_v20 = vsel %vm492_vm13, %v3521_v24, 0.0 }
  0x1b   : > { %2847 = vmatpush3.bf16.msra.mxu1 %v3260_v12  ;;  %618 = vadd.xlane.f32.xlu1 %v617_v33  ;;  %v1723_v12 = vsel %vm1722_vm12, %v3483_v13, 0.0  ;;  %v3296_v33 = vld [vmem:[%s4160_s1 + $0xb8] sm:$0xff]  }
  0x1c   : > { %3007 = vmatpush3.bf16.msra.mxu0 %v3261_v14  ;;  %2848 = vmatprep.subr.bf16.mxu1 %v3397_v1  ;;  %v3289_v14 = vld [vmem:[%s4160_s1 + $0x298] sm:$0xff]  }
  0x1d   : > { %3008 = vmatprep.subr.bf16.mxu0 %v3397_v1  ;;  %615 = vadd.xlane.f32.xlu0 %v614_v35 }
  0x1f   : > { %2849 = vmatpush3.bf16.msra.mxu1 %v3262_v18  ;;  %742 = vadd.xlane.f32.xlu1 %v741_v37  ;;  %v3291_v18 = vld [vmem:[%s4160_s1 + $0x2a0] sm:$0xff]  }
  0x20   : > { %3009 = vmatpush3.bf16.msra.mxu0 %v3263_v19  ;;  %2850 = vmatprep.subr.bf16.mxu1 %v3397_v1  ;;  %v1844_v19 = vsel %vm1722_vm12, %v3497_v17, 0.0 }
  0x21   : > { %3010 = vmatprep.subr.bf16.mxu0 %v3397_v1  ;;  %738 = vadd.xlane.f32.xlu0 %v737_v39  ;;  %v3301_v39 = vld [vmem:[%s4160_s1 + $0x2c8] sm:$0xff]  }
  0x23   : > { %2851 = vmatpush3.bf16.msra.mxu1 %v3264_v21  ;;  %865 = vadd.xlane.f32.xlu1 %v864_v42  ;;  %v3292_v21 = vld [vmem:[%s4160_s1 + $0xa8] sm:$0xff]   ;;  %v3304_v42 = vld [vmem:[%s4160_s1 + $0xd8] sm:$0xff]  }
  0x24   : > { %3011 = vmatpush3.bf16.msra.mxu0 %v3265_v23  ;;  %2856 = vmatprep.subr.bf16.mxu1 %v3397_v1  ;;  %v1968_v23 = vsel %vm1967_vm14, %v3483_v13, 0.0  ;;  %v3294_v13 = vld [vmem:[%s4160_s1 + $0xb0] sm:$0xff]  }
  0x25   : > { %3016 = vmatprep.subr.bf16.mxu0 %v3397_v1  ;;  %862 = vadd.xlane.f32.xlu0 %v861_v43  ;;  %v3305_v43 = vld [vmem:[%s4160_s1 + $0x2d8] sm:$0xff]  }
  0x26   : > { %2853 = vmatmul.mubr.bf16.vlgmr.msra.gmra.mrb[0].mxu1 %v168_v26  ;;  %v2094_v26 = vsel %vm492_vm13, %v3530_v27, 0.0  ;;  %v3295_v27 = vld [vmem:[%s4160_s1 + $0x2b0] sm:$0xff]  }
  0x27   : > { %2857 = vmatpush3.bf16.msra.mxu1 %v3266_v28  ;;  %3013 = vmatmul.mubr.bf16.vlgmr.msra.gmra.mrb[0].mxu0 %v1140_v29  ;;  %v3713_v28 = vshrl.u32 %v3514_v22, 16  ;;  %v3716_v29 = vshll.u32 %v3514_v22, 16 }
  0x28   : > { %3017 = vmatpush3.bf16.msra.mxu0 %v3267_v30  ;;  %2858 = vmatprep.subr.bf16.mxu1 %v3397_v1  ;;  %v2091_v30 = vsel %vm1967_vm14, %v3497_v17, 0.0 }
  0x29   : > { %3018 = vmatprep.subr.bf16.mxu0 %v3397_v1  ;;  %2872 = vmatprep.mubr.msk.bf16.mxu1 %vm3398_vm0, %v3397_v1  ;;  %v389_v31 = vrot.slane %v3716_v29, 1  ;;  %v1385_v17 = vrot.slane %v3716_v29, 3 }
  0x2a   : > { %3032 = vmatprep.mubr.msk.bf16.mxu0 %vm3398_vm0, %v3397_v1  ;;  %990 = vadd.xlane.f32.xlu1 %v989_v45  ;;  %v3307_v45 = vld [vmem:[%s4160_s1 + $0x2e0] sm:$0xff]  }
  0x2b   : > { %2859 = vmatpush3.bf16.msra.mxu1 %v3268_v32  ;;  %986 = vadd.xlane.f32.xlu0 %v985_v47  ;;  %v1384_v32 = vrot.slane %v3713_v28, 2  ;;  %v390_v35 = vor.u32 %v389_v31, %v3713_v28  ;;  %v3309_v47 = vld [vmem:[%s4160_s1 + $0x2e8] sm:$0xff]   ;;  %v3338_v31 = vld [vmem:[%s4160_s1 + $0x160] sm:$0xff]  }
  0x2c   : > { %3019 = vmatpush3.bf16.msra.mxu0 %v3269_v34  ;;  %2860 = vmatprep.subr.bf16.mxu1 %v3397_v1  ;;  %v3297_v34 = vld [vmem:[%s4160_s1 + $0x2b8] sm:$0xff]  }
  0x2d   : > { %3020 = vmatprep.subr.bf16.mxu0 %v3397_v1  ;;  %v1386_v37 = vor.u32 %v1385_v17, %v1384_v32 }
  0x2e   : > { %1114 = vadd.xlane.f32.xlu1 %v1113_v50  ;;  %v3310_v50 = vld [vmem:[%s4160_s1 + $0xf0] sm:$0xff]  }
  0x2f   : > { %2861 = vmatpush3.bf16.msra.mxu1 %v3270_v36  ;;  %1111 = vadd.xlane.f32.xlu0 %v1110_v51  ;;  %v3298_v36 = vld [vmem:[%s4160_s1 + $0xc0] sm:$0xff]   ;;  %v3311_v51 = vld [vmem:[%s4160_s1 + $0x2f0] sm:$0xff]  }
  0x30   : > { %3021 = vmatpush3.bf16.msra.mxu0 %v3271_v38  ;;  %2862 = vmatprep.subr.bf16.mxu1 %v3397_v1  ;;  %v3299_v38 = vld [vmem:[%s4160_s1 + $0x2c0] sm:$0xff]  }
  0x31   : > { %3022 = vmatprep.subr.bf16.mxu0 %v3397_v1 }
  0x32   : > { %1237 = vadd.xlane.f32.xlu1 %v1236_v53 }
  0x33   : > { %2863 = vmatpush3.bf16.msra.mxu1 %v3272_v40  ;;  %1233 = vadd.xlane.f32.xlu0 %v1232_v55  ;;  %v3302_v40 = vld [vmem:[%s4160_s1 + $0xd0] sm:$0xff]  }
  0x34   : > { %3023 = vmatpush3.bf16.msra.mxu0 %v3273_v41  ;;  %2864 = vmatprep.subr.bf16.mxu1 %v3397_v1  ;;  %v3303_v41 = vld [vmem:[%s4160_s1 + $0x2d0] sm:$0xff]  }
  0x35   : > { %3024 = vmatprep.subr.bf16.mxu0 %v3397_v1 }
  0x36   : > { %1358 = vadd.xlane.f32.xlu1 %v1357_v59  ;;  %v3314_v59 = vld [vmem:[%s4160_s1 + $0x100] sm:$0xff]  }
  0x37   : > { %2865 = vmatpush3.bf16.msra.mxu1 %v3274_v44  ;;  %1355 = vadd.xlane.f32.xlu0 %v1354_v60  ;;  %v3306_v44 = vld [vmem:[%s4160_s1 + $0xe0] sm:$0xff]  }
  0x38   : > { %3025 = vmatpush3.bf16.msra.mxu0 %v3275_v46  ;;  %2866 = vmatprep.subr.bf16.mxu1 %v3397_v1  ;;  %v3308_v46 = vld [vmem:[%s4160_s1 + $0xe8] sm:$0xff]  }
  0x39   : > { %3026 = vmatprep.subr.bf16.mxu0 %v3397_v1 }
  0x3a   : > { %1482 = vadd.xlane.f32.xlu1 %v1481_v0  ;;  %v3318_v0 = vld [vmem:[%s4160_s1 + $0x110] sm:$0xff]  }
  0x3b   : > { %2867 = vmatpush3.bf16.msra.mxu1 %v3276_v48  ;;  %1479 = vadd.xlane.f32.xlu0 %v1478_v4  ;;  %v3794_v48 = vshrl.u32 %v3621_v56, 16  ;;  %v3321_v4 = vld [vmem:[%s4160_s1 + $0x318] sm:$0xff]  }
  0x3c   : > { %3027 = vmatpush3.bf16.msra.mxu0 %v3277_v49  ;;  %2868 = vmatprep.subr.bf16.mxu1 %v3397_v1  ;;  %v3797_v49 = vshll.u32 %v3621_v56, 16 }
  0x3d   : > { %3028 = vmatprep.subr.bf16.mxu0 %v3397_v1  ;;  %v1508_v53 = vrot.slane %v3794_v48, 2 }
  0x3e   : > { %1605 = vadd.xlane.f32.xlu1 %v1604_v6  ;;  %v1509_v55 = vrot.slane %v3797_v49, 3  ;;  %v3323_v6 = vld [vmem:[%s4160_s1 + $0x320] sm:$0xff]  }
  0x3f   : > { %2869 = vmatpush3.bf16.msra.mxu1 %v3278_v52  ;;  %1602 = vadd.xlane.f32.xlu0 %v1601_v9  ;;  %v521_v52 = vrot.slane %v3797_v49, 1  ;;  %v3326_v9 = vld [vmem:[%s4160_s1 + $0x130] sm:$0xff]  }
  0x40   : > { %3029 = vmatpush3.bf16.msra.mxu0 %v3279_v54  ;;  %2870 = vmatprep.subr.bf16.mxu1 %v3397_v1  ;;  %v3312_v54 = vld [vmem:[%s4160_s1 + $0xf8] sm:$0xff]   ;;  %v1510_v60 = vor.u32 %v1509_v55, %v1508_v53 }
  0x41   : > { %3030 = vmatprep.subr.bf16.mxu0 %v3397_v1  ;;  %v3345_v55 = vld [vmem:[%s4160_s1 + $0x378] sm:$0xff]  }
  0x42   : > { %1727 = vadd.xlane.f32.xlu1 %v1726_v10  ;;  %v3327_v10 = vld [vmem:[%s4160_s1 + $0x330] sm:$0xff]  }
  0x43   : > { %2871 = vmatpush3.bf16.msra.mxu1 %v3280_v57  ;;  %1724 = vadd.xlane.f32.xlu0 %v1723_v12  ;;  %v3313_v57 = vld [vmem:[%s4160_s1 + $0x2f8] sm:$0xff]  }
  0x44   : > { %3031 = vmatpush3.bf16.msra.mxu0 %v3281_v58  ;;  %2876 = vmatprep.subr.bf16.mxu1 %v3397_v1  ;;  %v522_v58 = vor.u32 %v521_v52, %v3794_v48  ;;  %v3329_v12 = vld [vmem:[%s4160_s1 + $0x338] sm:$0xff]  }
  0x45   : > { %3036 = vmatprep.subr.bf16.mxu0 %v3397_v1  ;;  %v3344_v52 = vld [vmem:[%s4160_s1 + $0x178] sm:$0xff]  }
  0x46   : > { %2873 = vmatmul.mubr.bf16.vlgmr.msra.gmra.mrb[0].mxu1 %v147_v61  ;;  %1848 = vadd.xlane.f32.xlu1 %v1847_v15  ;;  %v3315_v61 = vld [vmem:[%s4160_s1 + $0x300] sm:$0xff]  }
  0x47   : > { %2877 = vmatpush3.bf16.msra.mxu1 %v3282_v63  ;;  %3033 = vmatmul.mubr.bf16.vlgmr.msra.gmra.mrb[0].mxu0 %v1263_v62  ;;  %v3316_v62 = vld [vmem:[%s4160_s1 + $0x108] sm:$0xff]   ;;  %v3330_v15 = vld [vmem:[%s4160_s1 + $0x140] sm:$0xff]  }
  0x48   : > { %3037 = vmatpush3.bf16.msra.mxu0 %v3283_v2  ;;  %2878 = vmatprep.subr.bf16.mxu1 %v3397_v1  ;;  %v3317_v63 = vld [vmem:[%s4160_s1 + $0x308] sm:$0xff]   ;;  %v3319_v2 = vld [vmem:[%s4160_s1 + $0x310] sm:$0xff]  }
  0x49   : > { %3038 = vmatprep.subr.bf16.mxu0 %v3397_v1  ;;  %2892 = vmatprep.mubr.msk.bf16.mxu1 %vm3398_vm0, %v3397_v1 }
  0x4a   : > { %3052 = vmatprep.mubr.msk.bf16.mxu0 %vm3398_vm0, %v3397_v1  ;;  %1845 = vadd.xlane.f32.xlu0 %v1844_v19  ;;  %v3332_v19 = vld [vmem:[%s4160_s1 + $0x148] sm:$0xff]  }
  0x4b   : > { %2879 = vmatpush3.bf16.msra.mxu1 %v3284_v3  ;;  %1972 = vadd.xlane.f32.xlu1 %v1971_v20  ;;  %v3320_v3 = vld [vmem:[%s4160_s1 + $0x118] sm:$0xff]   ;;  %v3399_v20 = vmov 0  }
  0x4c   : > { %3039 = vmatpush3.bf16.msra.mxu0 %v3285_v5  ;;  %2880 = vmatprep.subr.bf16.mxu1 %v3397_v1  ;;  %v3322_v5 = vld [vmem:[%s4160_s1 + $0x120] sm:$0xff]  }
  0x4d   : > { %3040 = vmatprep.subr.bf16.mxu0 %v3397_v1  ;;  %3248 = vset.pattern.permute.xlu1 %v3399_v20 }
  0x4e   : > { %1969 = vadd.xlane.f32.xlu0 %v1968_v23 }
  0x4f   : > { %2881 = vmatpush3.bf16.msra.mxu1 %v3286_v7  ;;  %2095 = vadd.xlane.f32.xlu1 %v2094_v26  ;;  %v3324_v7 = vld [vmem:[%s4160_s1 + $0x128] sm:$0xff]  }
  0x50   : > { %3041 = vmatpush3.bf16.msra.mxu0 %v3287_v8  ;;  %2882 = vmatprep.subr.bf16.mxu1 %v3397_v1  ;;  %v3325_v8 = vld [vmem:[%s4160_s1 + $0x328] sm:$0xff]  }
  0x51   : > { %3042 = vmatprep.subr.bf16.mxu0 %v3397_v1  ;;  %3249 = vset.pattern.permute.xlu0 %v3399_v20 }
  0x52   : > { %2092 = vadd.xlane.f32.xlu0 %v2091_v30  ;;  %v3337_v30 = vld [vmem:[%s4160_s1 + $0x358] sm:$0xff]  }
  0x53   : > { %2883 = vmatpush3.bf16.msra.mxu1 %v3288_v11  ;;  %v3328_v11 = vld [vmem:[%s4160_s1 + $0x138] sm:$0xff]  }
  0x54   : > { %3043 = vmatpush3.bf16.msra.mxu0 %v3289_v14  ;;  %2884 = vmatprep.subr.bf16.mxu1 %v3397_v1  ;;  %v645_v14 = vrot.slane %v3514_v22, 1 }
  0x55   : > { %3044 = vmatprep.subr.bf16.mxu0 %v3397_v1 }
  0x56   : > { %2211 = vadd.xlane.f32.xlu0 %v3521_v24  ;;  %v3300_v24 = vld [vmem:[%s4160_s1 + $0xc8] sm:$0xff]  }
  0x57   : > { %2885 = vmatpush3.bf16.msra.mxu1 %v3290_v16  ;;  %v1631_v16 = vrot.slane %v3514_v22, 3  ;;  %v3333_v22 = vld [vmem:[%s4160_s1 + $0x348] sm:$0xff]  }
  0x58   : > { %3045 = vmatpush3.bf16.msra.mxu0 %v3291_v18  ;;  %2886 = vmatprep.subr.bf16.mxu1 %v3397_v1  ;;  %v3331_v18 = vld [vmem:[%s4160_s1 + $0x340] sm:$0xff]  }
  0x59   : > { %3046 = vmatprep.subr.bf16.mxu0 %v3397_v1 }
  0x5b   : > { %2887 = vmatpush3.bf16.msra.mxu1 %v3292_v21  ;;  %v3334_v21 = vld [vmem:[%s4160_s1 + $0x150] sm:$0xff]  }
  0x5c   : > { %3047 = vmatpush3.bf16.msra.mxu0 %v3293_v25  ;;  %2888 = vmatprep.subr.bf16.mxu1 %v3397_v1  ;;  %v3335_v25 = vld [vmem:[%s4160_s1 + $0x350] sm:$0xff]  }
  0x5d   : > { %3048 = vmatprep.subr.bf16.mxu0 %v3397_v1 }
  0x5f   : > { %2889 = vmatpush3.bf16.msra.mxu1 %v3294_v13  ;;  %v3336_v13 = vld [vmem:[%s4160_s1 + $0x158] sm:$0xff]  }
  0x60   : > { %3049 = vmatpush3.bf16.msra.mxu0 %v3295_v27  ;;  %2890 = vmatprep.subr.bf16.mxu1 %v3397_v1 }
  0x61   : > { %3050 = vmatprep.subr.bf16.mxu0 %v3397_v1 }
  0x63   : > { %2891 = vmatpush3.bf16.msra.mxu1 %v3296_v33  ;;  %v3339_v33 = vld [vmem:[%s4160_s1 + $0x360] sm:$0xff]  }
  0x64   : > { %3051 = vmatpush3.bf16.msra.mxu0 %v3297_v34  ;;  %2896 = vmatprep.subr.bf16.mxu1 %v3397_v1 }
  0x65   : > { %3056 = vmatprep.subr.bf16.mxu0 %v3397_v1 }
  0x66   : > { %2893 = vmatmul.mubr.bf16.vlgmr.msra.gmra.mrb[0].mxu1 %v390_v35  ;;  %v3340_v35 = vld [vmem:[%s4160_s1 + $0x168] sm:$0xff]  }
  0x67   : > { %2897 = vmatpush3.bf16.msra.mxu1 %v3298_v36  ;;  %3053 = vmatmul.mubr.bf16.vlgmr.msra.gmra.mrb[0].mxu0 %v1386_v37 }
  0x68   : > { %3057 = vmatpush3.bf16.msra.mxu0 %v3299_v38  ;;  %2898 = vmatprep.subr.bf16.mxu1 %v3397_v1  ;;  %v3341_v38 = vld [vmem:[%s4160_s1 + $0x368] sm:$0xff]  }
  0x69   : > { %3058 = vmatprep.subr.bf16.mxu0 %v3397_v1  ;;  %2912 = vmatprep.mubr.msk.bf16.mxu1 %vm3398_vm0, %v3397_v1 }
  0x6a   : > { %3072 = vmatprep.mubr.msk.bf16.mxu0 %vm3398_vm0, %v3397_v1 }
  0x6b   : > { %2899 = vmatpush3.bf16.msra.mxu1 %v3300_v24 }
  0x6c   : > { %3059 = vmatpush3.bf16.msra.mxu0 %v3301_v39  ;;  %2900 = vmatprep.subr.bf16.mxu1 %v3397_v1 }
  0x6d   : > { %3060 = vmatprep.subr.bf16.mxu0 %v3397_v1 }
  0x6f   : > { %2901 = vmatpush3.bf16.msra.mxu1 %v3302_v40 }
  0x70   : > { %3061 = vmatpush3.bf16.msra.mxu0 %v3303_v41  ;;  %2902 = vmatprep.subr.bf16.mxu1 %v3397_v1 }
  0x71   : > { %3062 = vmatprep.subr.bf16.mxu0 %v3397_v1 }
  0x73   : > { %2903 = vmatpush3.bf16.msra.mxu1 %v3304_v42  ;;  %v3342_v42 = vld [vmem:[%s4160_s1 + $0x170] sm:$0xff]  }
  0x74   : > { %3063 = vmatpush3.bf16.msra.mxu0 %v3305_v43  ;;  %2904 = vmatprep.subr.bf16.mxu1 %v3397_v1 }
  0x75   : > { %3064 = vmatprep.subr.bf16.mxu0 %v3397_v1 }
  0x77   : > { %2905 = vmatpush3.bf16.msra.mxu1 %v3306_v44 }
  0x78   : > { %3065 = vmatpush3.bf16.msra.mxu0 %v3307_v45  ;;  %2906 = vmatprep.subr.bf16.mxu1 %v3397_v1  ;;  %v3343_v45 = vld [vmem:[%s4160_s1 + $0x370] sm:$0xff]  }
  0x79   : > { %3066 = vmatprep.subr.bf16.mxu0 %v3397_v1 }
  0x7b   : > { %2907 = vmatpush3.bf16.msra.mxu1 %v3308_v46 }
  0x7c   : > { %3067 = vmatpush3.bf16.msra.mxu0 %v3309_v47  ;;  %2908 = vmatprep.subr.bf16.mxu1 %v3397_v1 }
  0x7d   : > { %3068 = vmatprep.subr.bf16.mxu0 %v3397_v1 }
  0x7f   : > { %2909 = vmatpush3.bf16.msra.mxu1 %v3310_v50 }
  0x80   : > { %3069 = vmatpush3.bf16.msra.mxu0 %v3311_v51  ;;  %2910 = vmatprep.subr.bf16.mxu1 %v3397_v1 }
  0x81   : > { %3070 = vmatprep.subr.bf16.mxu0 %v3397_v1 }
  0x83   : > { %2911 = vmatpush3.bf16.msra.mxu1 %v3312_v54 }
  0x84   : > { %3071 = vmatpush3.bf16.msra.mxu0 %v3313_v57  ;;  %2916 = vmatprep.subr.bf16.mxu1 %v3397_v1 }
  0x85   : > { %3076 = vmatprep.subr.bf16.mxu0 %v3397_v1 }
  0x86   : > { %2913 = vmatmul.mubr.bf16.vlgmr.msra.gmra.mrb[0].mxu1 %v522_v58 }
  0x87   : > { %2917 = vmatpush3.bf16.msra.mxu1 %v3314_v59  ;;  %3073 = vmatmul.mubr.bf16.vlgmr.msra.gmra.mrb[0].mxu0 %v1510_v60 }
  0x88   : > { %3077 = vmatpush3.bf16.msra.mxu0 %v3315_v61  ;;  %2918 = vmatprep.subr.bf16.mxu1 %v3397_v1  ;;  %v770_v61 = vrot.slane %v3621_v56, 1 }
  0x89   : > { %3078 = vmatprep.subr.bf16.mxu0 %v3397_v1  ;;  %2932 = vmatprep.mubr.msk.bf16.mxu1 %vm3398_vm0, %v3397_v1 }
  0x8a   : > { %3092 = vmatprep.mubr.msk.bf16.mxu0 %vm3398_vm0, %v3397_v1 }
  0x8b   : > { %2919 = vmatpush3.bf16.msra.mxu1 %v3316_v62  ;;  %v3346_v62 = vld [vmem:[%s4160_s1 + $0x180] sm:$0xff]  }
  0x8c   : > { %3079 = vmatpush3.bf16.msra.mxu0 %v3317_v63  ;;  %2920 = vmatprep.subr.bf16.mxu1 %v3397_v1  ;;  %v1753_v63 = vrot.slane %v3621_v56, 3  ;;  %v3348_v56 = vld [vmem:[%s4160_s1 + $0x188] sm:$0xff]  }
  0x8d   : > { %3080 = vmatprep.subr.bf16.mxu0 %v3397_v1 }
  0x8f   : > { %2921 = vmatpush3.bf16.msra.mxu1 %v3318_v0 }
  0x90   : > { %3081 = vmatpush3.bf16.msra.mxu0 %v3319_v2  ;;  %2922 = vmatprep.subr.bf16.mxu1 %v3397_v1 }
  0x91   : > { %3082 = vmatprep.subr.bf16.mxu0 %v3397_v1 }
  0x93   : > { %2923 = vmatpush3.bf16.msra.mxu1 %v3320_v3  ;;  %v3347_v3 = vld [vmem:[%s4160_s1 + $0x380] sm:$0xff]  }
  0x94   : > { %3083 = vmatpush3.bf16.msra.mxu0 %v3321_v4  ;;  %2924 = vmatprep.subr.bf16.mxu1 %v3397_v1 }
  0x95   : > { %3084 = vmatprep.subr.bf16.mxu0 %v3397_v1 }
  0x97   : > { %2925 = vmatpush3.bf16.msra.mxu1 %v3322_v5 }
  0x98   : > { %3085 = vmatpush3.bf16.msra.mxu0 %v3323_v6  ;;  %2926 = vmatprep.subr.bf16.mxu1 %v3397_v1 }
  0x99   : > { %3086 = vmatprep.subr.bf16.mxu0 %v3397_v1 }
  0x9b   : > { %2927 = vmatpush3.bf16.msra.mxu1 %v3324_v7 }
  0x9c   : > { %3087 = vmatpush3.bf16.msra.mxu0 %v3325_v8  ;;  %2928 = vmatprep.subr.bf16.mxu1 %v3397_v1 }
  0x9d   : > { %3088 = vmatprep.subr.bf16.mxu0 %v3397_v1 }
  0x9f   : > { %2929 = vmatpush3.bf16.msra.mxu1 %v3326_v9 }
  0xa0   : > { %3089 = vmatpush3.bf16.msra.mxu0 %v3327_v10  ;;  %2930 = vmatprep.subr.bf16.mxu1 %v3397_v1  ;;  %v166_v23 = vpop.xlane.xlu1 %165  ;;  %v3349_v10 = vld [vmem:[%s4160_s1 + $0x388] sm:$0xff]  }
  0xa1   : > { %3090 = vmatprep.subr.bf16.mxu0 %v3397_v1 }
  0xa2   : > { %v485_v26 = vpop.xlane.xlu0 %484 }
  0xa3   : > { %2931 = vmatpush3.bf16.msra.mxu1 %v3328_v11  ;;  %v493_v17 = vrot.slane %v485_v26, 1  ;;  %v3352_v26 = vld [vmem:[%s4160_s1 + $0x198] sm:$0xff]  }
  0xa4   : > { %3091 = vmatpush3.bf16.msra.mxu0 %v3329_v12  ;;  %2936 = vmatprep.subr.bf16.mxu1 %v3397_v1  ;;  %v364_v27 = vpop.xlane.xlu1 %363 }
  0xa5   : > { %3096 = vmatprep.subr.bf16.mxu0 %v3397_v1  ;;  %v365_v36 = vadd.f32 %v364_v27, %v166_v23  ;;  %v3353_v27 = vld [vmem:[%s4160_s1 + $0x398] sm:$0xff]  }
  0xa6   : > { %2933 = vmatmul.mubr.bf16.vlgmr.msra.gmra.mrb[0].mxu1 %v645_v14  ;;  %v489_v32 = vpop.xlane.xlu0 %488 }
  0xa7   : > { %2937 = vmatpush3.bf16.msra.mxu1 %v3330_v15  ;;  %3093 = vmatmul.mubr.bf16.vlgmr.msra.gmra.mrb[0].mxu0 %v1631_v16  ;;  %v494_v34 = vrot.slane %v489_v32, 1  ;;  %v3350_v16 = vld [vmem:[%s4160_s1 + $0x190] sm:$0xff]  }
  0xa8   : > { %3097 = vmatpush3.bf16.msra.mxu0 %v3331_v18  ;;  %2938 = vmatprep.subr.bf16.mxu1 %v3397_v1  ;;  %v619_v37 = vpop.xlane.xlu1 %618 }
  0xa9   : > { %3098 = vmatprep.subr.bf16.mxu0 %v3397_v1  ;;  %2952 = vmatprep.mubr.msk.bf16.mxu1 %vm3398_vm0, %v3397_v1  ;;  %v495_v24 = vsel %vm492_vm13, %v493_v17, %v494_v34  ;;  %v623_v39 = vrot.slane %v619_v37, 1  ;;  %v3354_v34 = vld [vmem:[%s4160_s1 + $0x1a0] sm:$0xff]  }
  0xaa   : > { %3112 = vmatprep.mubr.msk.bf16.mxu0 %vm3398_vm0, %v3397_v1  ;;  %v616_v40 = vpop.xlane.xlu0 %615  ;;  %v497_v43 = vadd.f32 %v495_v24, %v365_v36  ;;  %v3355_v37 = vld [vmem:[%s4160_s1 + $0x3a0] sm:$0xff]  }
  0xab   : > { %2939 = vmatpush3.bf16.msra.mxu1 %v3332_v19  ;;  %v622_v41 = vrot.slane %v616_v40, 1 }
  0xac   : > { %3099 = vmatpush3.bf16.msra.mxu0 %v3333_v22  ;;  %2940 = vmatprep.subr.bf16.mxu1 %v3397_v1  ;;  %v743_v44 = vpop.xlane.xlu1 %742  ;;  %v3351_v22 = vld [vmem:[%s4160_s1 + $0x390] sm:$0xff]  }
  0xad   : > { %3100 = vmatprep.subr.bf16.mxu0 %v3397_v1  ;;  %v624_v46 = vsel %vm492_vm13, %v622_v41, %v623_v39  ;;  %v748_v47 = vrot.slane %v743_v44, 2  ;;  %v3356_v39 = vld [vmem:[%s4160_s1 + $0x1a8] sm:$0xff]  }
  0xae   : > { %v739_v50 = vpop.xlane.xlu0 %738  ;;  %v626_v53 = vadd.f32 %v624_v46, %v497_v43 }
  0xaf   : > { %2941 = vmatpush3.bf16.msra.mxu1 %v3334_v21  ;;  %v747_v51 = vrot.slane %v739_v50, 2 }
  0xb0   : > { %3101 = vmatpush3.bf16.msra.mxu0 %v3335_v25  ;;  %2942 = vmatprep.subr.bf16.mxu1 %v3397_v1  ;;  %v866_v54 = vpop.xlane.xlu1 %865 }
  0xb1   : > { %3102 = vmatprep.subr.bf16.mxu0 %v3397_v1  ;;  %v749_v57 = vsel %vm746_vm11, %v747_v51, %v748_v47  ;;  %v870_v58 = vrot.slane %v866_v54, 2  ;;  %v3358_v47 = vld [vmem:[%s4160_s1 + $0x1b0] sm:$0xff]  }
  0xb2   : > { %v863_v59 = vpop.xlane.xlu0 %862  ;;  %v751_v0 = vadd.f32 %v749_v57, %v626_v53  ;;  %v892_v57 = vrot.slane %v3716_v29, 2 }
  0xb3   : > { %2943 = vmatpush3.bf16.msra.mxu1 %v3336_v13  ;;  %v869_v60 = vrot.slane %v863_v59, 2 }
  0xb4   : > { %3103 = vmatpush3.bf16.msra.mxu0 %v3337_v30  ;;  %2944 = vmatprep.subr.bf16.mxu1 %v3397_v1 }
  0xb5   : > { %3104 = vmatprep.subr.bf16.mxu0 %v3397_v1  ;;  %v871_v4 = vsel %vm746_vm11, %v869_v60, %v870_v58  ;;  %v3360_v60 = vld [vmem:[%s4160_s1 + $0x1b8] sm:$0xff]  }
  0xb6   : > { %v873_v8 = vadd.f32 %v871_v4, %v751_v0 }
  0xb7   : > { %2945 = vmatpush3.bf16.msra.mxu1 %v3338_v31  ;;  %v991_v2 = vpop.xlane.xlu1 %990 }
  0xb8   : > { %3105 = vmatpush3.bf16.msra.mxu0 %v3339_v33  ;;  %2946 = vmatprep.subr.bf16.mxu1 %v3397_v1  ;;  %v996_v5 = vrot.slane %v991_v2, 3  ;;  %v987_v6 = vpop.xlane.xlu0 %986  ;;  %v3361_v2 = vld [vmem:[%s4160_s1 + $0x3b8] sm:$0xff]  }
  0xb9   : > { %3106 = vmatprep.subr.bf16.mxu0 %v3397_v1  ;;  %v995_v7 = vrot.slane %v987_v6, 3 }
  0xbb   : > { %2947 = vmatpush3.bf16.msra.mxu1 %v3340_v35  ;;  %v1115_v9 = vpop.xlane.xlu1 %1114  ;;  %v997_v11 = vsel %vm994_vm9, %v995_v7, %v996_v5 }
  0xbc   : > { %3107 = vmatpush3.bf16.msra.mxu0 %v3341_v38  ;;  %2948 = vmatprep.subr.bf16.mxu1 %v3397_v1  ;;  %v1119_v12 = vrot.slane %v1115_v9, 3  ;;  %v1112_v14 = vpop.xlane.xlu0 %1111  ;;  %v999_v18 = vadd.f32 %v997_v11, %v873_v8  ;;  %v3363_v9 = vld [vmem:[%s4160_s1 + $0x3c0] sm:$0xff]  }
  0xbd   : > { %3108 = vmatprep.subr.bf16.mxu0 %v3397_v1  ;;  %v1118_v15 = vrot.slane %v1112_v14, 3 }
  0xbf   : > { %2949 = vmatpush3.bf16.msra.mxu1 %v3342_v42  ;;  %v1238_v19 = vpop.xlane.xlu1 %1237  ;;  %v1120_v20 = vsel %vm994_vm9, %v1118_v15, %v1119_v12  ;;  %v3357_v42 = vld [vmem:[%s4160_s1 + $0x3a8] sm:$0xff]  }
  0xc0   : > { %3109 = vmatpush3.bf16.msra.mxu0 %v3343_v45  ;;  %2950 = vmatprep.subr.bf16.mxu1 %v3397_v1  ;;  %v1242_v21 = vrot.slane %v1238_v19, 4  ;;  %v1234_v23 = vpop.xlane.xlu0 %1233  ;;  %v1122_v13 = vadd.f32 %v1120_v20, %v999_v18  ;;  %v3364_v15 = vld [vmem:[%s4160_s1 + $0x1c8] sm:$0xff]  }
  0xc1   : > { %3110 = vmatprep.subr.bf16.mxu0 %v3397_v1  ;;  %v1241_v25 = vrot.slane %v1234_v23, 4  ;;  %v3365_v19 = vld [vmem:[%s4160_s1 + $0x3c8] sm:$0xff]  }
  0xc3   : > { %2951 = vmatpush3.bf16.msra.mxu1 %v3344_v52  ;;  %v1359_v30 = vpop.xlane.xlu1 %1358  ;;  %v1243_v31 = vsel %vm1235_vm7, %v1241_v25, %v1242_v21  ;;  %v3359_v52 = vld [vmem:[%s4160_s1 + $0x3b0] sm:$0xff]  }
  0xc4   : > { %3111 = vmatpush3.bf16.msra.mxu0 %v3345_v55  ;;  %2956 = vmatprep.subr.bf16.mxu1 %v3397_v1  ;;  %v1363_v32 = vrot.slane %v1359_v30, 4  ;;  %v1356_v33 = vpop.xlane.xlu0 %1355  ;;  %v1245_v35 = vadd.f32 %v1243_v31, %v1122_v13  ;;  %v891_v55 = vrot.slane %v3713_v28, 1  ;;  %v3366_v25 = vld [vmem:[%s4160_s1 + $0x1d0] sm:$0xff]  }
  0xc5   : > { %3116 = vmatprep.subr.bf16.mxu0 %v3397_v1  ;;  %v1362_v17 = vrot.slane %v1356_v33, 4  ;;  %v3367_v30 = vld [vmem:[%s4160_s1 + $0x3d0] sm:$0xff]  }
  0xc6   : > { %2953 = vmatmul.mubr.bf16.vlgmr.msra.gmra.mrb[0].mxu1 %v770_v61  ;;  %v1874_v61 = vrot.slane %v3713_v28, 3  ;;  %v893_v5 = vor.u32 %v892_v57, %v891_v55  ;;  %v3362_v28 = vld [vmem:[%s4160_s1 + $0x1c0] sm:$0xff]   ;;  %v3383_v57 = vld [vmem:[%s4160_s1 + $0x428] sm:$0xff]  }
  0xc7   : > { %2957 = vmatpush3.bf16.msra.mxu1 %v3346_v62  ;;  %3113 = vmatmul.mubr.bf16.vlgmr.msra.gmra.mrb[0].mxu0 %v1753_v63  ;;  %v1483_v36 = vpop.xlane.xlu1 %1482  ;;  %v1364_v38 = vsel %vm1235_vm7, %v1362_v17, %v1363_v32  ;;  %v1875_v62 = vrot.slane %v3716_v29, 4  ;;  %v3368_v32 = vld [vmem:[%s4160_s1 + $0x1d8] sm:$0xff]   ;;  %v3382_v55 = vld [vmem:[%s4160_s1 + $0x420] sm:$0xff]  }
  0xc8   : > { %3117 = vmatpush3.bf16.msra.mxu0 %v3347_v3  ;;  %2958 = vmatprep.subr.bf16.mxu1 %v3397_v1  ;;  %v1487_v24 = vrot.slane %v1483_v36, 5  ;;  %v1366_v40 = vadd.f32 %v1364_v38, %v1245_v35  ;;  %v1480_v41 = vpop.xlane.xlu0 %1479  ;;  %v3370_v36 = vld [vmem:[%s4160_s1 + $0x1e0] sm:$0xff]  }
  0xc9   : > { %3118 = vmatprep.subr.bf16.mxu0 %v3397_v1  ;;  %2972 = vmatprep.mubr.msk.bf16.mxu1 %vm3398_vm0, %v3397_v1  ;;  %v1486_v43 = vrot.slane %v1480_v41, 5  ;;  %v1876_v29 = vor.u32 %v1875_v62, %v1874_v61  ;;  %v3371_v38 = vld [vmem:[%s4160_s1 + $0x3e0] sm:$0xff]   ;;  %v3375_v41 = vld [vmem:[%s4160_s1 + $0x3f0] sm:$0xff]  }
  0xca   : > { %3132 = vmatprep.mubr.msk.bf16.mxu0 %vm3398_vm0, %v3397_v1 }
  0xcb   : > { %2959 = vmatpush3.bf16.msra.mxu1 %v3348_v56  ;;  %v1606_v44 = vpop.xlane.xlu1 %1605  ;;  %v1488_v45 = vsel %vm988_vm5, %v1486_v43, %v1487_v24  ;;  %v3372_v24 = vld [vmem:[%s4160_s1 + $0x1e8] sm:$0xff]   ;;  %v1018_v43 = vrot.slane %v3797_v49, 2 }
  0xcc   : > { %3119 = vmatpush3.bf16.msra.mxu0 %v3349_v10  ;;  %2960 = vmatprep.subr.bf16.mxu1 %v3397_v1  ;;  %v1610_v46 = vrot.slane %v1606_v44, 5  ;;  %v1490_v50 = vadd.f32 %v1488_v45, %v1366_v40  ;;  %v1603_v51 = vpop.xlane.xlu0 %1602  ;;  %v3374_v40 = vld [vmem:[%s4160_s1 + $0x1f0] sm:$0xff]   ;;  %v3376_v45 = vld [vmem:[%s4160_s1 + $0x1f8] sm:$0xff]  }
  0xcd   : > { %3120 = vmatprep.subr.bf16.mxu0 %v3397_v1  ;;  %v1609_v53 = vrot.slane %v1603_v51, 5 }
  0xcf   : > { %2961 = vmatpush3.bf16.msra.mxu1 %v3350_v16  ;;  %v1728_v54 = vpop.xlane.xlu1 %1727  ;;  %v1611_v58 = vsel %vm988_vm5, %v1609_v53, %v1610_v46  ;;  %v1998_v46 = vrot.slane %v3794_v48, 3  ;;  %v3380_v53 = vld [vmem:[%s4160_s1 + $0x410] sm:$0xff]  }
  0xd0   : > { %3121 = vmatpush3.bf16.msra.mxu0 %v3351_v22  ;;  %2962 = vmatprep.subr.bf16.mxu1 %v3397_v1  ;;  %v1732_v59 = vrot.slane %v1728_v54, 6  ;;  %v1613_v63 = vadd.f32 %v1611_v58, %v1490_v50  ;;  %v1725_v0 = vpop.xlane.xlu0 %1724  ;;  %v3377_v50 = vld [vmem:[%s4160_s1 + $0x3f8] sm:$0xff]   ;;  %v3384_v58 = vld [vmem:[%s4160_s1 + $0x430] sm:$0xff]  }
  0xd1   : > { %3122 = vmatprep.subr.bf16.mxu0 %v3397_v1  ;;  %v1731_v3 = vrot.slane %v1725_v0, 6  ;;  %v3381_v54 = vld [vmem:[%s4160_s1 + $0x418] sm:$0xff]  }
  0xd3   : > { %2963 = vmatpush3.bf16.msra.mxu1 %v3352_v26  ;;  %v1849_v4 = vpop.xlane.xlu1 %1848  ;;  %v1733_v6 = vsel %vm740_vm3, %v1731_v3, %v1732_v59  ;;  %v3385_v59 = vld [vmem:[%s4160_s1 + $0x438] sm:$0xff]  }
  0xd4   : > { %3123 = vmatpush3.bf16.msra.mxu0 %v3353_v27  ;;  %2964 = vmatprep.subr.bf16.mxu1 %v3397_v1  ;;  %v1853_v7 = vrot.slane %v1849_v4, 6  ;;  %v1735_v56 = vadd.f32 %v1733_v6, %v1613_v63 }
  0xd5   : > { %3124 = vmatprep.subr.bf16.mxu0 %v3397_v1 }
  0xd7   : > { %2965 = vmatpush3.bf16.msra.mxu1 %v3354_v34  ;;  %v1846_v8 = vpop.xlane.xlu0 %1845  ;;  %v3369_v34 = vld [vmem:[%s4160_s1 + $0x3d8] sm:$0xff]  }
  0xd8   : > { %3125 = vmatpush3.bf16.msra.mxu0 %v3355_v37  ;;  %2966 = vmatprep.subr.bf16.mxu1 %v3397_v1  ;;  %v1852_v10 = vrot.slane %v1846_v8, 6  ;;  %v1973_v11 = vpop.xlane.xlu1 %1972 }
  0xd9   : > { %3126 = vmatprep.subr.bf16.mxu0 %v3397_v1  ;;  %v1977_v14 = vrot.slane %v1973_v11, 7 }
  0xda   : > { %v1854_v12 = vsel %vm740_vm3, %v1852_v10, %v1853_v7 }
  0xdb   : > { %2967 = vmatpush3.bf16.msra.mxu1 %v3356_v39  ;;  %v1856_v16 = vadd.f32 %v1854_v12, %v1735_v56  ;;  %v1970_v18 = vpop.xlane.xlu0 %1969  ;;  %v3373_v39 = vld [vmem:[%s4160_s1 + $0x3e8] sm:$0xff]  }
  0xdc   : > { %3127 = vmatpush3.bf16.msra.mxu0 %v3357_v42  ;;  %2968 = vmatprep.subr.bf16.mxu1 %v3397_v1  ;;  %v1976_v22 = vrot.slane %v1970_v18, 7  ;;  %v2096_v20 = vpop.xlane.xlu1 %2095  ;;  %v1017_v42 = vrot.slane %v3794_v48, 1  ;;  %v3378_v48 = vld [vmem:[%s4160_s1 + $0x400] sm:$0xff]  }
  0xdd   : > { %3128 = vmatprep.subr.bf16.mxu0 %v3397_v1  ;;  %v2100_v23 = vrot.slane %v2096_v20, 7 }
  0xde   : > { %v1978_v21 = vsel %vm486_vm2, %v1976_v22, %v1977_v14  ;;  %v1019_v51 = vor.u32 %v1018_v43, %v1017_v42 }
  0xdf   : > { %2969 = vmatpush3.bf16.msra.mxu1 %v3358_v47  ;;  %v2093_v26 = vpop.xlane.xlu0 %2092  ;;  %v1980_v13 = vadd.f32 %v1978_v21, %v1856_v16  ;;  %v1999_v47 = vrot.slane %v3797_v49, 4  ;;  %v3379_v49 = vld [vmem:[%s4160_s1 + $0x408] sm:$0xff]  }
  0xe0   : > { %3129 = vmatpush3.bf16.msra.mxu0 %v3359_v52  ;;  %2970 = vmatprep.subr.bf16.mxu1 %v3397_v1  ;;  %v2099_v27 = vrot.slane %v2093_v26, 7 }
  0xe1   : > { %3130 = vmatprep.subr.bf16.mxu0 %v3397_v1  ;;  %v2000_v52 = vor.u32 %v1999_v47, %v1998_v46 }
  0xe2   : > { %v2101_v31 = vsel %vm486_vm2, %v2099_v27, %v2100_v23 }
  0xe3   : > { %2971 = vmatpush3.bf16.msra.mxu1 %v3360_v60  ;;  %v2103_v33 = vadd.f32 %v2101_v31, %v1980_v13  ;;  %v2212_v17 = vpop.xlane.xlu0 %2211  ;;  %v3388_v60 = vld [vmem:[%s3465_s30 + $0x10] sm:$0xff] }
  0xe4   : > { %3131 = vmatpush3.bf16.msra.mxu0 %v3361_v2  ;;  %2976 = vmatprep.subr.bf16.mxu1 %v3397_v1  ;;  %v2104_v61 = vpack.c.bf16 %v3388_v60, %v3388_v60 }
  0xe5   : > { %3136 = vmatprep.subr.bf16.mxu0 %v3397_v1  ;;  %v2213_v35 = vadd.f32 %v2212_v17, %v2103_v33 }
  0xe6   : > { %2973 = vmatmul.mubr.bf16.vlgmr.msra.gmra.mrb[0].mxu1 %v893_v5 }
  0xe7   : > { %2977 = vmatpush3.bf16.msra.mxu1 %v3362_v28  ;;  %3133 = vmatmul.mubr.bf16.vlgmr.msra.gmra.mrb[0].mxu0 %v1876_v29  ;;  %v2214_v37 = vadd.f32 1e-06, %v2213_v35 }
  0xe8   : > { %3137 = vmatpush3.bf16.msra.mxu0 %v3363_v9  ;;  %2978 = vmatprep.subr.bf16.mxu1 %v3397_v1 }
  0xe9   : > { %3138 = vmatprep.subr.bf16.mxu0 %v3397_v1  ;;  %2992 = vmatprep.mubr.msk.bf16.mxu1 %vm3398_vm0, %v3397_v1  ;;  %3386 = vrsqrt.f32 %v2214_v37 }
  0xea   : > { %3152 = vmatprep.mubr.msk.bf16.mxu0 %vm3398_vm0, %v3397_v1 }
  0xeb   : > { %2979 = vmatpush3.bf16.msra.mxu1 %v3364_v15 }
  0xec   : > { %3139 = vmatpush3.bf16.msra.mxu0 %v3365_v19  ;;  %2980 = vmatprep.subr.bf16.mxu1 %v3397_v1 }
  0xed   : > { %3140 = vmatprep.subr.bf16.mxu0 %v3397_v1 }
  0xef   : > { %2981 = vmatpush3.bf16.msra.mxu1 %v3366_v25 }
  0xf0   : > { %3141 = vmatpush3.bf16.msra.mxu0 %v3367_v30  ;;  %2982 = vmatprep.subr.bf16.mxu1 %v3397_v1 }
  0xf1   : > { %3142 = vmatprep.subr.bf16.mxu0 %v3397_v1 }
  0xf3   : > { %2983 = vmatpush3.bf16.msra.mxu1 %v3368_v32  ;;  %v3387_v44 = vpop.eup %3386 }
  0xf4   : > { %3143 = vmatpush3.bf16.msra.mxu0 %v3369_v34  ;;  %2984 = vmatprep.subr.bf16.mxu1 %v3397_v1 }
  0xf5   : > { %3144 = vmatprep.subr.bf16.mxu0 %v3397_v1  ;;  %2219 = vperm.xlu1 %3248, %v3387_v44  }
  0xf7   : > { %2985 = vmatpush3.bf16.msra.mxu1 %v3370_v36 }
  0xf8   : > { %3145 = vmatpush3.bf16.msra.mxu0 %v3371_v38  ;;  %2986 = vmatprep.subr.bf16.mxu1 %v3397_v1 }
  0xf9   : > { %3146 = vmatprep.subr.bf16.mxu0 %v3397_v1 }
  0xfb   : > { %2987 = vmatpush3.bf16.msra.mxu1 %v3372_v24 }
  0xfc   : > { %3147 = vmatpush3.bf16.msra.mxu0 %v3373_v39  ;;  %2988 = vmatprep.subr.bf16.mxu1 %v3397_v1 }
  0xfd   : > { %3148 = vmatprep.subr.bf16.mxu0 %v3397_v1 }
  0xff   : > { %2989 = vmatpush3.bf16.msra.mxu1 %v3374_v40 }
 0x100   : > { %3149 = vmatpush3.bf16.msra.mxu0 %v3375_v41  ;;  %2990 = vmatprep.subr.bf16.mxu1 %v3397_v1 }
 0x101   : > { %3150 = vmatprep.subr.bf16.mxu0 %v3397_v1 }
 0x103   : > { %2991 = vmatpush3.bf16.msra.mxu1 %v3376_v45 }
 0x104   : > { %3151 = vmatpush3.bf16.msra.mxu0 %v3377_v50 }
 0x105   : > { %3156 = vmatprep.subr.bf16.mxu0 %v3397_v1 }
 0x106   : > { %2993 = vmatmul.mubr.bf16.vlgmr.msra.gmra.mrb[0].mxu1 %v1019_v51 }
 0x107   : > { %3153 = vmatmul.mubr.bf16.vlgmr.msra.gmra.mrb[0].mxu0 %v2000_v52 }
 0x108   : > { %3157 = vmatpush3.bf16.msra.mxu0 %v3378_v48  ;;  %3172 = vmatprep.mubr.msk.bf16.mxu0 %vm3398_vm0, %v3397_v1 }
 0x109   : > { %3158 = vmatprep.subr.bf16.mxu0 %v3397_v1 }
 0x10c   : > { %3159 = vmatpush3.bf16.msra.mxu0 %v3379_v49 }
 0x10d   : > { %3160 = vmatprep.subr.bf16.mxu0 %v3397_v1 }
 0x110   : > { %3161 = vmatpush3.bf16.msra.mxu0 %v3380_v53 }
 0x111   : > { %3162 = vmatprep.subr.bf16.mxu0 %v3397_v1 }
 0x114   : > { %3163 = vmatpush3.bf16.msra.mxu0 %v3381_v54 }
 0x115   : > { %3164 = vmatprep.subr.bf16.mxu0 %v3397_v1 }
 0x118   : > { %3165 = vmatpush3.bf16.msra.mxu0 %v3382_v55 }
 0x119   : > { %3166 = vmatprep.subr.bf16.mxu0 %v3397_v1 }
 0x11c   : > { %3167 = vmatpush3.bf16.msra.mxu0 %v3383_v57 }
 0x11d   : > { %3168 = vmatprep.subr.bf16.mxu0 %v3397_v1 }
 0x120   : > { %3169 = vmatpush3.bf16.msra.mxu0 %v3384_v58 }
 0x121   : > { %3170 = vmatprep.subr.bf16.mxu0 %v3397_v1 }
 0x124   : > { %3171 = vmatpush3.bf16.msra.mxu0 %v3385_v59 }
 0x127   : > { %3173 = vmatmul.mubr.bf16.vlgmr.msra.gmra.mrb[0].mxu0 %v2104_v61 }
 0x174   : > { %v2220_v29 = vpop.permute.xlu1 %2219 }
 0x1d9   : > { %v1103_v62 = vpop.f32.mrb[0].mxu1 }
 0x1da   : > { %v2994_v63 = vpop.f32.mrb[1].mxu1 }
 0x1db   : > { %v1106_v0 = vpop.f32.mrb[2].mxu1 }
 0x1dc   : > { %v2995_v2 = vpop.f32.mrb[3].mxu1 }
 0x1fa   : > { %v2204_v3 = vpop.f32.mrb[0].mxu0 }
 0x1fb   : > { %v3176_v4 = vadd.f32 %v2204_v3, %v1103_v62  ;;  %v3174_v5 = vpop.f32.mrb[1].mxu0 }
 0x1fc   : > { %v2207_v6 = vpop.f32.mrb[2].mxu0 }
 0x1fd   : > { %v2216_v7 = vand.u32 2147483647, %v3176_v4  ;;  %v3175_v28 = vpop.f32.mrb[3].mxu0 }
 0x1ff   : > { %v2222_v56 = vmul.f32 %v2220_v29, %v2216_v7 }
 0x201   : > { %v2223_v8 = vadd.f32 1e-06, %v2222_v56 }
 0x203   : > { %v2224_v1 = vmul.f32 %v3176_v4, %v2223_v8 }
 0x205   : > { %v2225_v9 = vmul.f32 4.2874646, %v2224_v1 }
 0x207   : > { %2226 = vst [vmem:[%s141_s13] sm:$0xff] %v2225_v9 }
 0x208 PF: > { %s12_s9 = sadd.s32 1, %s3395_s9  }
 0x209   : > { %p9_p4 = scmp.ge.s32.totalorder %s12_s9, 4  }
 0x20b   :  { %11 = sbr.rel (!%p9_p4) target bundleno = 1 (0x1), region = 74 }

// kernel: bcos_transformer_forward.11
= control target key start
LH: loop header
LB: loop body
LE: loop exit
PB: predicated region body
PF: predicated region fallthrough
CT: control target
= control target key end

     0   :  { %v956_v0 = vmov 0.0   ;;  %vm957_vm0 = vmmov 0   ;;  %v31_v6 = vlaneseq  ;;  %vm360_vm6 = vcmask 64512   ;;  %s1178_s1 = inlined_call_operand.vmem [shape: bf16[128,128], index: 1, kind: input, shape index: {}]   ;;  %s1179_s2 = inlined_call_operand.vmem [shape: bf16[128,128], index: 2, kind: input, shape index: {}]   ;;  %s1180_s0 = inlined_call_operand.vmem [shape: f32[8,128], index: 0, kind: input, shape index: {}]   ;;  %s1181_s3 = inlined_call_operand.vmem [shape: f32[1,128], index: 3, kind: input, shape index: {}]   ;;  %s1182_s4 = inlined_call_operand.vmem [shape: f32[1,128], index: 4, kind: input, shape index: {}]   ;;  %s1183_s5 = inlined_call_operand.vmem [shape: f32[1,128], index: 5, kind: input, shape index: {}]   ;;  %s1184_s6 = inlined_call_operand.vmem [shape: f32[1,128], index: 6, kind: input, shape index: {}]   ;;  %s1185_s7 = inlined_call_operand.vmem [shape: bf16[128,128], index: 7, kind: input, shape index: {}]   ;;  %s1186_s8 = inlined_call_operand.vmem [shape: f32[8,128], index: 8, kind: output, shape index: {}]  }
   0x1   :  { %834 = vmatprep.subr.bf16.mxu1 %v956_v0  ;;  %v916_v1 = vld [vmem:[%s1178_s1] sm:$0xff]   ;;  %850 = vmatprep.mubr.msk.bf16.mxu1 %vm957_vm0, %v956_v0  ;;  %v917_v2 = vld [vmem:[%s1178_s1 + $0x8] sm:$0xff]   ;;  %v918_v3 = vld [vmem:[%s1178_s1 + $0x10] sm:$0xff]  }
   0x2   :  { %874 = vmatprep.subr.mxu0 %v956_v0  ;;  %876 = vmatprep.mubr.msk.f32.mxu0 %vm957_vm0, %v956_v0  ;;  %v919_v4 = vld [vmem:[%s1178_s1 + $0x18] sm:$0xff]   ;;  %v920_v5 = vld [vmem:[%s1178_s1 + $0x20] sm:$0xff]   ;;  %v921_v7 = vld [vmem:[%s1178_s1 + $0x28] sm:$0xff]   ;;  %v32_v8 = vshrl.u32 %v31_v6, 7  ;;  %v1032_v9 = vand.u32 127, %v31_v6 }
   0x3   :  { %835 = vmatpush3.bf16.msra.mxu1 %v916_v1  ;;  %v922_v10 = vld [vmem:[%s1178_s1 + $0x30] sm:$0xff]   ;;  %v923_v11 = vld [vmem:[%s1178_s1 + $0x38] sm:$0xff]   ;;  %v1045_v12 = vld [vmem:[%s1180_s0] sm:$0xff] }
   0x4   :  { %836 = vmatprep.subr.bf16.mxu1 %v956_v0  ;;  %vm35_vm1 = vcmp.lt.s32.totalorder %v32_v8, 2  ;;  %vm36_vm2 = vcmp.lt.s32.totalorder %v1032_v9, 32  ;;  %v768_v14 = vpack.c.bf16 %v1045_v12, %v1045_v12  ;;  %v924_v15 = vld [vmem:[%s1179_s2] sm:$0xff]   ;;  %v925_v16 = vld [vmem:[%s1179_s2 + $0x8] sm:$0xff]   ;;  %v926_v17 = vld [vmem:[%s1179_s2 + $0x10] sm:$0xff]   ;;  %vm358_vm5 = vcmp.lt.s32.totalorder %v1032_v9, 2 }
   0x5   :  { %vm1050_vm3 = vmand %vm35_vm1, %vm36_vm2  ;;  %v927_v18 = vld [vmem:[%s1179_s2 + $0x18] sm:$0xff]   ;;  %v928_v19 = vld [vmem:[%s1179_s2 + $0x20] sm:$0xff]   ;;  %vm752_vm8 = vcmp.eq.s32.totalorder %v1032_v9, 31 }
   0x6   :  { %vm767_vm4 = vmpackc.low %vm1050_vm3, %vm1050_vm3  ;;  %v929_v20 = vld [vmem:[%s1179_s2 + $0x28] sm:$0xff]   ;;  %v930_v21 = vld [vmem:[%s1179_s2 + $0x30] sm:$0xff]   ;;  %v38_v23 = vsel %vm1050_vm3, %v1045_v12, 0.0 }
   0x7   :  { %837 = vmatpush3.bf16.msra.mxu1 %v917_v2  ;;  %v931_v22 = vld [vmem:[%s1179_s2 + $0x38] sm:$0xff]   ;;  %250 = vadd.xlane.f32.xlu0 %v38_v23  ;;  %v253_v24 = vmul.f32 %v38_v23, %v38_v23  ;;  %v781_v44 = vld [vmem:[%s1181_s3] ss:$0 sm:$0xff]  ;;  %v934_v13 = vld [vmem:[%s1185_s7 + $0x10] sm:$0xff]  }
   0x8   :  { %838 = vmatprep.subr.bf16.mxu1 %v956_v0  ;;  %v782_v46 = vld [vmem:[%s1182_s4] ss:$0 sm:$0xff]  ;;  %vm796_vm7 = vmpackc.low %vm36_vm2, %vm36_vm2 }
   0xb   :  { %839 = vmatpush3.bf16.msra.mxu1 %v918_v3  ;;  %254 = vadd.xlane.f32.xlu0 %v253_v24  ;;  %v785_v24 = vld [vmem:[%s1184_s6] ss:$0 sm:$0xff] }
   0xc   :  { %840 = vmatprep.subr.bf16.mxu1 %v956_v0 }
   0xf   :  { %841 = vmatpush3.bf16.msra.mxu1 %v919_v4 }
  0x10   :  { %842 = vmatprep.subr.bf16.mxu1 %v956_v0 }
  0x13   :  { %843 = vmatpush3.bf16.msra.mxu1 %v920_v5 }
  0x14   :  { %844 = vmatprep.subr.bf16.mxu1 %v956_v0 }
  0x17   :  { %845 = vmatpush3.bf16.msra.mxu1 %v921_v7 }
  0x18   :  { %846 = vmatprep.subr.bf16.mxu1 %v956_v0 }
  0x1b   :  { %847 = vmatpush3.bf16.msra.mxu1 %v922_v10 }
  0x1c   :  { %848 = vmatprep.subr.bf16.mxu1 %v956_v0 }
  0x1f   :  { %849 = vmatpush3.bf16.msra.mxu1 %v923_v11 }
  0x20   :  { %854 = vmatprep.subr.bf16.mxu1 %v956_v0 }
  0x22   :  { %851 = vmatmul.mubr.msk.bf16.vlgmr.msra.gmra.mrb[0].mxu1 %vm767_vm4, %v768_v14 }
  0x23   :  { %855 = vmatpush3.bf16.msra.mxu1 %v924_v15  ;;  %870 = vmatprep.mubr.msk.bf16.mxu1 %vm957_vm0, %v956_v0 }
  0x24   :  { %856 = vmatprep.subr.bf16.mxu1 %v956_v0 }
  0x27   :  { %857 = vmatpush3.bf16.msra.mxu1 %v925_v16 }
  0x28   :  { %858 = vmatprep.subr.bf16.mxu1 %v956_v0 }
  0x2b   :  { %859 = vmatpush3.bf16.msra.mxu1 %v926_v17 }
  0x2c   :  { %860 = vmatprep.subr.bf16.mxu1 %v956_v0 }
  0x2f   :  { %861 = vmatpush3.bf16.msra.mxu1 %v927_v18 }
  0x30   :  { %862 = vmatprep.subr.bf16.mxu1 %v956_v0 }
  0x33   :  { %863 = vmatpush3.bf16.msra.mxu1 %v928_v19 }
  0x34   :  { %864 = vmatprep.subr.bf16.mxu1 %v956_v0 }
  0x37   :  { %865 = vmatpush3.bf16.msra.mxu1 %v929_v20 }
  0x38   :  { %866 = vmatprep.subr.bf16.mxu1 %v956_v0 }
  0x3b   :  { %867 = vmatpush3.bf16.msra.mxu1 %v930_v21 }
  0x3c   :  { %868 = vmatprep.subr.bf16.mxu1 %v956_v0 }
  0x3f   :  { %869 = vmatpush3.bf16.msra.mxu1 %v931_v22  ;;  %v784_v22 = vld [vmem:[%s1183_s5] ss:$0 sm:$0xff] }
  0x42   :  { %871 = vmatmul.mubr.msk.bf16.vlgmr.msra.gmra.mrb[4].mxu1 %vm767_vm4, %v768_v14 }
  0x94   :  { %v251_v33 = vpop.xlane.xlu0 %250 }
  0x95   :  { %v252_v34 = vmul.f32 0.03125, %v251_v33 }
  0x97   :  { %v257_v36 = vmul.f32 %v252_v34, %v252_v34  ;;  %v260_v41 = vsub.f32 %v38_v23, %v252_v34 }
  0x98   :  { %v255_v35 = vpop.xlane.xlu0 %254 }
  0x99   :  { %v256_v37 = vmul.f32 0.03125, %v255_v35 }
  0x9b   :  { %v258_v38 = vsub.f32 %v256_v37, %v257_v36 }
  0x9d   :  { %v259_v39 = vmax.f32 %v258_v38, 0.0  ;;  %v932_v38 = vld [vmem:[%s1185_s7] sm:$0xff]  }
  0x9f   :  { %v261_v40 = vadd.f32 1e-05, %v259_v39 }
  0xa1   :  { %940 = vrsqrt.f32 %v261_v40 }
  0xab   :  { %v941_v42 = vpop.eup %940 }
  0xac   :  { %v263_v43 = vmul.f32 %v941_v42, %v260_v41  ;;  %v935_v42 = vld [vmem:[%s1185_s7 + $0x18] sm:$0xff]  }
  0xae   :  { %v270_v45 = vmul.f32 %v781_v44, %v263_v43  ;;  %v936_v43 = vld [vmem:[%s1185_s7 + $0x20] sm:$0xff]   ;;  %v937_v44 = vld [vmem:[%s1185_s7 + $0x28] sm:$0xff]  }
  0xb0   :  { %v277_v47 = vadd.f32 %v782_v46, %v270_v45  ;;  %v938_v45 = vld [vmem:[%s1185_s7 + $0x30] sm:$0xff]   ;;  %v939_v46 = vld [vmem:[%s1185_s7 + $0x38] sm:$0xff]  }
  0xb2   :  { %v278_v52 = vmul.f32 %v277_v47, %v277_v47  ;;  %v283_v59 = vand.u32 2147483647, %v277_v47 }
  0xf5   :  { %v138_v25 = vpop.f32.mrb[0].mxu1 }
  0xf6   :  { %v852_v26 = vpop.f32.mrb[1].mxu1 }
  0xf7   :  { %v141_v27 = vpop.f32.mrb[2].mxu1 }
  0xf8   :  { %v853_v28 = vpop.f32.mrb[3].mxu1 }
 0x115   :  { %v242_v29 = vpop.f32.mrb[4].mxu1 }
 0x116   :  { %v872_v30 = vpop.f32.mrb[5].mxu1  ;;  %875 = vmatpush3.xpose.msra.mxu0 %v242_v29 }
 0x117   :  { %v245_v31 = vpop.f32.mrb[6].mxu1  ;;  %879 = vmatprep.subr.mxu0 %v956_v0 }
 0x118   :  { %v873_v32 = vpop.f32.mrb[7].mxu1 }
 0x119   :  { %877 = vmatmul.mubr.f32.vlgmr.msra.gmra.mrb[0].mxu0 %v138_v25 }
 0x11a   :  { %881 = vmatprep.mubr.msk.f32.mxu0 %vm957_vm0, %v956_v0 }
 0x1ec   :  { %v354_v48 = vpop.f32.mrb[0].mxu0 }
 0x1ed   :  { %v359_v49 = vsel %vm358_vm5, %v354_v48, -1e+30  ;;  %v878_v50 = vpop.f32.mrb[1].mxu0 }
 0x1ee   :  { %v361_v51 = vsel %vm360_vm6, %v359_v49, -inf }
 0x1ef   :  { %362 = vmax.xlane.f32.xlu1 %v361_v51 }
 0x1f3   :  { %279 = vadd.xlane.f32.xlu1 %v278_v52 }
 0x27c   :  { %v363_v53 = vpop.xlane.xlu1 %362 }
 0x27d   :  { %v364_v54 = vsub.f32 %v359_v49, %v363_v53 }
 0x27f   :  { %v365_v55 = vmul.f32 1.442695, %v364_v54 }
 0x280   :  { %v280_v56 = vpop.xlane.xlu1 %279 }
 0x281   :  { %942 = vpow2.f32 %v365_v55  ;;  %v281_v57 = vadd.f32 1e-06, %v280_v56 }
 0x283   :  { %944 = vrsqrt.f32 %v281_v57 }
 0x28b   :  { %v943_v58 = vpop.eup %942 }
 0x28c   :  { %v367_v60 = vsel %vm360_vm6, %v943_v58, 0.0 }
 0x28d   :  { %v945_v61 = vpop.eup %944  ;;  %368 = vadd.xlane.f32.xlu0 %v367_v60 }
 0x28e   :  { %v284_v62 = vmul.f32 %v945_v61, %v283_v59 }
 0x290   :  { %v285_v63 = vadd.f32 1e-06, %v284_v62 }
 0x292   :  { %v286_v1 = vmul.f32 %v285_v63, %v277_v47 }
 0x294   :  { %v287_v2 = vmul.f32 17.67767, %v286_v1 }
 0x296   :  { %880 = vmatpush3.msra.mxu0 %v287_v2 }
 0x297   :  { %884 = vmatprep.subr.mxu0 %v956_v0 }
 0x31a   :  { %v369_v3 = vpop.xlane.xlu0 %368 }
 0x31b   :  { %946 = vrcp.f32 %v369_v3 }
 0x325   :  { %v947_v4 = vpop.eup %946 }
 0x326   :  { %v371_v5 = vmul.f32 %v947_v4, %v943_v58 }
 0x328   :  { %882 = vmatmul.mubr.msk.f32.vlgmr.msra.gmra.mrb[2].mxu0 %vm360_vm6, %v371_v5 }
 0x329   :  { %886 = vmatprep.mubr.msk.f32.mxu0 %vm957_vm0, %v956_v0 }
 0x3fb   :  { %v441_v6 = vpop.f32.mrb[2].mxu0 }
 0x3fc   :  { %447 = vadd.xlane.f32.xlu1 %v441_v6  ;;  %v883_v7 = vpop.f32.mrb[3].mxu0  ;;  %885 = vmatpush3.xpose.msra.mxu0 %v441_v6  ;;  %v450_v8 = vmul.f32 %v441_v6, %v441_v6 }
 0x3fd   :  { %889 = vmatprep.subr.mxu0 %v956_v0 }
 0x3fe   :  { %451 = vadd.xlane.f32.xlu0 %v450_v8 }
 0x489   :  { %v448_v10 = vpop.xlane.xlu1 %447 }
 0x48a   :  { %v449_v11 = vmul.f32 0.03125, %v448_v10 }
 0x48b   :  { %v452_v14 = vpop.xlane.xlu0 %451 }
 0x48c   :  { %v454_v15 = vmul.f32 %v449_v11, %v449_v11  ;;  %v453_v16 = vmul.f32 0.03125, %v452_v14  ;;  %v457_v20 = vsub.f32 %v441_v6, %v449_v11 }
 0x48e   :  { %v455_v17 = vsub.f32 %v453_v16, %v454_v15 }
 0x490   :  { %v456_v18 = vmax.f32 %v455_v17, 0.0 }
 0x492   :  { %v458_v19 = vadd.f32 1e-05, %v456_v18 }
 0x494   :  { %948 = vrsqrt.f32 %v458_v19 }
 0x49e   :  { %v949_v21 = vpop.eup %948 }
 0x49f   :  { %v460_v23 = vmul.f32 %v949_v21, %v457_v20 }
 0x4a1   :  { %v467_v25 = vmul.f32 %v784_v22, %v460_v23 }
 0x4a3   :  { %v474_v26 = vadd.f32 %v785_v24, %v467_v25 }
 0x4a5   :  { %v475_v27 = vmul.f32 %v474_v26, %v474_v26  ;;  %v480_v30 = vand.u32 2147483647, %v474_v26 }
 0x4a7   :  { %476 = vadd.xlane.f32.xlu1 %v475_v27 }
 0x534   :  { %v477_v28 = vpop.xlane.xlu1 %476 }
 0x535   :  { %v478_v29 = vadd.f32 1e-06, %v477_v28 }
 0x537   :  { %950 = vrsqrt.f32 %v478_v29 }
 0x541   :  { %v951_v31 = vpop.eup %950 }
 0x542   :  { %v481_v32 = vmul.f32 %v951_v31, %v480_v30 }
 0x544   :  { %v482_v33 = vadd.f32 1e-06, %v481_v32 }
 0x546   :  { %v483_v34 = vmul.f32 %v482_v33, %v474_v26 }
 0x548   :  { %v484_v35 = vmul.f32 17.67767, %v483_v34 }
 0x54a   :  { %887 = vmatmul.mubr.f32.vlgmr.msra.gmra.mrb[4].mxu0 %v484_v35 }
 0x54b   :  { %890 = vmatpush3.msk.msra.mxu0 %vm1050_vm3, %v1045_v12  ;;  %891 = vmatprep.mubr.msk.f32.mxu0 %vm957_vm0, %v956_v0  ;;  %v933_v12 = vld [vmem:[%s1185_s7 + $0x8] sm:$0xff]  }
 0x54c   :  { %894 = vmatprep.subr.bf16.mxu0 %v956_v0 }
 0x61d   :  { %v551_v36 = vpop.f32.mrb[4].mxu0 }
 0x61e   :  { %v888_v37 = vpop.f32.mrb[5].mxu0  ;;  %892 = vmatmul.mubr.msk.f32.vlgmr.msra.gmra.mrb[6].mxu0 %vm360_vm6, %v551_v36 }
 0x61f   :  { %910 = vmatprep.mubr.msk.bf16.mxu0 %vm957_vm0, %v956_v0  ;;  %895 = vmatpush3.bf16.msra.mxu0 %v932_v38 }
 0x620   :  { %896 = vmatprep.subr.bf16.mxu0 %v956_v0 }
 0x623   :  { %897 = vmatpush3.bf16.msra.mxu0 %v933_v12 }
 0x624   :  { %898 = vmatprep.subr.bf16.mxu0 %v956_v0 }
 0x627   :  { %899 = vmatpush3.bf16.msra.mxu0 %v934_v13 }
 0x628   :  { %900 = vmatprep.subr.bf16.mxu0 %v956_v0 }
 0x62b   :  { %901 = vmatpush3.bf16.msra.mxu0 %v935_v42 }
 0x62c   :  { %902 = vmatprep.subr.bf16.mxu0 %v956_v0 }
 0x62f   :  { %903 = vmatpush3.bf16.msra.mxu0 %v936_v43 }
 0x630   :  { %904 = vmatprep.subr.bf16.mxu0 %v956_v0 }
 0x633   :  { %905 = vmatpush3.bf16.msra.mxu0 %v937_v44 }
 0x634   :  { %906 = vmatprep.subr.bf16.mxu0 %v956_v0 }
 0x637   :  { %907 = vmatpush3.bf16.msra.mxu0 %v938_v45 }
 0x638   :  { %908 = vmatprep.subr.bf16.mxu0 %v956_v0 }
 0x63b   :  { %909 = vmatpush3.bf16.msra.mxu0 %v939_v46 }
 0x6f1   :  { %v624_v39 = vpop.f32.mrb[6].mxu0 }
 0x6f2   :  { %v893_v40 = vpop.f32.mrb[7].mxu0  ;;  %v628_v41 = vmul.f32 %v624_v39, %v624_v39  ;;  %v633_v49 = vand.u32 2147483647, %v624_v39 }
 0x6f4   :  { %629 = vadd.xlane.f32.xlu0 %v628_v41 }
 0x781   :  { %v630_v47 = vpop.xlane.xlu0 %629 }
 0x782   :  { %v631_v48 = vadd.f32 1e-06, %v630_v47 }
 0x784   :  { %952 = vrsqrt.f32 %v631_v48 }
 0x78e   :  { %v953_v50 = vpop.eup %952 }
 0x78f   :  { %v634_v51 = vmul.f32 %v953_v50, %v633_v49 }
 0x791   :  { %v635_v52 = vadd.f32 1e-06, %v634_v51 }
 0x793   :  { %v797_v53 = vpack.c.bf16 %v635_v52, %v635_v52  ;;  %v636_v0 = vsel %vm36_vm2, %v635_v52, 0.0 }
 0x794   :  { %v742_v54 = vmul.f32 %v636_v0, %v636_v0 }
 0x795   :  { %911 = vmatmul.mubr.msk.bf16.vlgmr.msra.gmra.mrb[8].mxu0 %vm796_vm7, %v797_v53 }
 0x796   :  { %743 = vadd.xlane.f32.xlu1 %v742_v54 }
 0x823   :  { %v744_v55 = vpop.xlane.xlu1 %743 }
 0x824   :  { %v745_v56 = vadd.f32 1e-06, %v744_v55 }
 0x826   :  { %954 = vrsqrt.f32 %v745_v56 }
 0x830   :  { %v955_v60 = vpop.eup %954 }
 0x868   :  { %v736_v57 = vpop.f32.mrb[8].mxu0 }
 0x869   :  { %v747_v58 = vand.u32 2147483647, %v736_v57  ;;  %v912_v59 = vpop.f32.mrb[9].mxu0 }
 0x86a   :  { %v739_v61 = vpop.f32.mrb[10].mxu0 }
 0x86b   :  { %v748_v62 = vmul.f32 %v955_v60, %v747_v58  ;;  %v913_v63 = vpop.f32.mrb[11].mxu0 }
 0x86d   :  { %v749_v1 = vadd.f32 1e-06, %v748_v62 }
 0x86f   :  { %v750_v2 = vmul.f32 %v749_v1, %v736_v57 }
 0x871   :  { %v751_v3 = vmul.f32 17.67767, %v750_v2 }
 0x873   :  { %v753_v4 = vsel %vm752_vm8, 1.0, %v751_v3 }
 0x874   :  { %754 = vst [vmem:[%s1186_s8] sm:$0xff] %v753_v4 }

</bundles_post_ra>
